<compile_context>
chip_gen: v5e
topology: v5e:2x2
jax: 0.10.0
libtpu: 0.0.40
codegen_flags: <defaults>
</compile_context>

<pallas_src>
import functools

import jax
import jax.numpy as jnp
import numpy as np
from jax import lax
from jax.experimental import pallas as pl
from jax.experimental.pallas import tpu as pltpu


def _round_up(x, m):
    return (x + m - 1) // m * m


def _encoder_lstm_kernel(x_ref, h0_ref, c0_ref, wih_ref, whh_ref, b_ref,
                         out_ref, hT_ref, cT_ref, h_s, c_s,
                         *, hidden_p, t_blk, seq_len):
    """Fused input-projection + LSTM recurrence over a block of t_blk steps.

    x_ref  : (t_blk, Bp, Hp)   embedded inputs for this time block
    wih_ref: (Hp, 4*Hp)        pre-transposed input weights   (gate order i,f,g,o)
    whh_ref: (Hp, 4*Hp)        pre-transposed recurrent weights
    b_ref  : (1, 4*Hp)         b_ih + b_hh, per-gate lane-padded
    """
    blk = pl.program_id(0)
    Hp = hidden_p

    @pl.when(blk == 0)
    def _():
        h_s[...] = h0_ref[...]
        c_s[...] = c0_ref[...]

    # Load resident weights / bias once per grid step.
    w_ih = wih_ref[...]
    w_hh = whh_ref[...]
    bias = b_ref[...]                    # (1, 4*Hp) -> broadcasts over batch

    def step(i, carry):
        h, c = carry
        # gates = x_t @ W_ih^T + h @ W_hh^T + b    -> (Bp, 4*Hp), lane-dense.
        # The x-projection does not depend on the carry, so the scheduler can
        # issue it ahead of time across unrolled iterations.
        gates = (jnp.dot(x_ref[i], w_ih, preferred_element_type=jnp.float32)
                 + jnp.dot(h, w_hh, preferred_element_type=jnp.float32)
                 + bias)

        i_g = jax.nn.sigmoid(gates[:, 0 * Hp:1 * Hp])
        f_g = jax.nn.sigmoid(gates[:, 1 * Hp:2 * Hp])
        g_g = jnp.tanh(gates[:, 2 * Hp:3 * Hp])
        o_g = jax.nn.sigmoid(gates[:, 3 * Hp:4 * Hp])

        c_new = f_g * c + i_g * g_g
        h_new = o_g * jnp.tanh(c_new)

        if seq_len % t_blk != 0:
            # Mask padded tail timesteps so the carried (h, c) stay exact.
            valid = (blk * t_blk + i) < seq_len
            h_new = jnp.where(valid, h_new, h)
            c_new = jnp.where(valid, c_new, c)

        out_ref[i] = h_new
        return (h_new, c_new)

    h, c = lax.fori_loop(0, t_blk, step, (h_s[...], c_s[...]), unroll=True)
    h_s[...] = h
    c_s[...] = c

    # Only materialize the final-state outputs once, on the last grid step.
    @pl.when(blk == pl.num_programs(0) - 1)
    def _():
        hT_ref[...] = h
        cT_ref[...] = c


@functools.partial(jax.jit, static_argnames=("t_blk_target",))
def lstm_pallas(x_emb, h0, c0, w_ih, w_hh, b_ih, b_hh, *, t_blk_target=32):
    """x_emb: (S, B, H) f32; h0/c0: (1, B, H) f32; weights: (4H, H); biases: (4H,)."""
    S, B, H = x_emb.shape
    Hp = _round_up(H, 128)          # lane-aligned hidden size
    Bp = _round_up(B, 8)            # sublane-aligned batch
    t_blk = min(t_blk_target, S)    # timesteps per grid step
    Sp = _round_up(S, t_blk)
    n_blk = Sp // t_blk
    f32 = jnp.float32

    def pad_wT(w):
        # (4H, H) torch layout -> per-gate padded transpose -> (Hp, 4*Hp)
        w4 = w.reshape(4, H, H).astype(f32)                 # (gate, out, in)
        w4t = jnp.transpose(w4, (0, 2, 1))                  # (gate, in, out)
        w4t = jnp.pad(w4t, ((0, 0), (0, Hp - H), (0, Hp - H)))
        return jnp.transpose(w4t, (1, 0, 2)).reshape(Hp, 4 * Hp)

    w_ih_t = pad_wT(w_ih)
    w_hh_t = pad_wT(w_hh)

    b4 = (b_ih + b_hh).reshape(4, H).astype(f32)
    b_p = jnp.pad(b4, ((0, 0), (0, Hp - H))).reshape(1, 4 * Hp)

    # Padded activations / initial state (zero padding keeps padded lanes at 0).
    x_p = jnp.pad(x_emb.astype(f32), ((0, Sp - S), (0, Bp - B), (0, Hp - H)))
    h0_p = jnp.pad(h0[0].astype(f32), ((0, Bp - B), (0, Hp - H)))
    c0_p = jnp.pad(c0[0].astype(f32), ((0, Bp - B), (0, Hp - H)))

    kernel = functools.partial(_encoder_lstm_kernel,
                               hidden_p=Hp, t_blk=t_blk, seq_len=S)

    out_p, hT, cT = pl.pallas_call(
        kernel,
        out_shape=(
            jax.ShapeDtypeStruct((Sp, Bp, Hp), jnp.float32),
            jax.ShapeDtypeStruct((Bp, Hp), jnp.float32),
            jax.ShapeDtypeStruct((Bp, Hp), jnp.float32),
        ),
        grid_spec=pltpu.PrefetchScalarGridSpec(
            num_scalar_prefetch=0,
            grid=(n_blk,),
            in_specs=[
                pl.BlockSpec((t_blk, Bp, Hp), lambda t: (t, 0, 0)),       # x block
                pl.BlockSpec((Bp, Hp), lambda t: (0, 0)),                 # h0 (resident)
                pl.BlockSpec((Bp, Hp), lambda t: (0, 0)),                 # c0 (resident)
                pl.BlockSpec((Hp, 4 * Hp), lambda t: (0, 0)),             # W_ih^T (resident)
                pl.BlockSpec((Hp, 4 * Hp), lambda t: (0, 0)),             # W_hh^T (resident)
                pl.BlockSpec((1, 4 * Hp), lambda t: (0, 0)),              # bias (resident)
            ],
            out_specs=[
                pl.BlockSpec((t_blk, Bp, Hp), lambda t: (t, 0, 0)),       # output sequence
                pl.BlockSpec((Bp, Hp), lambda t: (0, 0)),                 # h_n
                pl.BlockSpec((Bp, Hp), lambda t: (0, 0)),                 # c_n
            ],
            scratch_shapes=[
                pltpu.VMEM((Bp, Hp), jnp.float32),                        # h carry
                pltpu.VMEM((Bp, Hp), jnp.float32),                        # c carry
            ],
        ),
        compiler_params=pltpu.CompilerParams(
            dimension_semantics=("arbitrary",),      # sequential recurrence
            vmem_limit_bytes=32 * 1024 * 1024,
        ),
    )(x_p, h0_p, c0_p, w_ih_t, w_hh_t, b_p)

    out = out_p[:S, :B, :H]
    h_n = hT[:B, :H][None]
    c_n = cT[:B, :H][None]
    return out, (h_n, c_n)


class EncoderRNNPallas:
    """JAX/Pallas port of EncoderRNN (nn.Embedding + nn.LSTM, single layer)."""

    def __init__(self, input_size, hidden_size, key):
        self.input_size = input_size
        self.hidden_size = hidden_size
        k0, k1, k2, k3, k4 = jax.random.split(key, 5)
        bound = 1.0 / np.sqrt(hidden_size)
        # nn.Embedding default init: N(0, 1)
        self.embedding = jax.random.normal(k0, (input_size, hidden_size), jnp.float32)
        # nn.LSTM default init: U(-1/sqrt(H), 1/sqrt(H))
        self.w_ih = jax.random.uniform(k1, (4 * hidden_size, hidden_size),
                                       jnp.float32, -bound, bound)
        self.w_hh = jax.random.uniform(k2, (4 * hidden_size, hidden_size),
                                       jnp.float32, -bound, bound)
        self.b_ih = jax.random.uniform(k3, (4 * hidden_size,), jnp.float32, -bound, bound)
        self.b_hh = jax.random.uniform(k4, (4 * hidden_size,), jnp.float32, -bound, bound)

    def get_initial_hidden_state(self, bsize=1):
        z = jnp.zeros((1, bsize, self.hidden_size), jnp.float32)
        return (z, z)   # (h0, c0) — nn.LSTM expects a tuple

    def __call__(self, input_ids, hidden):
        # Embedding lookup (plain-JAX gather glue).
        inp = self.embedding[input_ids]                # (S, B, H)
        h0, c0 = hidden
        output, hidden = lstm_pallas(inp, h0, c0,
                                     self.w_ih, self.w_hh, self.b_ih, self.b_hh)
        return output, hidden


def _lstm_reference(x_emb, h0, c0, w_ih, w_hh, b_ih, b_hh):
    """Pure-JAX reference matching torch.nn.LSTM semantics (gate order i,f,g,o)."""
    H = h0.shape[-1]

    def step(carry, x_t):
        h, c = carry
        gates = x_t @ w_ih.T + h @ w_hh.T + b_ih + b_hh
        i = jax.nn.sigmoid(gates[:, 0 * H:1 * H])
        f = jax.nn.sigmoid(gates[:, 1 * H:2 * H])
        g = jnp.tanh(gates[:, 2 * H:3 * H])
        o = jax.nn.sigmoid(gates[:, 3 * H:4 * H])
        c = f * c + i * g
        h = o * jnp.tanh(c)
        return (h, c), h

    (h_n, c_n), ys = jax.lax.scan(step, (h0[0], c0[0]), x_emb)
    return ys, (h_n[None], c_n[None])


if __name__ == "__main__":
    INPUT_SIZE = 16   # vocab size
    HIDDEN = 32
    SEQ = 8
    BATCH = 2

    key = jax.random.PRNGKey(0)
    k_model, k_ids = jax.random.split(key)

    model = EncoderRNNPallas(INPUT_SIZE, HIDDEN, k_model)

    input_ids = jax.random.randint(k_ids, (SEQ, BATCH), 0, INPUT_SIZE, jnp.int32)
    hidden0 = model.get_initial_hidden_state(bsize=BATCH)

    output, (h_n, c_n) = model(input_ids, hidden0)
    output = jax.block_until_ready(output)
    h_n = jax.block_until_ready(h_n)
    c_n = jax.block_until_ready(c_n)

    # Validate against a pure-JAX LSTM reference.
    emb = model.embedding[input_ids]
    ref_out, (ref_h, ref_c) = _lstm_reference(emb, hidden0[0], hidden0[1],
                                              model.w_ih, model.w_hh,
                                              model.b_ih, model.b_hh)
    np.testing.assert_allclose(np.asarray(output), np.asarray(ref_out), rtol=1e-5, atol=1e-5)
    np.testing.assert_allclose(np.asarray(h_n), np.asarray(ref_h), rtol=1e-5, atol=1e-5)
    np.testing.assert_allclose(np.asarray(c_n), np.asarray(ref_c), rtol=1e-5, atol=1e-5)

    assert output.shape == (SEQ, BATCH, HIDDEN)
    assert h_n.shape == (1, BATCH, HIDDEN) and c_n.shape == (1, BATCH, HIDDEN)
    print("KERNEL_OK")
</pallas_src>

<mosaic_0001>
module attributes {stable_mosaic.version = 11 : i64} {
  func.func @_encoder_lstm_kernel(%arg0: i32, %arg1: memref<8x8x128xf32, #tpu.memory_space<vmem>>, %arg2: memref<8x128xf32, #tpu.memory_space<vmem>>, %arg3: memref<8x128xf32, #tpu.memory_space<vmem>>, %arg4: memref<128x512xf32, #tpu.memory_space<vmem>>, %arg5: memref<128x512xf32, #tpu.memory_space<vmem>>, %arg6: memref<1x512xf32, #tpu.memory_space<vmem>>, %arg7: memref<8x8x128xf32, #tpu.memory_space<vmem>>, %arg8: memref<8x128xf32, #tpu.memory_space<vmem>>, %arg9: memref<8x128xf32, #tpu.memory_space<vmem>>, %arg10: memref<8x128xf32, #tpu.memory_space<vmem>>, %arg11: memref<8x128xf32, #tpu.memory_space<vmem>>) attributes {dimension_semantics = [#tpu.dimension_semantics<arbitrary>], iteration_bounds = array<i64: 1>, scalar_prefetch = 0 : i64, scratch_operands = 2 : i64, tpu.core_type = #tpu.core_type<tc>, window_params = [{transform_indices = @transform_0, window_bounds = array<i64: 8, 8, 128>}, {pipeline_mode = #tpu.pipeline_mode<synchronous>, transform_indices = @transform_1, window_bounds = array<i64: 8, 128>}, {pipeline_mode = #tpu.pipeline_mode<synchronous>, transform_indices = @transform_2, window_bounds = array<i64: 8, 128>}, {pipeline_mode = #tpu.pipeline_mode<synchronous>, transform_indices = @transform_3, window_bounds = array<i64: 128, 512>}, {pipeline_mode = #tpu.pipeline_mode<synchronous>, transform_indices = @transform_4, window_bounds = array<i64: 128, 512>}, {pipeline_mode = #tpu.pipeline_mode<synchronous>, transform_indices = @transform_5, window_bounds = array<i64: 1, 512>}, {transform_indices = @transform_6, window_bounds = array<i64: 8, 8, 128>}, {pipeline_mode = #tpu.pipeline_mode<synchronous>, transform_indices = @transform_7, window_bounds = array<i64: 8, 128>}, {pipeline_mode = #tpu.pipeline_mode<synchronous>, transform_indices = @transform_8, window_bounds = array<i64: 8, 128>}]} {
    %c0_i32 = arith.constant 0 : i32
    %0 = arith.cmpi eq, %arg0, %c0_i32 : i32
    %1 = arith.extui %0 : i1 to i32
    %c0_i32_0 = arith.constant 0 : i32
    %2 = arith.cmpi ne, %1, %c0_i32_0 : i32
    scf.if %2 {
      %c0_88 = arith.constant 0 : index
      %c0_89 = arith.constant 0 : index
      %309 = vector.load %arg2[%c0_88, %c0_89] : memref<8x128xf32, #tpu.memory_space<vmem>>, vector<8x128xf32>
      %c0_90 = arith.constant 0 : index
      %c0_91 = arith.constant 0 : index
      %310 = vector.load %arg10[%c0_90, %c0_91] : memref<8x128xf32, #tpu.memory_space<vmem>>, vector<8x128xf32>
      tpu.vector_store %arg10[%c0_90, %c0_91], %309 {strides = array<i32>} : memref<8x128xf32, #tpu.memory_space<vmem>>, vector<8x128xf32>,
      %c0_92 = arith.constant 0 : index
      %c0_93 = arith.constant 0 : index
      %311 = vector.load %arg3[%c0_92, %c0_93] : memref<8x128xf32, #tpu.memory_space<vmem>>, vector<8x128xf32>
      %c0_94 = arith.constant 0 : index
      %c0_95 = arith.constant 0 : index
      %312 = vector.load %arg11[%c0_94, %c0_95] : memref<8x128xf32, #tpu.memory_space<vmem>>, vector<8x128xf32>
      tpu.vector_store %arg11[%c0_94, %c0_95], %311 {strides = array<i32>} : memref<8x128xf32, #tpu.memory_space<vmem>>, vector<8x128xf32>,
    } else {
    }
    %c0 = arith.constant 0 : index
    %c0_1 = arith.constant 0 : index
    %3 = vector.load %arg4[%c0, %c0_1] : memref<128x512xf32, #tpu.memory_space<vmem>>, vector<128x512xf32>
    %c0_2 = arith.constant 0 : index
    %c0_3 = arith.constant 0 : index
    %4 = vector.load %arg5[%c0_2, %c0_3] : memref<128x512xf32, #tpu.memory_space<vmem>>, vector<128x512xf32>
    %c0_4 = arith.constant 0 : index
    %c0_5 = arith.constant 0 : index
    %5 = vector.load %arg6[%c0_4, %c0_5] : memref<1x512xf32, #tpu.memory_space<vmem>>, vector<1x512xf32>
    %c0_6 = arith.constant 0 : index
    %c0_7 = arith.constant 0 : index
    %6 = vector.load %arg10[%c0_6, %c0_7] : memref<8x128xf32, #tpu.memory_space<vmem>>, vector<8x128xf32>
    %c0_8 = arith.constant 0 : index
    %c0_9 = arith.constant 0 : index
    %7 = vector.load %arg11[%c0_8, %c0_9] : memref<8x128xf32, #tpu.memory_space<vmem>>, vector<8x128xf32>
    %c0_i32_10 = arith.constant 0 : i32
    %8 = arith.index_cast %c0_i32_10 : i32 to index
    %c0_11 = arith.constant 0 : index
    %c0_12 = arith.constant 0 : index
    %9 = vector.load %arg1[%8, %c0_11, %c0_12] : memref<8x8x128xf32, #tpu.memory_space<vmem>>, vector<1x8x128xf32>
    %10 = vector.shape_cast %9 : vector<1x8x128xf32> to vector<8x128xf32>
    %cst = arith.constant dense<0.000000e+00> : vector<8x512xf32>
    %11 = tpu.matmul %10, %3, %cst {dimension_numbers = #tpu.dot_dimension_numbers<[1], [0], [0], [1], [0, 0, 1, 1], [], []>} : vector<8x128xf32>, vector<128x512xf32>, vector<8x512xf32> -> vector<8x512xf32>
    %cst_13 = arith.constant dense<0.000000e+00> : vector<8x512xf32>
    %12 = tpu.matmul %6, %4, %cst_13 {dimension_numbers = #tpu.dot_dimension_numbers<[1], [0], [0], [1], [0, 0, 1, 1], [], []>} : vector<8x128xf32>, vector<128x512xf32>, vector<8x512xf32> -> vector<8x512xf32>
    %13 = arith.addf %11, %12 : vector<8x512xf32>
    %14 = vector.broadcast %5 : vector<1x512xf32> to vector<8x512xf32>
    %15 = arith.addf %13, %14 : vector<8x512xf32>
    %16 = vector.extract_strided_slice %15 {offsets = [0, 0], sizes = [8, 128], strides = [1, 1]} : vector<8x512xf32> to vector<8x128xf32>
    %17 = arith.negf %16 : vector<8x128xf32>
    %18 = math.exp %17 : vector<8x128xf32>
    %cst_14 = arith.constant 1.000000e+00 : f32
    %19 = vector.broadcast %cst_14 : f32 to vector<8x128xf32>
    %20 = arith.addf %19, %18 : vector<8x128xf32>
    %21 = arith.divf %19, %20 : vector<8x128xf32>
    %22 = vector.extract_strided_slice %15 {offsets = [0, 128], sizes = [8, 128], strides = [1, 1]} : vector<8x512xf32> to vector<8x128xf32>
    %23 = arith.negf %22 : vector<8x128xf32>
    %24 = math.exp %23 : vector<8x128xf32>
    %cst_15 = arith.constant 1.000000e+00 : f32
    %25 = vector.broadcast %cst_15 : f32 to vector<8x128xf32>
    %26 = arith.addf %25, %24 : vector<8x128xf32>
    %27 = arith.divf %25, %26 : vector<8x128xf32>
    %28 = vector.extract_strided_slice %15 {offsets = [0, 256], sizes = [8, 128], strides = [1, 1]} : vector<8x512xf32> to vector<8x128xf32>
    %29 = math.tanh %28 : vector<8x128xf32>
    %30 = vector.extract_strided_slice %15 {offsets = [0, 384], sizes = [8, 128], strides = [1, 1]} : vector<8x512xf32> to vector<8x128xf32>
    %31 = arith.negf %30 : vector<8x128xf32>
    %32 = math.exp %31 : vector<8x128xf32>
    %cst_16 = arith.constant 1.000000e+00 : f32
    %33 = vector.broadcast %cst_16 : f32 to vector<8x128xf32>
    %34 = arith.addf %33, %32 : vector<8x128xf32>
    %35 = arith.divf %33, %34 : vector<8x128xf32>
    %36 = arith.mulf %27, %7 : vector<8x128xf32>
    %37 = arith.mulf %21, %29 : vector<8x128xf32>
    %38 = arith.addf %36, %37 : vector<8x128xf32>
    %39 = math.tanh %38 : vector<8x128xf32>
    %40 = arith.mulf %35, %39 : vector<8x128xf32>
    %41 = arith.index_cast %c0_i32_10 : i32 to index
    %c0_17 = arith.constant 0 : index
    %c0_18 = arith.constant 0 : index
    %42 = vector.load %arg7[%41, %c0_17, %c0_18] : memref<8x8x128xf32, #tpu.memory_space<vmem>>, vector<1x8x128xf32>
    %43 = vector.shape_cast %42 : vector<1x8x128xf32> to vector<8x128xf32>
    %44 = vector.shape_cast %40 : vector<8x128xf32> to vector<1x8x128xf32>
    tpu.vector_store %arg7[%41, %c0_17, %c0_18], %44 {strides = array<i32>} : memref<8x8x128xf32, #tpu.memory_space<vmem>>, vector<1x8x128xf32>,
    %c1_i32 = arith.constant 1 : i32
    %45 = arith.index_cast %c1_i32 : i32 to index
    %c0_19 = arith.constant 0 : index
    %c0_20 = arith.constant 0 : index
    %46 = vector.load %arg1[%45, %c0_19, %c0_20] : memref<8x8x128xf32, #tpu.memory_space<vmem>>, vector<1x8x128xf32>
    %47 = vector.shape_cast %46 : vector<1x8x128xf32> to vector<8x128xf32>
    %cst_21 = arith.constant dense<0.000000e+00> : vector<8x512xf32>
    %48 = tpu.matmul %47, %3, %cst_21 {dimension_numbers = #tpu.dot_dimension_numbers<[1], [0], [0], [1], [0, 0, 1, 1], [], []>} : vector<8x128xf32>, vector<128x512xf32>, vector<8x512xf32> -> vector<8x512xf32>
    %cst_22 = arith.constant dense<0.000000e+00> : vector<8x512xf32>
    %49 = tpu.matmul %40, %4, %cst_22 {dimension_numbers = #tpu.dot_dimension_numbers<[1], [0], [0], [1], [0, 0, 1, 1], [], []>} : vector<8x128xf32>, vector<128x512xf32>, vector<8x512xf32> -> vector<8x512xf32>
    %50 = arith.addf %48, %49 : vector<8x512xf32>
    %51 = vector.broadcast %5 : vector<1x512xf32> to vector<8x512xf32>
    %52 = arith.addf %50, %51 : vector<8x512xf32>
    %53 = vector.extract_strided_slice %52 {offsets = [0, 0], sizes = [8, 128], strides = [1, 1]} : vector<8x512xf32> to vector<8x128xf32>
    %54 = arith.negf %53 : vector<8x128xf32>
    %55 = math.exp %54 : vector<8x128xf32>
    %cst_23 = arith.constant 1.000000e+00 : f32
    %56 = vector.broadcast %cst_23 : f32 to vector<8x128xf32>
    %57 = arith.addf %56, %55 : vector<8x128xf32>
    %58 = arith.divf %56, %57 : vector<8x128xf32>
    %59 = vector.extract_strided_slice %52 {offsets = [0, 128], sizes = [8, 128], strides = [1, 1]} : vector<8x512xf32> to vector<8x128xf32>
    %60 = arith.negf %59 : vector<8x128xf32>
    %61 = math.exp %60 : vector<8x128xf32>
    %cst_24 = arith.constant 1.000000e+00 : f32
    %62 = vector.broadcast %cst_24 : f32 to vector<8x128xf32>
    %63 = arith.addf %62, %61 : vector<8x128xf32>
    %64 = arith.divf %62, %63 : vector<8x128xf32>
    %65 = vector.extract_strided_slice %52 {offsets = [0, 256], sizes = [8, 128], strides = [1, 1]} : vector<8x512xf32> to vector<8x128xf32>
    %66 = math.tanh %65 : vector<8x128xf32>
    %67 = vector.extract_strided_slice %52 {offsets = [0, 384], sizes = [8, 128], strides = [1, 1]} : vector<8x512xf32> to vector<8x128xf32>
    %68 = arith.negf %67 : vector<8x128xf32>
    %69 = math.exp %68 : vector<8x128xf32>
    %cst_25 = arith.constant 1.000000e+00 : f32
    %70 = vector.broadcast %cst_25 : f32 to vector<8x128xf32>
    %71 = arith.addf %70, %69 : vector<8x128xf32>
    %72 = arith.divf %70, %71 : vector<8x128xf32>
    %73 = arith.mulf %64, %38 : vector<8x128xf32>
    %74 = arith.mulf %58, %66 : vector<8x128xf32>
    %75 = arith.addf %73, %74 : vector<8x128xf32>
    %76 = math.tanh %75 : vector<8x128xf32>
    %77 = arith.mulf %72, %76 : vector<8x128xf32>
    %78 = arith.index_cast %c1_i32 : i32 to index
    %c0_26 = arith.constant 0 : index
    %c0_27 = arith.constant 0 : index
    %79 = vector.load %arg7[%78, %c0_26, %c0_27] : memref<8x8x128xf32, #tpu.memory_space<vmem>>, vector<1x8x128xf32>
    %80 = vector.shape_cast %79 : vector<1x8x128xf32> to vector<8x128xf32>
    %81 = vector.shape_cast %77 : vector<8x128xf32> to vector<1x8x128xf32>
    tpu.vector_store %arg7[%78, %c0_26, %c0_27], %81 {strides = array<i32>} : memref<8x8x128xf32, #tpu.memory_space<vmem>>, vector<1x8x128xf32>,
    %c2_i32 = arith.constant 2 : i32
    %82 = arith.index_cast %c2_i32 : i32 to index
    %c0_28 = arith.constant 0 : index
    %c0_29 = arith.constant 0 : index
    %83 = vector.load %arg1[%82, %c0_28, %c0_29] : memref<8x8x128xf32, #tpu.memory_space<vmem>>, vector<1x8x128xf32>
    %84 = vector.shape_cast %83 : vector<1x8x128xf32> to vector<8x128xf32>
    %cst_30 = arith.constant dense<0.000000e+00> : vector<8x512xf32>
    %85 = tpu.matmul %84, %3, %cst_30 {dimension_numbers = #tpu.dot_dimension_numbers<[1], [0], [0], [1], [0, 0, 1, 1], [], []>} : vector<8x128xf32>, vector<128x512xf32>, vector<8x512xf32> -> vector<8x512xf32>
    %cst_31 = arith.constant dense<0.000000e+00> : vector<8x512xf32>
    %86 = tpu.matmul %77, %4, %cst_31 {dimension_numbers = #tpu.dot_dimension_numbers<[1], [0], [0], [1], [0, 0, 1, 1], [], []>} : vector<8x128xf32>, vector<128x512xf32>, vector<8x512xf32> -> vector<8x512xf32>
    %87 = arith.addf %85, %86 : vector<8x512xf32>
    %88 = vector.broadcast %5 : vector<1x512xf32> to vector<8x512xf32>
    %89 = arith.addf %87, %88 : vector<8x512xf32>
    %90 = vector.extract_strided_slice %89 {offsets = [0, 0], sizes = [8, 128], strides = [1, 1]} : vector<8x512xf32> to vector<8x128xf32>
    %91 = arith.negf %90 : vector<8x128xf32>
    %92 = math.exp %91 : vector<8x128xf32>
    %cst_32 = arith.constant 1.000000e+00 : f32
    %93 = vector.broadcast %cst_32 : f32 to vector<8x128xf32>
    %94 = arith.addf %93, %92 : vector<8x128xf32>
    %95 = arith.divf %93, %94 : vector<8x128xf32>
    %96 = vector.extract_strided_slice %89 {offsets = [0, 128], sizes = [8, 128], strides = [1, 1]} : vector<8x512xf32> to vector<8x128xf32>
    %97 = arith.negf %96 : vector<8x128xf32>
    %98 = math.exp %97 : vector<8x128xf32>
    %cst_33 = arith.constant 1.000000e+00 : f32
    %99 = vector.broadcast %cst_33 : f32 to vector<8x128xf32>
    %100 = arith.addf %99, %98 : vector<8x128xf32>
    %101 = arith.divf %99, %100 : vector<8x128xf32>
    %102 = vector.extract_strided_slice %89 {offsets = [0, 256], sizes = [8, 128], strides = [1, 1]} : vector<8x512xf32> to vector<8x128xf32>
    %103 = math.tanh %102 : vector<8x128xf32>
    %104 = vector.extract_strided_slice %89 {offsets = [0, 384], sizes = [8, 128], strides = [1, 1]} : vector<8x512xf32> to vector<8x128xf32>
    %105 = arith.negf %104 : vector<8x128xf32>
    %106 = math.exp %105 : vector<8x128xf32>
    %cst_34 = arith.constant 1.000000e+00 : f32
    %107 = vector.broadcast %cst_34 : f32 to vector<8x128xf32>
    %108 = arith.addf %107, %106 : vector<8x128xf32>
    %109 = arith.divf %107, %108 : vector<8x128xf32>
    %110 = arith.mulf %101, %75 : vector<8x128xf32>
    %111 = arith.mulf %95, %103 : vector<8x128xf32>
    %112 = arith.addf %110, %111 : vector<8x128xf32>
    %113 = math.tanh %112 : vector<8x128xf32>
    %114 = arith.mulf %109, %113 : vector<8x128xf32>
    %115 = arith.index_cast %c2_i32 : i32 to index
    %c0_35 = arith.constant 0 : index
    %c0_36 = arith.constant 0 : index
    %116 = vector.load %arg7[%115, %c0_35, %c0_36] : memref<8x8x128xf32, #tpu.memory_space<vmem>>, vector<1x8x128xf32>
    %117 = vector.shape_cast %116 : vector<1x8x128xf32> to vector<8x128xf32>
    %118 = vector.shape_cast %114 : vector<8x128xf32> to vector<1x8x128xf32>
    tpu.vector_store %arg7[%115, %c0_35, %c0_36], %118 {strides = array<i32>} : memref<8x8x128xf32, #tpu.memory_space<vmem>>, vector<1x8x128xf32>,
    %c3_i32 = arith.constant 3 : i32
    %119 = arith.index_cast %c3_i32 : i32 to index
    %c0_37 = arith.constant 0 : index
    %c0_38 = arith.constant 0 : index
    %120 = vector.load %arg1[%119, %c0_37, %c0_38] : memref<8x8x128xf32, #tpu.memory_space<vmem>>, vector<1x8x128xf32>
    %121 = vector.shape_cast %120 : vector<1x8x128xf32> to vector<8x128xf32>
    %cst_39 = arith.constant dense<0.000000e+00> : vector<8x512xf32>
    %122 = tpu.matmul %121, %3, %cst_39 {dimension_numbers = #tpu.dot_dimension_numbers<[1], [0], [0], [1], [0, 0, 1, 1], [], []>} : vector<8x128xf32>, vector<128x512xf32>, vector<8x512xf32> -> vector<8x512xf32>
    %cst_40 = arith.constant dense<0.000000e+00> : vector<8x512xf32>
    %123 = tpu.matmul %114, %4, %cst_40 {dimension_numbers = #tpu.dot_dimension_numbers<[1], [0], [0], [1], [0, 0, 1, 1], [], []>} : vector<8x128xf32>, vector<128x512xf32>, vector<8x512xf32> -> vector<8x512xf32>
    %124 = arith.addf %122, %123 : vector<8x512xf32>
    %125 = vector.broadcast %5 : vector<1x512xf32> to vector<8x512xf32>
    %126 = arith.addf %124, %125 : vector<8x512xf32>
    %127 = vector.extract_strided_slice %126 {offsets = [0, 0], sizes = [8, 128], strides = [1, 1]} : vector<8x512xf32> to vector<8x128xf32>
    %128 = arith.negf %127 : vector<8x128xf32>
    %129 = math.exp %128 : vector<8x128xf32>
    %cst_41 = arith.constant 1.000000e+00 : f32
    %130 = vector.broadcast %cst_41 : f32 to vector<8x128xf32>
    %131 = arith.addf %130, %129 : vector<8x128xf32>
    %132 = arith.divf %130, %131 : vector<8x128xf32>
    %133 = vector.extract_strided_slice %126 {offsets = [0, 128], sizes = [8, 128], strides = [1, 1]} : vector<8x512xf32> to vector<8x128xf32>
    %134 = arith.negf %133 : vector<8x128xf32>
    %135 = math.exp %134 : vector<8x128xf32>
    %cst_42 = arith.constant 1.000000e+00 : f32
    %136 = vector.broadcast %cst_42 : f32 to vector<8x128xf32>
    %137 = arith.addf %136, %135 : vector<8x128xf32>
    %138 = arith.divf %136, %137 : vector<8x128xf32>
    %139 = vector.extract_strided_slice %126 {offsets = [0, 256], sizes = [8, 128], strides = [1, 1]} : vector<8x512xf32> to vector<8x128xf32>
    %140 = math.tanh %139 : vector<8x128xf32>
    %141 = vector.extract_strided_slice %126 {offsets = [0, 384], sizes = [8, 128], strides = [1, 1]} : vector<8x512xf32> to vector<8x128xf32>
    %142 = arith.negf %141 : vector<8x128xf32>
    %143 = math.exp %142 : vector<8x128xf32>
    %cst_43 = arith.constant 1.000000e+00 : f32
    %144 = vector.broadcast %cst_43 : f32 to vector<8x128xf32>
    %145 = arith.addf %144, %143 : vector<8x128xf32>
    %146 = arith.divf %144, %145 : vector<8x128xf32>
    %147 = arith.mulf %138, %112 : vector<8x128xf32>
    %148 = arith.mulf %132, %140 : vector<8x128xf32>
    %149 = arith.addf %147, %148 : vector<8x128xf32>
    %150 = math.tanh %149 : vector<8x128xf32>
    %151 = arith.mulf %146, %150 : vector<8x128xf32>
    %152 = arith.index_cast %c3_i32 : i32 to index
    %c0_44 = arith.constant 0 : index
    %c0_45 = arith.constant 0 : index
    %153 = vector.load %arg7[%152, %c0_44, %c0_45] : memref<8x8x128xf32, #tpu.memory_space<vmem>>, vector<1x8x128xf32>
    %154 = vector.shape_cast %153 : vector<1x8x128xf32> to vector<8x128xf32>
    %155 = vector.shape_cast %151 : vector<8x128xf32> to vector<1x8x128xf32>
    tpu.vector_store %arg7[%152, %c0_44, %c0_45], %155 {strides = array<i32>} : memref<8x8x128xf32, #tpu.memory_space<vmem>>, vector<1x8x128xf32>,
    %c4_i32 = arith.constant 4 : i32
    %156 = arith.index_cast %c4_i32 : i32 to index
    %c0_46 = arith.constant 0 : index
    %c0_47 = arith.constant 0 : index
    %157 = vector.load %arg1[%156, %c0_46, %c0_47] : memref<8x8x128xf32, #tpu.memory_space<vmem>>, vector<1x8x128xf32>
    %158 = vector.shape_cast %157 : vector<1x8x128xf32> to vector<8x128xf32>
    %cst_48 = arith.constant dense<0.000000e+00> : vector<8x512xf32>
    %159 = tpu.matmul %158, %3, %cst_48 {dimension_numbers = #tpu.dot_dimension_numbers<[1], [0], [0], [1], [0, 0, 1, 1], [], []>} : vector<8x128xf32>, vector<128x512xf32>, vector<8x512xf32> -> vector<8x512xf32>
    %cst_49 = arith.constant dense<0.000000e+00> : vector<8x512xf32>
    %160 = tpu.matmul %151, %4, %cst_49 {dimension_numbers = #tpu.dot_dimension_numbers<[1], [0], [0], [1], [0, 0, 1, 1], [], []>} : vector<8x128xf32>, vector<128x512xf32>, vector<8x512xf32> -> vector<8x512xf32>
    %161 = arith.addf %159, %160 : vector<8x512xf32>
    %162 = vector.broadcast %5 : vector<1x512xf32> to vector<8x512xf32>
    %163 = arith.addf %161, %162 : vector<8x512xf32>
    %164 = vector.extract_strided_slice %163 {offsets = [0, 0], sizes = [8, 128], strides = [1, 1]} : vector<8x512xf32> to vector<8x128xf32>
    %165 = arith.negf %164 : vector<8x128xf32>
    %166 = math.exp %165 : vector<8x128xf32>
    %cst_50 = arith.constant 1.000000e+00 : f32
    %167 = vector.broadcast %cst_50 : f32 to vector<8x128xf32>
    %168 = arith.addf %167, %166 : vector<8x128xf32>
    %169 = arith.divf %167, %168 : vector<8x128xf32>
    %170 = vector.extract_strided_slice %163 {offsets = [0, 128], sizes = [8, 128], strides = [1, 1]} : vector<8x512xf32> to vector<8x128xf32>
    %171 = arith.negf %170 : vector<8x128xf32>
    %172 = math.exp %171 : vector<8x128xf32>
    %cst_51 = arith.constant 1.000000e+00 : f32
    %173 = vector.broadcast %cst_51 : f32 to vector<8x128xf32>
    %174 = arith.addf %173, %172 : vector<8x128xf32>
    %175 = arith.divf %173, %174 : vector<8x128xf32>
    %176 = vector.extract_strided_slice %163 {offsets = [0, 256], sizes = [8, 128], strides = [1, 1]} : vector<8x512xf32> to vector<8x128xf32>
    %177 = math.tanh %176 : vector<8x128xf32>
    %178 = vector.extract_strided_slice %163 {offsets = [0, 384], sizes = [8, 128], strides = [1, 1]} : vector<8x512xf32> to vector<8x128xf32>
    %179 = arith.negf %178 : vector<8x128xf32>
    %180 = math.exp %179 : vector<8x128xf32>
    %cst_52 = arith.constant 1.000000e+00 : f32
    %181 = vector.broadcast %cst_52 : f32 to vector<8x128xf32>
    %182 = arith.addf %181, %180 : vector<8x128xf32>
    %183 = arith.divf %181, %182 : vector<8x128xf32>
    %184 = arith.mulf %175, %149 : vector<8x128xf32>
    %185 = arith.mulf %169, %177 : vector<8x128xf32>
    %186 = arith.addf %184, %185 : vector<8x128xf32>
    %187 = math.tanh %186 : vector<8x128xf32>
    %188 = arith.mulf %183, %187 : vector<8x128xf32>
    %189 = arith.index_cast %c4_i32 : i32 to index
    %c0_53 = arith.constant 0 : index
    %c0_54 = arith.constant 0 : index
    %190 = vector.load %arg7[%189, %c0_53, %c0_54] : memref<8x8x128xf32, #tpu.memory_space<vmem>>, vector<1x8x128xf32>
    %191 = vector.shape_cast %190 : vector<1x8x128xf32> to vector<8x128xf32>
    %192 = vector.shape_cast %188 : vector<8x128xf32> to vector<1x8x128xf32>
    tpu.vector_store %arg7[%189, %c0_53, %c0_54], %192 {strides = array<i32>} : memref<8x8x128xf32, #tpu.memory_space<vmem>>, vector<1x8x128xf32>,
    %c5_i32 = arith.constant 5 : i32
    %193 = arith.index_cast %c5_i32 : i32 to index
    %c0_55 = arith.constant 0 : index
    %c0_56 = arith.constant 0 : index
    %194 = vector.load %arg1[%193, %c0_55, %c0_56] : memref<8x8x128xf32, #tpu.memory_space<vmem>>, vector<1x8x128xf32>
    %195 = vector.shape_cast %194 : vector<1x8x128xf32> to vector<8x128xf32>
    %cst_57 = arith.constant dense<0.000000e+00> : vector<8x512xf32>
    %196 = tpu.matmul %195, %3, %cst_57 {dimension_numbers = #tpu.dot_dimension_numbers<[1], [0], [0], [1], [0, 0, 1, 1], [], []>} : vector<8x128xf32>, vector<128x512xf32>, vector<8x512xf32> -> vector<8x512xf32>
    %cst_58 = arith.constant dense<0.000000e+00> : vector<8x512xf32>
    %197 = tpu.matmul %188, %4, %cst_58 {dimension_numbers = #tpu.dot_dimension_numbers<[1], [0], [0], [1], [0, 0, 1, 1], [], []>} : vector<8x128xf32>, vector<128x512xf32>, vector<8x512xf32> -> vector<8x512xf32>
    %198 = arith.addf %196, %197 : vector<8x512xf32>
    %199 = vector.broadcast %5 : vector<1x512xf32> to vector<8x512xf32>
    %200 = arith.addf %198, %199 : vector<8x512xf32>
    %201 = vector.extract_strided_slice %200 {offsets = [0, 0], sizes = [8, 128], strides = [1, 1]} : vector<8x512xf32> to vector<8x128xf32>
    %202 = arith.negf %201 : vector<8x128xf32>
    %203 = math.exp %202 : vector<8x128xf32>
    %cst_59 = arith.constant 1.000000e+00 : f32
    %204 = vector.broadcast %cst_59 : f32 to vector<8x128xf32>
    %205 = arith.addf %204, %203 : vector<8x128xf32>
    %206 = arith.divf %204, %205 : vector<8x128xf32>
    %207 = vector.extract_strided_slice %200 {offsets = [0, 128], sizes = [8, 128], strides = [1, 1]} : vector<8x512xf32> to vector<8x128xf32>
    %208 = arith.negf %207 : vector<8x128xf32>
    %209 = math.exp %208 : vector<8x128xf32>
    %cst_60 = arith.constant 1.000000e+00 : f32
    %210 = vector.broadcast %cst_60 : f32 to vector<8x128xf32>
    %211 = arith.addf %210, %209 : vector<8x128xf32>
    %212 = arith.divf %210, %211 : vector<8x128xf32>
    %213 = vector.extract_strided_slice %200 {offsets = [0, 256], sizes = [8, 128], strides = [1, 1]} : vector<8x512xf32> to vector<8x128xf32>
    %214 = math.tanh %213 : vector<8x128xf32>
    %215 = vector.extract_strided_slice %200 {offsets = [0, 384], sizes = [8, 128], strides = [1, 1]} : vector<8x512xf32> to vector<8x128xf32>
    %216 = arith.negf %215 : vector<8x128xf32>
    %217 = math.exp %216 : vector<8x128xf32>
    %cst_61 = arith.constant 1.000000e+00 : f32
    %218 = vector.broadcast %cst_61 : f32 to vector<8x128xf32>
    %219 = arith.addf %218, %217 : vector<8x128xf32>
    %220 = arith.divf %218, %219 : vector<8x128xf32>
    %221 = arith.mulf %212, %186 : vector<8x128xf32>
    %222 = arith.mulf %206, %214 : vector<8x128xf32>
    %223 = arith.addf %221, %222 : vector<8x128xf32>
    %224 = math.tanh %223 : vector<8x128xf32>
    %225 = arith.mulf %220, %224 : vector<8x128xf32>
    %226 = arith.index_cast %c5_i32 : i32 to index
    %c0_62 = arith.constant 0 : index
    %c0_63 = arith.constant 0 : index
    %227 = vector.load %arg7[%226, %c0_62, %c0_63] : memref<8x8x128xf32, #tpu.memory_space<vmem>>, vector<1x8x128xf32>
    %228 = vector.shape_cast %227 : vector<1x8x128xf32> to vector<8x128xf32>
    %229 = vector.shape_cast %225 : vector<8x128xf32> to vector<1x8x128xf32>
    tpu.vector_store %arg7[%226, %c0_62, %c0_63], %229 {strides = array<i32>} : memref<8x8x128xf32, #tpu.memory_space<vmem>>, vector<1x8x128xf32>,
    %c6_i32 = arith.constant 6 : i32
    %230 = arith.index_cast %c6_i32 : i32 to index
    %c0_64 = arith.constant 0 : index
    %c0_65 = arith.constant 0 : index
    %231 = vector.load %arg1[%230, %c0_64, %c0_65] : memref<8x8x128xf32, #tpu.memory_space<vmem>>, vector<1x8x128xf32>
    %232 = vector.shape_cast %231 : vector<1x8x128xf32> to vector<8x128xf32>
    %cst_66 = arith.constant dense<0.000000e+00> : vector<8x512xf32>
    %233 = tpu.matmul %232, %3, %cst_66 {dimension_numbers = #tpu.dot_dimension_numbers<[1], [0], [0], [1], [0, 0, 1, 1], [], []>} : vector<8x128xf32>, vector<128x512xf32>, vector<8x512xf32> -> vector<8x512xf32>
    %cst_67 = arith.constant dense<0.000000e+00> : vector<8x512xf32>
    %234 = tpu.matmul %225, %4, %cst_67 {dimension_numbers = #tpu.dot_dimension_numbers<[1], [0], [0], [1], [0, 0, 1, 1], [], []>} : vector<8x128xf32>, vector<128x512xf32>, vector<8x512xf32> -> vector<8x512xf32>
    %235 = arith.addf %233, %234 : vector<8x512xf32>
    %236 = vector.broadcast %5 : vector<1x512xf32> to vector<8x512xf32>
    %237 = arith.addf %235, %236 : vector<8x512xf32>
    %238 = vector.extract_strided_slice %237 {offsets = [0, 0], sizes = [8, 128], strides = [1, 1]} : vector<8x512xf32> to vector<8x128xf32>
    %239 = arith.negf %238 : vector<8x128xf32>
    %240 = math.exp %239 : vector<8x128xf32>
    %cst_68 = arith.constant 1.000000e+00 : f32
    %241 = vector.broadcast %cst_68 : f32 to vector<8x128xf32>
    %242 = arith.addf %241, %240 : vector<8x128xf32>
    %243 = arith.divf %241, %242 : vector<8x128xf32>
    %244 = vector.extract_strided_slice %237 {offsets = [0, 128], sizes = [8, 128], strides = [1, 1]} : vector<8x512xf32> to vector<8x128xf32>
    %245 = arith.negf %244 : vector<8x128xf32>
    %246 = math.exp %245 : vector<8x128xf32>
    %cst_69 = arith.constant 1.000000e+00 : f32
    %247 = vector.broadcast %cst_69 : f32 to vector<8x128xf32>
    %248 = arith.addf %247, %246 : vector<8x128xf32>
    %249 = arith.divf %247, %248 : vector<8x128xf32>
    %250 = vector.extract_strided_slice %237 {offsets = [0, 256], sizes = [8, 128], strides = [1, 1]} : vector<8x512xf32> to vector<8x128xf32>
    %251 = math.tanh %250 : vector<8x128xf32>
    %252 = vector.extract_strided_slice %237 {offsets = [0, 384], sizes = [8, 128], strides = [1, 1]} : vector<8x512xf32> to vector<8x128xf32>
    %253 = arith.negf %252 : vector<8x128xf32>
    %254 = math.exp %253 : vector<8x128xf32>
    %cst_70 = arith.constant 1.000000e+00 : f32
    %255 = vector.broadcast %cst_70 : f32 to vector<8x128xf32>
    %256 = arith.addf %255, %254 : vector<8x128xf32>
    %257 = arith.divf %255, %256 : vector<8x128xf32>
    %258 = arith.mulf %249, %223 : vector<8x128xf32>
    %259 = arith.mulf %243, %251 : vector<8x128xf32>
    %260 = arith.addf %258, %259 : vector<8x128xf32>
    %261 = math.tanh %260 : vector<8x128xf32>
    %262 = arith.mulf %257, %261 : vector<8x128xf32>
    %263 = arith.index_cast %c6_i32 : i32 to index
    %c0_71 = arith.constant 0 : index
    %c0_72 = arith.constant 0 : index
    %264 = vector.load %arg7[%263, %c0_71, %c0_72] : memref<8x8x128xf32, #tpu.memory_space<vmem>>, vector<1x8x128xf32>
    %265 = vector.shape_cast %264 : vector<1x8x128xf32> to vector<8x128xf32>
    %266 = vector.shape_cast %262 : vector<8x128xf32> to vector<1x8x128xf32>
    tpu.vector_store %arg7[%263, %c0_71, %c0_72], %266 {strides = array<i32>} : memref<8x8x128xf32, #tpu.memory_space<vmem>>, vector<1x8x128xf32>,
    %c7_i32 = arith.constant 7 : i32
    %267 = arith.index_cast %c7_i32 : i32 to index
    %c0_73 = arith.constant 0 : index
    %c0_74 = arith.constant 0 : index
    %268 = vector.load %arg1[%267, %c0_73, %c0_74] : memref<8x8x128xf32, #tpu.memory_space<vmem>>, vector<1x8x128xf32>
    %269 = vector.shape_cast %268 : vector<1x8x128xf32> to vector<8x128xf32>
    %cst_75 = arith.constant dense<0.000000e+00> : vector<8x512xf32>
    %270 = tpu.matmul %269, %3, %cst_75 {dimension_numbers = #tpu.dot_dimension_numbers<[1], [0], [0], [1], [0, 0, 1, 1], [], []>} : vector<8x128xf32>, vector<128x512xf32>, vector<8x512xf32> -> vector<8x512xf32>
    %cst_76 = arith.constant dense<0.000000e+00> : vector<8x512xf32>
    %271 = tpu.matmul %262, %4, %cst_76 {dimension_numbers = #tpu.dot_dimension_numbers<[1], [0], [0], [1], [0, 0, 1, 1], [], []>} : vector<8x128xf32>, vector<128x512xf32>, vector<8x512xf32> -> vector<8x512xf32>
    %272 = arith.addf %270, %271 : vector<8x512xf32>
    %273 = vector.broadcast %5 : vector<1x512xf32> to vector<8x512xf32>
    %274 = arith.addf %272, %273 : vector<8x512xf32>
    %275 = vector.extract_strided_slice %274 {offsets = [0, 0], sizes = [8, 128], strides = [1, 1]} : vector<8x512xf32> to vector<8x128xf32>
    %276 = arith.negf %275 : vector<8x128xf32>
    %277 = math.exp %276 : vector<8x128xf32>
    %cst_77 = arith.constant 1.000000e+00 : f32
    %278 = vector.broadcast %cst_77 : f32 to vector<8x128xf32>
    %279 = arith.addf %278, %277 : vector<8x128xf32>
    %280 = arith.divf %278, %279 : vector<8x128xf32>
    %281 = vector.extract_strided_slice %274 {offsets = [0, 128], sizes = [8, 128], strides = [1, 1]} : vector<8x512xf32> to vector<8x128xf32>
    %282 = arith.negf %281 : vector<8x128xf32>
    %283 = math.exp %282 : vector<8x128xf32>
    %cst_78 = arith.constant 1.000000e+00 : f32
    %284 = vector.broadcast %cst_78 : f32 to vector<8x128xf32>
    %285 = arith.addf %284, %283 : vector<8x128xf32>
    %286 = arith.divf %284, %285 : vector<8x128xf32>
    %287 = vector.extract_strided_slice %274 {offsets = [0, 256], sizes = [8, 128], strides = [1, 1]} : vector<8x512xf32> to vector<8x128xf32>
    %288 = math.tanh %287 : vector<8x128xf32>
    %289 = vector.extract_strided_slice %274 {offsets = [0, 384], sizes = [8, 128], strides = [1, 1]} : vector<8x512xf32> to vector<8x128xf32>
    %290 = arith.negf %289 : vector<8x128xf32>
    %291 = math.exp %290 : vector<8x128xf32>
    %cst_79 = arith.constant 1.000000e+00 : f32
    %292 = vector.broadcast %cst_79 : f32 to vector<8x128xf32>
    %293 = arith.addf %292, %291 : vector<8x128xf32>
    %294 = arith.divf %292, %293 : vector<8x128xf32>
    %295 = arith.mulf %286, %260 : vector<8x128xf32>
    %296 = arith.mulf %280, %288 : vector<8x128xf32>
    %297 = arith.addf %295, %296 : vector<8x128xf32>
    %298 = math.tanh %297 : vector<8x128xf32>
    %299 = arith.mulf %294, %298 : vector<8x128xf32>
    %300 = arith.index_cast %c7_i32 : i32 to index
    %c0_80 = arith.constant 0 : index
    %c0_81 = arith.constant 0 : index
    %301 = vector.load %arg7[%300, %c0_80, %c0_81] : memref<8x8x128xf32, #tpu.memory_space<vmem>>, vector<1x8x128xf32>
    %302 = vector.shape_cast %301 : vector<1x8x128xf32> to vector<8x128xf32>
    %303 = vector.shape_cast %299 : vector<8x128xf32> to vector<1x8x128xf32>
    tpu.vector_store %arg7[%300, %c0_80, %c0_81], %303 {strides = array<i32>} : memref<8x8x128xf32, #tpu.memory_space<vmem>>, vector<1x8x128xf32>,
    %c8_i32 = arith.constant 8 : i32
    %c0_82 = arith.constant 0 : index
    %c0_83 = arith.constant 0 : index
    %304 = vector.load %arg10[%c0_82, %c0_83] : memref<8x128xf32, #tpu.memory_space<vmem>>, vector<8x128xf32>
    tpu.vector_store %arg10[%c0_82, %c0_83], %299 {strides = array<i32>} : memref<8x128xf32, #tpu.memory_space<vmem>>, vector<8x128xf32>,
    %c0_84 = arith.constant 0 : index
    %c0_85 = arith.constant 0 : index
    %305 = vector.load %arg11[%c0_84, %c0_85] : memref<8x128xf32, #tpu.memory_space<vmem>>, vector<8x128xf32>
    tpu.vector_store %arg11[%c0_84, %c0_85], %297 {strides = array<i32>} : memref<8x128xf32, #tpu.memory_space<vmem>>, vector<8x128xf32>,
    %c0_i32_86 = arith.constant 0 : i32
    %306 = arith.cmpi eq, %arg0, %c0_i32_86 : i32
    %307 = arith.extui %306 : i1 to i32
    %c0_i32_87 = arith.constant 0 : i32
    %308 = arith.cmpi ne, %307, %c0_i32_87 : i32
    scf.if %308 {
      %c0_88 = arith.constant 0 : index
      %c0_89 = arith.constant 0 : index
      %309 = vector.load %arg8[%c0_88, %c0_89] : memref<8x128xf32, #tpu.memory_space<vmem>>, vector<8x128xf32>
      tpu.vector_store %arg8[%c0_88, %c0_89], %299 {strides = array<i32>} : memref<8x128xf32, #tpu.memory_space<vmem>>, vector<8x128xf32>,
      %c0_90 = arith.constant 0 : index
      %c0_91 = arith.constant 0 : index
      %310 = vector.load %arg9[%c0_90, %c0_91] : memref<8x128xf32, #tpu.memory_space<vmem>>, vector<8x128xf32>
      tpu.vector_store %arg9[%c0_90, %c0_91], %297 {strides = array<i32>} : memref<8x128xf32, #tpu.memory_space<vmem>>, vector<8x128xf32>,
    } else {
    }
    return
  }
  func.func @transform_0(%arg0: i32) -> (i32, i32, i32) {
    %c0_i32 = arith.constant 0 : i32
    %c0_i32_0 = arith.constant 0 : i32
    %c0_i32_1 = arith.constant 0 : i32
    return %arg0, %c0_i32, %c0_i32_0 : i32, i32, i32
  }
  func.func @transform_1(%arg0: i32) -> (i32, i32) {
    %c0_i32 = arith.constant 0 : i32
    %c0_i32_0 = arith.constant 0 : i32
    %c0_i32_1 = arith.constant 0 : i32
    return %c0_i32, %c0_i32_0 : i32, i32
  }
  func.func @transform_2(%arg0: i32) -> (i32, i32) {
    %c0_i32 = arith.constant 0 : i32
    %c0_i32_0 = arith.constant 0 : i32
    %c0_i32_1 = arith.constant 0 : i32
    return %c0_i32, %c0_i32_0 : i32, i32
  }
  func.func @transform_3(%arg0: i32) -> (i32, i32) {
    %c0_i32 = arith.constant 0 : i32
    %c0_i32_0 = arith.constant 0 : i32
    %c0_i32_1 = arith.constant 0 : i32
    return %c0_i32, %c0_i32_0 : i32, i32
  }
  func.func @transform_4(%arg0: i32) -> (i32, i32) {
    %c0_i32 = arith.constant 0 : i32
    %c0_i32_0 = arith.constant 0 : i32
    %c0_i32_1 = arith.constant 0 : i32
    return %c0_i32, %c0_i32_0 : i32, i32
  }
  func.func @transform_5(%arg0: i32) -> (i32, i32) {
    %c0_i32 = arith.constant 0 : i32
    %c0_i32_0 = arith.constant 0 : i32
    %c0_i32_1 = arith.constant 0 : i32
    return %c0_i32, %c0_i32_0 : i32, i32
  }
  func.func @transform_6(%arg0: i32) -> (i32, i32, i32) {
    %c0_i32 = arith.constant 0 : i32
    %c0_i32_0 = arith.constant 0 : i32
    %c0_i32_1 = arith.constant 0 : i32
    return %arg0, %c0_i32, %c0_i32_0 : i32, i32, i32
  }
  func.func @transform_7(%arg0: i32) -> (i32, i32) {
    %c0_i32 = arith.constant 0 : i32
    %c0_i32_0 = arith.constant 0 : i32
    %c0_i32_1 = arith.constant 0 : i32
    return %c0_i32, %c0_i32_0 : i32, i32
  }
  func.func @transform_8(%arg0: i32) -> (i32, i32) {
    %c0_i32 = arith.constant 0 : i32
    %c0_i32_0 = arith.constant 0 : i32
    %c0_i32_1 = arith.constant 0 : i32
    return %c0_i32, %c0_i32_0 : i32, i32
  }
}

</mosaic_0001>

<bundles_post_ra>
// kernel: lstm_pallas.1
= control target key start
LH: loop header
LB: loop body
LE: loop exit
PB: predicated region body
PF: predicated region fallthrough
CT: control target
= control target key end

     0   :  { %s5581_s4 = inlined_call_operand.vmem [shape: f32[128,512], index: 4, kind: input, shape index: {}]   ;;  %s5582_s3 = inlined_call_operand.vmem [shape: f32[128,512], index: 3, kind: input, shape index: {}]   ;;  %s5583_s1 = inlined_call_operand.vmem [shape: f32[8,128], index: 1, kind: input, shape index: {}]   ;;  %s5584_s0 = inlined_call_operand.vmem [shape: f32[8,8,128], index: 0, kind: input, shape index: {}]   ;;  %s5585_s5 = inlined_call_operand.vmem [shape: f32[1,512], index: 5, kind: input, shape index: {}]   ;;  %s5586_s2 = inlined_call_operand.vmem [shape: f32[8,128], index: 2, kind: input, shape index: {}]   ;;  %s5587_s6 = inlined_call_operand.vmem [shape: f32[8,8,128], index: 6, kind: output, shape index: {0}]   ;;  %s5588_s8 = inlined_call_operand.vmem [shape: f32[8,128], index: 8, kind: output, shape index: {2}]   ;;  %s5589_s7 = inlined_call_operand.vmem [shape: f32[8,128], index: 7, kind: output, shape index: {1}]  }
   0x1   :  { %v2509_v0 = vld [vmem:[%s5581_s4 + $0x1e0] sm:$0xff]  ;;  %v2514_v1 = vld [vmem:[%s5581_s4 + $0x1e8] sm:$0xff]  ;;  %v2519_v2 = vld [vmem:[%s5581_s4 + $0x1f8] sm:$0xff] }
   0x2   :  { %166 = vmatpush.msra.mxu0 %v2509_v0  ;;  %186 = vmatpush.msra.mxu1 %v2514_v1  ;;  %v2526_v3 = vld [vmem:[%s5581_s4 + $0x1c0] sm:$0xff]  ;;  %v2531_v4 = vld [vmem:[%s5581_s4 + $0x1c8] sm:$0xff]  ;;  %v2536_v5 = vld [vmem:[%s5581_s4 + $0x1d8] sm:$0xff] }
   0x3   :  { %226 = vmatpush.msra.mxu3 %v2519_v2  ;;  %v2542_v6 = vld [vmem:[%s5581_s4 + $0x1a0] sm:$0xff]  ;;  %v2547_v7 = vld [vmem:[%s5581_s4 + $0x1a8] sm:$0xff]  ;;  %v2554_v8 = vld [vmem:[%s5581_s4 + $0x1b8] sm:$0xff] }
   0x4   :  { %167 = vmatpush.msra.mxu0 %v2526_v3  ;;  %187 = vmatpush.msra.mxu1 %v2531_v4  ;;  %v2560_v9 = vld [vmem:[%s5581_s4 + $0x180] sm:$0xff]  ;;  %v2565_v10 = vld [vmem:[%s5581_s4 + $0x188] sm:$0xff]  ;;  %v2570_v11 = vld [vmem:[%s5581_s4 + $0x1f0] sm:$0xff] }
   0x5   :  { %227 = vmatpush.msra.mxu3 %v2536_v5  ;;  %v2577_v12 = vld [vmem:[%s5581_s4 + $0x198] sm:$0xff]  ;;  %v2582_v13 = vld [vmem:[%s5581_s4 + $0x1d0] sm:$0xff]  ;;  %206 = vmatpush.msra.mxu2 %v2570_v11  ;;  %v2589_v14 = vld [vmem:[%s5581_s4 + $0x160] sm:$0xff] }
   0x6   :  { %168 = vmatpush.msra.mxu0 %v2542_v6  ;;  %188 = vmatpush.msra.mxu1 %v2547_v7  ;;  %v2594_v15 = vld [vmem:[%s5581_s4 + $0x168] sm:$0xff]  ;;  %v2601_v16 = vld [vmem:[%s5581_s4 + $0x178] sm:$0xff]  ;;  %v2606_v17 = vld [vmem:[%s5581_s4 + $0x1b0] sm:$0xff] }
   0x7   :  { %228 = vmatpush.msra.mxu3 %v2554_v8  ;;  %207 = vmatpush.msra.mxu2 %v2582_v13  ;;  %v2613_v18 = vld [vmem:[%s5581_s4 + $0x140] sm:$0xff]  ;;  %v2618_v19 = vld [vmem:[%s5581_s4 + $0x148] sm:$0xff]  ;;  %v2625_v20 = vld [vmem:[%s5581_s4 + $0x158] sm:$0xff] }
   0x8   :  { %169 = vmatpush.msra.mxu0 %v2560_v9  ;;  %189 = vmatpush.msra.mxu1 %v2565_v10  ;;  %v2630_v21 = vld [vmem:[%s5581_s4 + $0x190] sm:$0xff]  ;;  %v2637_v22 = vld [vmem:[%s5581_s4 + $0x120] sm:$0xff]  ;;  %v2642_v23 = vld [vmem:[%s5581_s4 + $0x128] sm:$0xff] }
   0x9   :  { %229 = vmatpush.msra.mxu3 %v2577_v12  ;;  %208 = vmatpush.msra.mxu2 %v2606_v17  ;;  %v2649_v24 = vld [vmem:[%s5581_s4 + $0x138] sm:$0xff]  ;;  %v2654_v25 = vld [vmem:[%s5581_s4 + $0x170] sm:$0xff]  ;;  %v2661_v26 = vld [vmem:[%s5581_s4 + $0x100] sm:$0xff] }
   0xa   :  { %170 = vmatpush.msra.mxu0 %v2589_v14  ;;  %190 = vmatpush.msra.mxu1 %v2594_v15  ;;  %v2666_v27 = vld [vmem:[%s5581_s4 + $0x108] sm:$0xff]  ;;  %v2673_v28 = vld [vmem:[%s5581_s4 + $0x118] sm:$0xff]  ;;  %v2678_v29 = vld [vmem:[%s5581_s4 + $0x150] sm:$0xff] }
   0xb   :  { %230 = vmatpush.msra.mxu3 %v2601_v16  ;;  %209 = vmatpush.msra.mxu2 %v2630_v21  ;;  %v2685_v30 = vld [vmem:[%s5581_s4 + $0xe0] sm:$0xff]  ;;  %v2690_v31 = vld [vmem:[%s5581_s4 + $0xe8] sm:$0xff]  ;;  %v2697_v32 = vld [vmem:[%s5581_s4 + $0xf8] sm:$0xff] }
   0xc   :  { %171 = vmatpush.msra.mxu0 %v2613_v18  ;;  %191 = vmatpush.msra.mxu1 %v2618_v19  ;;  %v2702_v33 = vld [vmem:[%s5581_s4 + $0x130] sm:$0xff]  ;;  %v2709_v34 = vld [vmem:[%s5581_s4 + $0xc0] sm:$0xff]  ;;  %v2714_v35 = vld [vmem:[%s5581_s4 + $0xc8] sm:$0xff] }
   0xd   :  { %231 = vmatpush.msra.mxu3 %v2625_v20  ;;  %210 = vmatpush.msra.mxu2 %v2654_v25  ;;  %v2721_v36 = vld [vmem:[%s5581_s4 + $0xd8] sm:$0xff]  ;;  %v2726_v37 = vld [vmem:[%s5581_s4 + $0x110] sm:$0xff]  ;;  %v2733_v38 = vld [vmem:[%s5581_s4 + $0xa0] sm:$0xff] }
   0xe   :  { %172 = vmatpush.msra.mxu0 %v2637_v22  ;;  %192 = vmatpush.msra.mxu1 %v2642_v23  ;;  %6030 = vst [vmem:[#allocation4_spill] sm:$0xff] %v2721_v36  ;;  %v2738_v39 = vld [vmem:[%s5581_s4 + $0xa8] sm:$0xff]  ;;  %v2745_v40 = vld [vmem:[%s5581_s4 + $0xb8] sm:$0xff]  ;;  %v2750_v41 = vld [vmem:[%s5581_s4 + $0xf0] sm:$0xff] }
   0xf   :  { %232 = vmatpush.msra.mxu3 %v2649_v24  ;;  %211 = vmatpush.msra.mxu2 %v2678_v29  ;;  %6031 = vst [vmem:[#allocation5_spill] sm:$0xff] %v2733_v38  ;;  %v2757_v42 = vld [vmem:[%s5581_s4 + $0x80] sm:$0xff]  ;;  %v2762_v43 = vld [vmem:[%s5581_s4 + $0x88] sm:$0xff]  ;;  %v2769_v44 = vld [vmem:[%s5581_s4 + $0x98] sm:$0xff] }
  0x10   :  { %173 = vmatpush.msra.mxu0 %v2661_v26  ;;  %193 = vmatpush.msra.mxu1 %v2666_v27  ;;  %6032 = vst [vmem:[#allocation6_spill] sm:$0xff] %v2738_v39  ;;  %v2774_v45 = vld [vmem:[%s5581_s4 + $0xd0] sm:$0xff]  ;;  %v2781_v46 = vld [vmem:[%s5581_s4 + $0x60] sm:$0xff]  ;;  %v2786_v47 = vld [vmem:[%s5581_s4 + $0x68] sm:$0xff] }
  0x11   :  { %233 = vmatpush.msra.mxu3 %v2673_v28  ;;  %212 = vmatpush.msra.mxu2 %v2702_v33  ;;  %6033 = vst [vmem:[#allocation7_spill] sm:$0xff] %v2745_v40  ;;  %v2793_v48 = vld [vmem:[%s5581_s4 + $0x78] sm:$0xff]  ;;  %v2798_v49 = vld [vmem:[%s5581_s4 + $0xb0] sm:$0xff]  ;;  %v2805_v50 = vld [vmem:[%s5581_s4 + $0x40] sm:$0xff] }
  0x12   :  { %174 = vmatpush.msra.mxu0 %v2685_v30  ;;  %194 = vmatpush.msra.mxu1 %v2690_v31  ;;  %6034 = vst [vmem:[#allocation8_spill] sm:$0xff] %v2757_v42  ;;  %v2810_v51 = vld [vmem:[%s5581_s4 + $0x48] sm:$0xff]  ;;  %v2817_v52 = vld [vmem:[%s5581_s4 + $0x58] sm:$0xff]  ;;  %v2822_v53 = vld [vmem:[%s5581_s4 + $0x90] sm:$0xff] }
  0x13   :  { %234 = vmatpush.msra.mxu3 %v2697_v32  ;;  %213 = vmatpush.msra.mxu2 %v2726_v37  ;;  %6035 = vst [vmem:[#allocation9_spill] sm:$0xff] %v2762_v43  ;;  %v2829_v54 = vld [vmem:[%s5581_s4 + $0x20] sm:$0xff]  ;;  %v2834_v55 = vld [vmem:[%s5581_s4 + $0x28] sm:$0xff]  ;;  %v2841_v56 = vld [vmem:[%s5581_s4 + $0x38] sm:$0xff] }
  0x14   :  { %175 = vmatpush.msra.mxu0 %v2709_v34  ;;  %195 = vmatpush.msra.mxu1 %v2714_v35  ;;  %6036 = vst [vmem:[#allocation10_spill] sm:$0xff] %v2769_v44  ;;  %v2846_v57 = vld [vmem:[%s5581_s4 + $0x70] sm:$0xff]  ;;  %v2853_v58 = vld [vmem:[%s5581_s4] sm:$0xff]  ;;  %v2858_v59 = vld [vmem:[%s5581_s4 + $0x8] sm:$0xff] }
  0x15   :  { %235 = vmatpush.msra.mxu3 %v2721_v36  ;;  %214 = vmatpush.msra.mxu2 %v2750_v41  ;;  %6037 = vst [vmem:[#allocation11_spill] sm:$0xff] %v2781_v46  ;;  %v2865_v60 = vld [vmem:[%s5581_s4 + $0x18] sm:$0xff]  ;;  %v2870_v61 = vld [vmem:[%s5582_s3 + $0x1e0] sm:$0xff]  ;;  %v2877_v62 = vld [vmem:[%s5582_s3 + $0x1e8] sm:$0xff] }
  0x16   :  { %176 = vmatpush.msra.mxu0 %v2733_v38  ;;  %196 = vmatpush.msra.mxu1 %v2738_v39  ;;  %6038 = vst [vmem:[#allocation12_spill] sm:$0xff] %v2786_v47  ;;  %v2882_v63 = vld [vmem:[%s5582_s3 + $0x1f8] sm:$0xff] }
  0x17   :  { %236 = vmatpush.msra.mxu3 %v2745_v40  ;;  %6039 = vst [vmem:[#allocation13_spill] sm:$0xff] %v2793_v48  ;;  %215 = vmatpush.msra.mxu2 %v2774_v45 }
  0x18   :  { %177 = vmatpush.msra.mxu0 %v2757_v42  ;;  %197 = vmatpush.msra.mxu1 %v2762_v43  ;;  %6040 = vst [vmem:[#allocation14_spill] sm:$0xff] %v2798_v49 }
  0x19   :  { %237 = vmatpush.msra.mxu3 %v2769_v44  ;;  %6041 = vst [vmem:[#allocation15_spill] sm:$0xff] %v2805_v50  ;;  %216 = vmatpush.msra.mxu2 %v2798_v49 }
  0x1a   :  { %6042 = vst [vmem:[#allocation16_spill] sm:$0xff] %v2810_v51  ;;  %178 = vmatpush.msra.mxu0 %v2781_v46  ;;  %198 = vmatpush.msra.mxu1 %v2786_v47 }
  0x1b   :  { %6043 = vst [vmem:[#allocation17_spill] sm:$0xff] %v2817_v52  ;;  %238 = vmatpush.msra.mxu3 %v2793_v48  ;;  %217 = vmatpush.msra.mxu2 %v2822_v53 }
  0x1c   :  { %6044 = vst [vmem:[#allocation18_spill] sm:$0xff] %v2822_v53  ;;  %179 = vmatpush.msra.mxu0 %v2805_v50  ;;  %199 = vmatpush.msra.mxu1 %v2810_v51 }
  0x1d   :  { %6045 = vst [vmem:[#allocation19_spill] sm:$0xff] %v2829_v54  ;;  %239 = vmatpush.msra.mxu3 %v2817_v52  ;;  %218 = vmatpush.msra.mxu2 %v2846_v57 }
  0x1e   :  { %6046 = vst [vmem:[#allocation20_spill] sm:$0xff] %v2834_v55  ;;  %180 = vmatpush.msra.mxu0 %v2829_v54  ;;  %200 = vmatpush.msra.mxu1 %v2834_v55  ;;  %v3198_v55 = vld [vmem:[%s5582_s3 + $0x58] sm:$0xff] }
  0x1f   :  { %6047 = vst [vmem:[#allocation21_spill] sm:$0xff] %v2841_v56  ;;  %240 = vmatpush.msra.mxu3 %v2841_v56  ;;  %v2889_v56 = vld [vmem:[%s5581_s4 + $0x50] sm:$0xff] }
  0x20   :  { %6048 = vst [vmem:[#allocation22_spill] sm:$0xff] %v2846_v57  ;;  %181 = vmatpush.msra.mxu0 %v2853_v58  ;;  %201 = vmatpush.msra.mxu1 %v2858_v59  ;;  %v2894_v57 = vld [vmem:[%s5582_s3 + $0x1c0] sm:$0xff] }
  0x21   :  { %6049 = vst [vmem:[#allocation23_spill] sm:$0xff] %v2853_v58  ;;  %241 = vmatpush.msra.mxu3 %v2865_v60  ;;  %v2901_v58 = vld [vmem:[%s5582_s3 + $0x1c8] sm:$0xff]  ;;  %219 = vmatpush.msra.mxu2 %v2889_v56 }
  0x22   :  { %6050 = vst [vmem:[#allocation24_spill] sm:$0xff] %v2858_v59  ;;  %246 = vmatpush.msrb.mxu0 %v2870_v61  ;;  %v2906_v59 = vld [vmem:[%s5582_s3 + $0x1d8] sm:$0xff]  ;;  %266 = vmatpush.msrb.mxu1 %v2877_v62 }
  0x23   :  { %6051 = vst [vmem:[#allocation25_spill] sm:$0xff] %v2865_v60  ;;  %306 = vmatpush.msrb.mxu3 %v2882_v63  ;;  %v2913_v60 = vld [vmem:[%s5581_s4 + $0x30] sm:$0xff] }
  0x24   :  { %6052 = vst [vmem:[#allocation26_spill] sm:$0xff] %v2870_v61  ;;  %v2918_v61 = vld [vmem:[%s5582_s3 + $0x1a0] sm:$0xff]  ;;  %247 = vmatpush.msrb.mxu0 %v2894_v57  ;;  %267 = vmatpush.msrb.mxu1 %v2901_v58 }
  0x25   :  { %6053 = vst [vmem:[#allocation27_spill] sm:$0xff] %v2877_v62  ;;  %v2925_v62 = vld [vmem:[%s5582_s3 + $0x1a8] sm:$0xff]  ;;  %307 = vmatpush.msrb.mxu3 %v2906_v59  ;;  %220 = vmatpush.msra.mxu2 %v2913_v60 }
  0x26   :  { %6054 = vst [vmem:[#allocation28_spill] sm:$0xff] %v2882_v63  ;;  %v2930_v63 = vld [vmem:[%s5582_s3 + $0x1b8] sm:$0xff]  ;;  %248 = vmatpush.msrb.mxu0 %v2918_v61  ;;  %268 = vmatpush.msrb.mxu1 %v2925_v62 }
  0x27   :  { %6055 = vst [vmem:[#allocation29_spill] sm:$0xff] %v2889_v56  ;;  %v2937_v56 = vld [vmem:[%s5581_s4 + $0x10] sm:$0xff]  ;;  %308 = vmatpush.msrb.mxu3 %v2930_v63 }
  0x28   :  { %6056 = vst [vmem:[#allocation30_spill] sm:$0xff] %v2894_v57  ;;  %v2942_v57 = vld [vmem:[%s5582_s3 + $0x180] sm:$0xff]  ;;  %221 = vmatpush.msra.mxu2 %v2937_v56 }
  0x29   :  { %6057 = vst [vmem:[#allocation31_spill] sm:$0xff] %v2901_v58  ;;  %v2949_v58 = vld [vmem:[%s5582_s3 + $0x188] sm:$0xff]  ;;  %249 = vmatpush.msrb.mxu0 %v2942_v57 }
  0x2a   :  { %6058 = vst [vmem:[#allocation32_spill] sm:$0xff] %v2906_v59  ;;  %v2954_v59 = vld [vmem:[%s5582_s3 + $0x198] sm:$0xff]  ;;  %269 = vmatpush.msrb.mxu1 %v2949_v58 }
  0x2b   :  { %6059 = vst [vmem:[#allocation33_spill] sm:$0xff] %v2913_v60  ;;  %v2961_v60 = vld [vmem:[%s5582_s3 + $0x1f0] sm:$0xff]  ;;  %309 = vmatpush.msrb.mxu3 %v2954_v59 }
  0x2c   :  { %6060 = vst [vmem:[#allocation34_spill] sm:$0xff] %v2918_v61  ;;  %v2966_v61 = vld [vmem:[%s5582_s3 + $0x160] sm:$0xff]  ;;  %286 = vmatpush.msrb.mxu2 %v2961_v60 }
  0x2d   :  { %6061 = vst [vmem:[#allocation35_spill] sm:$0xff] %v2925_v62  ;;  %v2973_v62 = vld [vmem:[%s5582_s3 + $0x168] sm:$0xff]  ;;  %250 = vmatpush.msrb.mxu0 %v2966_v61 }
  0x2e   :  { %6062 = vst [vmem:[#allocation36_spill] sm:$0xff] %v2930_v63  ;;  %v2978_v63 = vld [vmem:[%s5582_s3 + $0x178] sm:$0xff]  ;;  %270 = vmatpush.msrb.mxu1 %v2973_v62 }
  0x2f   :  { %6063 = vst [vmem:[#allocation37_spill] sm:$0xff] %v2937_v56  ;;  %v2985_v56 = vld [vmem:[%s5582_s3 + $0x1d0] sm:$0xff]  ;;  %310 = vmatpush.msrb.mxu3 %v2978_v63 }
  0x30   :  { %6064 = vst [vmem:[#allocation38_spill] sm:$0xff] %v2942_v57  ;;  %v2990_v57 = vld [vmem:[%s5582_s3 + $0x140] sm:$0xff]  ;;  %287 = vmatpush.msrb.mxu2 %v2985_v56 }
  0x31   :  { %6065 = vst [vmem:[#allocation39_spill] sm:$0xff] %v2949_v58  ;;  %v2997_v58 = vld [vmem:[%s5582_s3 + $0x148] sm:$0xff]  ;;  %251 = vmatpush.msrb.mxu0 %v2990_v57 }
  0x32   :  { %6066 = vst [vmem:[#allocation40_spill] sm:$0xff] %v2954_v59  ;;  %v3002_v59 = vld [vmem:[%s5582_s3 + $0x158] sm:$0xff]  ;;  %271 = vmatpush.msrb.mxu1 %v2997_v58 }
  0x33   :  { %6067 = vst [vmem:[#allocation41_spill] sm:$0xff] %v2961_v60  ;;  %v3009_v60 = vld [vmem:[%s5582_s3 + $0x1b0] sm:$0xff]  ;;  %311 = vmatpush.msrb.mxu3 %v3002_v59 }
  0x34   :  { %6068 = vst [vmem:[#allocation42_spill] sm:$0xff] %v2966_v61  ;;  %v3014_v61 = vld [vmem:[%s5582_s3 + $0x120] sm:$0xff]  ;;  %288 = vmatpush.msrb.mxu2 %v3009_v60 }
  0x35   :  { %6069 = vst [vmem:[#allocation43_spill] sm:$0xff] %v2973_v62  ;;  %v3021_v62 = vld [vmem:[%s5582_s3 + $0x128] sm:$0xff]  ;;  %252 = vmatpush.msrb.mxu0 %v3014_v61 }
  0x36   :  { %6070 = vst [vmem:[#allocation44_spill] sm:$0xff] %v2978_v63  ;;  %v3026_v63 = vld [vmem:[%s5582_s3 + $0x138] sm:$0xff]  ;;  %272 = vmatpush.msrb.mxu1 %v3021_v62 }
  0x37   :  { %6071 = vst [vmem:[#allocation45_spill] sm:$0xff] %v2985_v56  ;;  %v3033_v56 = vld [vmem:[%s5582_s3 + $0x190] sm:$0xff]  ;;  %312 = vmatpush.msrb.mxu3 %v3026_v63 }
  0x38   :  { %6072 = vst [vmem:[#allocation46_spill] sm:$0xff] %v2990_v57  ;;  %v3038_v57 = vld [vmem:[%s5582_s3 + $0x100] sm:$0xff]  ;;  %289 = vmatpush.msrb.mxu2 %v3033_v56 }
  0x39   :  { %6073 = vst [vmem:[#allocation47_spill] sm:$0xff] %v2997_v58  ;;  %v3045_v58 = vld [vmem:[%s5582_s3 + $0x108] sm:$0xff]  ;;  %253 = vmatpush.msrb.mxu0 %v3038_v57 }
  0x3a   :  { %6074 = vst [vmem:[#allocation48_spill] sm:$0xff] %v3002_v59  ;;  %v3050_v59 = vld [vmem:[%s5582_s3 + $0x118] sm:$0xff]  ;;  %273 = vmatpush.msrb.mxu1 %v3045_v58 }
  0x3b   :  { %6075 = vst [vmem:[#allocation49_spill] sm:$0xff] %v3009_v60  ;;  %v3057_v60 = vld [vmem:[%s5582_s3 + $0x170] sm:$0xff]  ;;  %313 = vmatpush.msrb.mxu3 %v3050_v59 }
  0x3c   :  { %6076 = vst [vmem:[#allocation50_spill] sm:$0xff] %v3014_v61  ;;  %v3062_v61 = vld [vmem:[%s5582_s3 + $0xe0] sm:$0xff]  ;;  %290 = vmatpush.msrb.mxu2 %v3057_v60 }
  0x3d   :  { %6077 = vst [vmem:[#allocation51_spill] sm:$0xff] %v3021_v62  ;;  %v3069_v62 = vld [vmem:[%s5582_s3 + $0xe8] sm:$0xff]  ;;  %254 = vmatpush.msrb.mxu0 %v3062_v61 }
  0x3e   :  { %6078 = vst [vmem:[#allocation52_spill] sm:$0xff] %v3026_v63  ;;  %v3074_v63 = vld [vmem:[%s5582_s3 + $0xf8] sm:$0xff]  ;;  %274 = vmatpush.msrb.mxu1 %v3069_v62 }
  0x3f   :  { %6079 = vst [vmem:[#allocation53_spill] sm:$0xff] %v3033_v56  ;;  %v3081_v56 = vld [vmem:[%s5582_s3 + $0x150] sm:$0xff]  ;;  %314 = vmatpush.msrb.mxu3 %v3074_v63 }
  0x40   :  { %6080 = vst [vmem:[#allocation54_spill] sm:$0xff] %v3038_v57  ;;  %v3086_v57 = vld [vmem:[%s5582_s3 + $0xc0] sm:$0xff]  ;;  %291 = vmatpush.msrb.mxu2 %v3081_v56 }
  0x41   :  { %6081 = vst [vmem:[#allocation55_spill] sm:$0xff] %v3045_v58  ;;  %v3093_v58 = vld [vmem:[%s5582_s3 + $0xc8] sm:$0xff]  ;;  %255 = vmatpush.msrb.mxu0 %v3086_v57 }
  0x42   :  { %6082 = vst [vmem:[#allocation56_spill] sm:$0xff] %v3050_v59  ;;  %v3098_v59 = vld [vmem:[%s5582_s3 + $0xd8] sm:$0xff]  ;;  %275 = vmatpush.msrb.mxu1 %v3093_v58 }
  0x43   :  { %6083 = vst [vmem:[#allocation57_spill] sm:$0xff] %v3057_v60  ;;  %v3105_v60 = vld [vmem:[%s5582_s3 + $0x130] sm:$0xff]  ;;  %315 = vmatpush.msrb.mxu3 %v3098_v59 }
  0x44   :  { %6084 = vst [vmem:[#allocation58_spill] sm:$0xff] %v3062_v61  ;;  %v3110_v61 = vld [vmem:[%s5582_s3 + $0xa0] sm:$0xff]  ;;  %292 = vmatpush.msrb.mxu2 %v3105_v60 }
  0x45   :  { %6085 = vst [vmem:[#allocation59_spill] sm:$0xff] %v3069_v62  ;;  %v3117_v62 = vld [vmem:[%s5582_s3 + $0xa8] sm:$0xff]  ;;  %256 = vmatpush.msrb.mxu0 %v3110_v61 }
  0x46   :  { %6086 = vst [vmem:[#allocation60_spill] sm:$0xff] %v3074_v63  ;;  %v3122_v63 = vld [vmem:[%s5582_s3 + $0xb8] sm:$0xff]  ;;  %276 = vmatpush.msrb.mxu1 %v3117_v62 }
  0x47   :  { %6087 = vst [vmem:[#allocation61_spill] sm:$0xff] %v3081_v56  ;;  %v3129_v56 = vld [vmem:[%s5582_s3 + $0x110] sm:$0xff]  ;;  %316 = vmatpush.msrb.mxu3 %v3122_v63 }
  0x48   :  { %6088 = vst [vmem:[#allocation62_spill] sm:$0xff] %v3086_v57  ;;  %v3134_v57 = vld [vmem:[%s5582_s3 + $0x80] sm:$0xff]  ;;  %293 = vmatpush.msrb.mxu2 %v3129_v56 }
  0x49   :  { %6089 = vst [vmem:[#allocation63_spill] sm:$0xff] %v3093_v58  ;;  %v3141_v58 = vld [vmem:[%s5582_s3 + $0x88] sm:$0xff]  ;;  %257 = vmatpush.msrb.mxu0 %v3134_v57 }
  0x4a   :  { %6090 = vst [vmem:[#allocation64_spill] sm:$0xff] %v3098_v59  ;;  %v3146_v59 = vld [vmem:[%s5582_s3 + $0x98] sm:$0xff]  ;;  %277 = vmatpush.msrb.mxu1 %v3141_v58 }
  0x4b   :  { %6091 = vst [vmem:[#allocation65_spill] sm:$0xff] %v3105_v60  ;;  %v30_v60 = vld [vmem:[%s5583_s1] sm:$0xff]  ;;  %317 = vmatpush.msrb.mxu3 %v3146_v59 }
  0x4c   :  { %6092 = vst [vmem:[#allocation66_spill] sm:$0xff] %v3110_v61  ;;  %v3158_v61 = vld [vmem:[%s5582_s3 + $0xf0] sm:$0xff]  ;;  %182 = vmatmul.f32.vlgmr.msra.gmra.mxu0 %v30_v60  ;;  %202 = vmatmul.f32.vlgmr.msra.gmra.mxu1 %v30_v60 }
  0x4d   :  { %6093 = vst [vmem:[#allocation67_spill] sm:$0xff] %v3117_v62  ;;  %v3170_v62 = vld [vmem:[%s5582_s3 + $0x68] sm:$0xff]  ;;  %242 = vmatmul.f32.vlgmr.msra.gmra.mxu3 %v30_v60  ;;  %294 = vmatpush.msrb.mxu2 %v3158_v61 }
  0x4e   :  { %6094 = vst [vmem:[#allocation68_spill] sm:$0xff] %v3122_v63  ;;  %v3165_v63 = vld [vmem:[%s5582_s3 + $0x60] sm:$0xff]  ;;  %278 = vmatpush.msrb.mxu1 %v3170_v62  ;;  %222 = vmatmul.f32.vlgmr.msra.gmra.mxu2 %v30_v60  ;;  %v3270_v60 = vld [vmem:[%s5582_s3 + $0x30] sm:$0xff] }
  0x4f   :  { %6095 = vst [vmem:[#allocation69_spill] sm:$0xff] %v3129_v56  ;;  %v3191_v56 = vld [vmem:[%s5582_s3 + $0x48] sm:$0xff]  ;;  %258 = vmatpush.msrb.mxu0 %v3165_v63 }
  0x50   :  { %6096 = vst [vmem:[#allocation70_spill] sm:$0xff] %v3134_v57  ;;  %v3175_v57 = vld [vmem:[%s5582_s3 + $0x78] sm:$0xff]  ;;  %279 = vmatpush.msrb.mxu1 %v3191_v56 }
  0x51   :  { %6097 = vst [vmem:[#allocation71_spill] sm:$0xff] %v3141_v58  ;;  %v3186_v58 = vld [vmem:[%s5582_s3 + $0x40] sm:$0xff]  ;;  %318 = vmatpush.msrb.mxu3 %v3175_v57 }
  0x52   :  { %6098 = vst [vmem:[#allocation72_spill] sm:$0xff] %v3146_v59  ;;  %v3180_v59 = vld [vmem:[%s5582_s3 + $0xd0] sm:$0xff]  ;;  %259 = vmatpush.msrb.mxu0 %v3186_v58 }
  0x53   :  { %6099 = vst [vmem:[#allocation73_spill] sm:$0xff] %v3158_v61  ;;  %v3203_v61 = vld [vmem:[%s5582_s3 + $0xb0] sm:$0xff]  ;;  %295 = vmatpush.msrb.mxu2 %v3180_v59  ;;  %319 = vmatpush.msrb.mxu3 %v3198_v55 }
  0x54   :  { %6100 = vst [vmem:[#allocation74_spill] sm:$0xff] %v3165_v63  ;;  %v3210_v63 = vld [vmem:[%s5582_s3 + $0x20] sm:$0xff] }
  0x55   :  { %6101 = vst [vmem:[#allocation75_spill] sm:$0xff] %v3170_v62  ;;  %v3215_v62 = vld [vmem:[%s5582_s3 + $0x28] sm:$0xff]  ;;  %296 = vmatpush.msrb.mxu2 %v3203_v61  ;;  %260 = vmatpush.msrb.mxu0 %v3210_v63 }
  0x56   :  { %6102 = vst [vmem:[#allocation76_spill] sm:$0xff] %v3175_v57  ;;  %v3222_v57 = vld [vmem:[%s5582_s3 + $0x38] sm:$0xff]  ;;  %280 = vmatpush.msrb.mxu1 %v3215_v62 }
  0x57   :  { %6103 = vst [vmem:[#allocation77_spill] sm:$0xff] %v3180_v59  ;;  %v3227_v59 = vld [vmem:[%s5582_s3 + $0x90] sm:$0xff]  ;;  %320 = vmatpush.msrb.mxu3 %v3222_v57 }
  0x58   :  { %6104 = vst [vmem:[#allocation78_spill] sm:$0xff] %v3186_v58  ;;  %v3234_v58 = vld [vmem:[%s5582_s3] sm:$0xff]  ;;  %297 = vmatpush.msrb.mxu2 %v3227_v59 }
  0x59   :  { %6105 = vst [vmem:[#allocation79_spill] sm:$0xff] %v3191_v56  ;;  %v3241_v56 = vld [vmem:[%s5582_s3 + $0x8] sm:$0xff]  ;;  %261 = vmatpush.msrb.mxu0 %v3234_v58 }
  0x5a   :  { %6106 = vst [vmem:[#allocation80_spill] sm:$0xff] %v3198_v55  ;;  %v3246_v55 = vld [vmem:[%s5582_s3 + $0x18] sm:$0xff]  ;;  %281 = vmatpush.msrb.mxu1 %v3241_v56 }
  0x5b   :  { %6107 = vst [vmem:[#allocation81_spill] sm:$0xff] %v3203_v61  ;;  %321 = vmatpush.msrb.mxu3 %v3246_v55  ;;  %405 = vmatpush.msra.mxu0 %v2509_v0 }
  0x5c   :  { %6108 = vst [vmem:[#allocation82_spill] sm:$0xff] %v3210_v63  ;;  %v165_v63 = vld [vmem:[%s5584_s0] sm:$0xff]  ;;  %425 = vmatpush.msra.mxu1 %v2514_v1 }
  0x5d   :  { %6109 = vst [vmem:[#allocation83_spill] sm:$0xff] %v3215_v62  ;;  %v3257_v62 = vld [vmem:[%s5582_s3 + $0x70] sm:$0xff]  ;;  %262 = vmatmul.f32.vlgmr.msrb.gmra.mxu0 %v165_v63  ;;  %282 = vmatmul.f32.vlgmr.msrb.gmra.mxu1 %v165_v63 }
  0x5e   :  { %6110 = vst [vmem:[#allocation84_spill] sm:$0xff] %v3222_v57  ;;  %v3264_v57 = vld [vmem:[%s5582_s3 + $0x50] sm:$0xff]  ;;  %298 = vmatpush.msrb.mxu2 %v3257_v62  ;;  %322 = vmatmul.f32.vlgmr.msrb.gmra.mxu3 %v165_v63 }
  0x5f   :  { %6111 = vst [vmem:[#allocation85_spill] sm:$0xff] %v3227_v59  ;;  %465 = vmatpush.msra.mxu3 %v2519_v2  ;;  %406 = vmatpush.msra.mxu0 %v2526_v3 }
  0x60   :  { %6112 = vst [vmem:[#allocation86_spill] sm:$0xff] %v3234_v58  ;;  %299 = vmatpush.msrb.mxu2 %v3264_v57  ;;  %426 = vmatpush.msra.mxu1 %v2531_v4 }
  0x61   :  { %6113 = vst [vmem:[#allocation87_spill] sm:$0xff] %v3241_v56  ;;  %466 = vmatpush.msra.mxu3 %v2536_v5  ;;  %407 = vmatpush.msra.mxu0 %v2542_v6 }
  0x62   :  { %6114 = vst [vmem:[#allocation88_spill] sm:$0xff] %v3246_v55  ;;  %v3279_v55 = vld [vmem:[%s5582_s3 + $0x10] sm:$0xff]  ;;  %300 = vmatpush.msrb.mxu2 %v3270_v60  ;;  %427 = vmatpush.msra.mxu1 %v2547_v7 }
  0x63   :  { %6115 = vst [vmem:[#allocation89_spill] sm:$0xff] %v3257_v62  ;;  %467 = vmatpush.msra.mxu3 %v2554_v8  ;;  %408 = vmatpush.msra.mxu0 %v2560_v9 }
  0x64   :  { %6116 = vst [vmem:[#allocation90_spill] sm:$0xff] %v3264_v57  ;;  %301 = vmatpush.msrb.mxu2 %v3279_v55  ;;  %428 = vmatpush.msra.mxu1 %v2565_v10 }
  0x65   :  { %6117 = vst [vmem:[#allocation91_spill] sm:$0xff] %v3270_v60  ;;  %302 = vmatmul.f32.vlgmr.msrb.gmra.mxu2 %v165_v63  ;;  %468 = vmatpush.msra.mxu3 %v2577_v12  ;;  %v6119_v63 = vld [vmem:[#allocation20_spill] sm:$0xff] }
  0x66   :  { %6118 = vst [vmem:[#allocation92_spill] sm:$0xff] %v3279_v55  ;;  %445 = vmatpush.msra.mxu2 %v2570_v11  ;;  %409 = vmatpush.msra.mxu0 %v2589_v14 }
  0x67   :  { %429 = vmatpush.msra.mxu1 %v2594_v15  ;;  %469 = vmatpush.msra.mxu3 %v2601_v16 }
  0x68   :  { %446 = vmatpush.msra.mxu2 %v2582_v13  ;;  %410 = vmatpush.msra.mxu0 %v2613_v18 }
  0x69   :  { %430 = vmatpush.msra.mxu1 %v2618_v19  ;;  %470 = vmatpush.msra.mxu3 %v2625_v20 }
  0x6a   :  { %447 = vmatpush.msra.mxu2 %v2606_v17  ;;  %411 = vmatpush.msra.mxu0 %v2637_v22 }
  0x6b   :  { %431 = vmatpush.msra.mxu1 %v2642_v23  ;;  %471 = vmatpush.msra.mxu3 %v2649_v24 }
  0x6c   :  { %448 = vmatpush.msra.mxu2 %v2630_v21  ;;  %412 = vmatpush.msra.mxu0 %v2661_v26 }
  0x6d   :  { %432 = vmatpush.msra.mxu1 %v2666_v27  ;;  %472 = vmatpush.msra.mxu3 %v2673_v28 }
  0x6e   :  { %449 = vmatpush.msra.mxu2 %v2654_v25  ;;  %413 = vmatpush.msra.mxu0 %v2685_v30 }
  0x6f   :  { %433 = vmatpush.msra.mxu1 %v2690_v31  ;;  %473 = vmatpush.msra.mxu3 %v2697_v32 }
  0x70   :  { %450 = vmatpush.msra.mxu2 %v2678_v29  ;;  %414 = vmatpush.msra.mxu0 %v2709_v34 }
  0x71   :  { %434 = vmatpush.msra.mxu1 %v2714_v35  ;;  %474 = vmatpush.msra.mxu3 %v2721_v36 }
  0x72   :  { %451 = vmatpush.msra.mxu2 %v2702_v33  ;;  %415 = vmatpush.msra.mxu0 %v2733_v38 }
  0x73   :  { %435 = vmatpush.msra.mxu1 %v2738_v39  ;;  %475 = vmatpush.msra.mxu3 %v2745_v40 }
  0x74   :  { %452 = vmatpush.msra.mxu2 %v2726_v37  ;;  %416 = vmatpush.msra.mxu0 %v2757_v42 }
  0x75   :  { %436 = vmatpush.msra.mxu1 %v2762_v43  ;;  %476 = vmatpush.msra.mxu3 %v2769_v44  ;;  %v6121_v44 = vld [vmem:[#allocation23_spill] sm:$0xff]  ;;  %v6125_v43 = vld [vmem:[#allocation26_spill] sm:$0xff] }
  0x76   :  { %453 = vmatpush.msra.mxu2 %v2750_v41  ;;  %417 = vmatpush.msra.mxu0 %v2781_v46  ;;  %v6120_v46 = vld [vmem:[#allocation21_spill] sm:$0xff] }
  0x77   :  { %437 = vmatpush.msra.mxu1 %v2786_v47  ;;  %477 = vmatpush.msra.mxu3 %v2793_v48  ;;  %v6122_v47 = vld [vmem:[#allocation22_spill] sm:$0xff]  ;;  %v6123_v48 = vld [vmem:[#allocation24_spill] sm:$0xff] }
  0x78   :  { %454 = vmatpush.msra.mxu2 %v2774_v45  ;;  %418 = vmatpush.msra.mxu0 %v2805_v50  ;;  %v6124_v50 = vld [vmem:[#allocation25_spill] sm:$0xff] }
  0x79   :  { %438 = vmatpush.msra.mxu1 %v2810_v51  ;;  %478 = vmatpush.msra.mxu3 %v2817_v52  ;;  %v6126_v51 = vld [vmem:[#allocation29_spill] sm:$0xff]  ;;  %v6127_v52 = vld [vmem:[#allocation27_spill] sm:$0xff] }
  0x7a   :  { %455 = vmatpush.msra.mxu2 %v2798_v49  ;;  %419 = vmatpush.msra.mxu0 %v2829_v54  ;;  %v6128_v54 = vld [vmem:[#allocation28_spill] sm:$0xff] }
  0x7b   :  { %439 = vmatpush.msra.mxu1 %v6119_v63  ;;  %479 = vmatpush.msra.mxu3 %v6120_v46  ;;  %v6130_v63 = vld [vmem:[#allocation33_spill] sm:$0xff]  ;;  %v6131_v46 = vld [vmem:[#allocation31_spill] sm:$0xff] }
  0x7c   :  { %456 = vmatpush.msra.mxu2 %v2822_v53  ;;  %420 = vmatpush.msra.mxu0 %v6121_v44  ;;  %v6129_v53 = vld [vmem:[#allocation30_spill] sm:$0xff]  ;;  %v6132_v44 = vld [vmem:[#allocation32_spill] sm:$0xff] }
  0x7d   :  { %440 = vmatpush.msra.mxu1 %v6123_v48  ;;  %480 = vmatpush.msra.mxu3 %v6124_v50  ;;  %v6134_v48 = vld [vmem:[#allocation37_spill] sm:$0xff]  ;;  %v6135_v50 = vld [vmem:[#allocation35_spill] sm:$0xff] }
  0x7e   :  { %457 = vmatpush.msra.mxu2 %v6122_v47  ;;  %485 = vmatpush.msrb.mxu0 %v6125_v43  ;;  %v6133_v47 = vld [vmem:[#allocation34_spill] sm:$0xff]  ;;  %v6136_v43 = vld [vmem:[#allocation41_spill] sm:$0xff] }
  0x7f   :  { %505 = vmatpush.msrb.mxu1 %v6127_v52  ;;  %545 = vmatpush.msrb.mxu3 %v6128_v54  ;;  %v6138_v52 = vld [vmem:[#allocation38_spill] sm:$0xff]  ;;  %v6139_v54 = vld [vmem:[#allocation39_spill] sm:$0xff] }
  0x80   :  { %458 = vmatpush.msra.mxu2 %v6126_v51  ;;  %486 = vmatpush.msrb.mxu0 %v6129_v53  ;;  %v6137_v51 = vld [vmem:[#allocation36_spill] sm:$0xff]  ;;  %v6140_v53 = vld [vmem:[#allocation45_spill] sm:$0xff] }
  0x81   :  { %506 = vmatpush.msrb.mxu1 %v6131_v46  ;;  %546 = vmatpush.msrb.mxu3 %v6132_v44  ;;  %v6142_v46 = vld [vmem:[#allocation42_spill] sm:$0xff]  ;;  %v6143_v44 = vld [vmem:[#allocation43_spill] sm:$0xff] }
  0x82   :  { %459 = vmatpush.msra.mxu2 %v6130_v63  ;;  %487 = vmatpush.msrb.mxu0 %v6133_v47  ;;  %v6141_v63 = vld [vmem:[#allocation40_spill] sm:$0xff]  ;;  %v6144_v47 = vld [vmem:[#allocation49_spill] sm:$0xff] }
  0x83   :  { %507 = vmatpush.msrb.mxu1 %v6135_v50  ;;  %547 = vmatpush.msrb.mxu3 %v6137_v51  ;;  %v6146_v50 = vld [vmem:[#allocation46_spill] sm:$0xff]  ;;  %v6148_v51 = vld [vmem:[#allocation53_spill] sm:$0xff] }
  0x84   :  { %460 = vmatpush.msra.mxu2 %v6134_v48  ;;  %488 = vmatpush.msrb.mxu0 %v6138_v52  ;;  %v6145_v48 = vld [vmem:[#allocation44_spill] sm:$0xff] }
  0x85   :  { %508 = vmatpush.msrb.mxu1 %v6139_v54  ;;  %548 = vmatpush.msrb.mxu3 %v6141_v63  ;;  %v6149_v52 = vld [vmem:[#allocation48_spill] sm:$0xff]  ;;  %v6150_v54 = vld [vmem:[#allocation50_spill] sm:$0xff]  ;;  %v6152_v63 = vld [vmem:[#allocation57_spill] sm:$0xff] }
  0x86   :  { %525 = vmatpush.msrb.mxu2 %v6136_v43  ;;  %489 = vmatpush.msrb.mxu0 %v6142_v46  ;;  %v6147_v43 = vld [vmem:[#allocation47_spill] sm:$0xff]  ;;  %v6153_v46 = vld [vmem:[#allocation52_spill] sm:$0xff] }
  0x87   :  { %509 = vmatpush.msrb.mxu1 %v6143_v44  ;;  %549 = vmatpush.msrb.mxu3 %v6145_v48  ;;  %v6154_v44 = vld [vmem:[#allocation54_spill] sm:$0xff]  ;;  %v6156_v48 = vld [vmem:[#allocation61_spill] sm:$0xff] }
  0x88   :  { %526 = vmatpush.msrb.mxu2 %v6140_v53  ;;  %490 = vmatpush.msrb.mxu0 %v6146_v50  ;;  %v6151_v53 = vld [vmem:[#allocation51_spill] sm:$0xff]  ;;  %v6157_v50 = vld [vmem:[#allocation56_spill] sm:$0xff] }
  0x89   :  { %510 = vmatpush.msrb.mxu1 %v6147_v43  ;;  %550 = vmatpush.msrb.mxu3 %v6149_v52  ;;  %v6158_v43 = vld [vmem:[#allocation58_spill] sm:$0xff]  ;;  %v6160_v52 = vld [vmem:[#allocation65_spill] sm:$0xff] }
  0x8a   :  { %527 = vmatpush.msrb.mxu2 %v6144_v47  ;;  %491 = vmatpush.msrb.mxu0 %v6150_v54  ;;  %v6155_v47 = vld [vmem:[#allocation55_spill] sm:$0xff]  ;;  %v6161_v54 = vld [vmem:[#allocation60_spill] sm:$0xff] }
  0x8b   :  { %511 = vmatpush.msrb.mxu1 %v6151_v53  ;;  %551 = vmatpush.msrb.mxu3 %v6153_v46  ;;  %v6162_v53 = vld [vmem:[#allocation62_spill] sm:$0xff]  ;;  %v6164_v46 = vld [vmem:[#allocation69_spill] sm:$0xff] }
  0x8c   :  { %528 = vmatpush.msrb.mxu2 %v6148_v51  ;;  %492 = vmatpush.msrb.mxu0 %v6154_v44  ;;  %v6159_v51 = vld [vmem:[#allocation59_spill] sm:$0xff]  ;;  %v6165_v44 = vld [vmem:[#allocation64_spill] sm:$0xff] }
  0x8d   :  { %512 = vmatpush.msrb.mxu1 %v6155_v47  ;;  %552 = vmatpush.msrb.mxu3 %v6157_v50  ;;  %v6166_v47 = vld [vmem:[#allocation66_spill] sm:$0xff]  ;;  %v6168_v50 = vld [vmem:[#allocation73_spill] sm:$0xff] }
  0x8e   :  { %529 = vmatpush.msrb.mxu2 %v6152_v63  ;;  %493 = vmatpush.msrb.mxu0 %v6158_v43  ;;  %v6163_v63 = vld [vmem:[#allocation63_spill] sm:$0xff]  ;;  %v6169_v43 = vld [vmem:[#allocation68_spill] sm:$0xff] }
  0x8f   :  { %513 = vmatpush.msrb.mxu1 %v6159_v51  ;;  %553 = vmatpush.msrb.mxu3 %v6161_v54  ;;  %v6170_v51 = vld [vmem:[#allocation70_spill] sm:$0xff]  ;;  %v6172_v54 = vld [vmem:[#allocation77_spill] sm:$0xff] }
  0x90   :  { %530 = vmatpush.msrb.mxu2 %v6156_v48  ;;  %494 = vmatpush.msrb.mxu0 %v6162_v53  ;;  %v6167_v48 = vld [vmem:[#allocation67_spill] sm:$0xff]  ;;  %v6173_v53 = vld [vmem:[#allocation72_spill] sm:$0xff] }
  0x91   :  { %514 = vmatpush.msrb.mxu1 %v6163_v63  ;;  %554 = vmatpush.msrb.mxu3 %v6165_v44  ;;  %v6174_v63 = vld [vmem:[#allocation74_spill] sm:$0xff]  ;;  %v6178_v44 = vld [vmem:[#allocation79_spill] sm:$0xff] }
  0x92   :  { %531 = vmatpush.msrb.mxu2 %v6160_v52  ;;  %495 = vmatpush.msrb.mxu0 %v6166_v47  ;;  %v6171_v52 = vld [vmem:[#allocation71_spill] sm:$0xff]  ;;  %v6176_v47 = vld [vmem:[#allocation76_spill] sm:$0xff] }
  0x93   :  { %515 = vmatpush.msrb.mxu1 %v6167_v48  ;;  %555 = vmatpush.msrb.mxu3 %v6169_v43  ;;  %v6177_v48 = vld [vmem:[#allocation78_spill] sm:$0xff]  ;;  %v6181_v43 = vld [vmem:[#allocation83_spill] sm:$0xff] }
  0x94   :  { %532 = vmatpush.msrb.mxu2 %v6164_v46  ;;  %496 = vmatpush.msrb.mxu0 %v6170_v51  ;;  %v6175_v46 = vld [vmem:[#allocation75_spill] sm:$0xff]  ;;  %v6179_v51 = vld [vmem:[#allocation80_spill] sm:$0xff] }
  0x95   :  { %516 = vmatpush.msrb.mxu1 %v6171_v52  ;;  %556 = vmatpush.msrb.mxu3 %v6173_v53  ;;  %v6180_v52 = vld [vmem:[#allocation82_spill] sm:$0xff] }
  0x96   :  { %533 = vmatpush.msrb.mxu2 %v6168_v50  ;;  %497 = vmatpush.msrb.mxu0 %v6174_v63  ;;  %v6182_v63 = vld [vmem:[#allocation84_spill] sm:$0xff] }
  0x97   :  { %517 = vmatpush.msrb.mxu1 %v6175_v46  ;;  %557 = vmatpush.msrb.mxu3 %v6176_v47 }
  0x98   :  { %534 = vmatpush.msrb.mxu2 %v6172_v54  ;;  %498 = vmatpush.msrb.mxu0 %v6177_v48  ;;  %v6183_v48 = vld [vmem:[#allocation88_spill] sm:$0xff] }
  0x99   :  { %518 = vmatpush.msrb.mxu1 %v6178_v44  ;;  %558 = vmatpush.msrb.mxu3 %v6179_v51 }
  0x9a   :  { %535 = vmatpush.msrb.mxu2 %v3203_v61  ;;  %499 = vmatpush.msrb.mxu0 %v6180_v52 }
  0x9b   :  { %519 = vmatpush.msrb.mxu1 %v6181_v43  ;;  %559 = vmatpush.msrb.mxu3 %v6182_v63  ;;  %v162_v43 = vld [vmem:[%s5585_s5] sm:$0xf] }
  0x9c   :  { %536 = vmatpush.msrb.mxu2 %v3227_v59  ;;  %500 = vmatpush.msrb.mxu0 %v3234_v58  ;;  %v3411_v63 = vperm.slane %v162_v43, 0  ;;  %v3413_v58 = vperm.slane %v162_v43, 1  ;;  %v3417_v59 = vperm.slane %v162_v43, 3 }
  0x9d   :  { %520 = vmatpush.msrb.mxu1 %v3241_v56  ;;  %560 = vmatpush.msrb.mxu3 %v6183_v48 }
  0x9e   :  { %537 = vmatpush.msrb.mxu2 %v3257_v62  ;;  %6184 = vst [vmem:[#allocation93_spill] sm:$0xff] %v3411_v63 }
  0x9f   :  { %6185 = vst [vmem:[#allocation94_spill] sm:$0xff] %v3413_v58 }
  0xa0   :  { %538 = vmatpush.msrb.mxu2 %v3264_v57  ;;  %6186 = vst [vmem:[#allocation95_spill] sm:$0xff] %v3417_v59 }
  0xa2   :  { %539 = vmatpush.msrb.mxu2 %v3270_v60 }
  0xa4   :  { %540 = vmatpush.msrb.mxu2 %v3279_v55 }
  0xc9   :  { %v183_v51 = vpop.f32.mrf.mxu0  ;;  %v203_v52 = vpop.f32.mrf.mxu1 }
  0xd0   :  { %v243_v44 = vpop.f32.mrf.mxu3 }
  0xd1   :  { %v223_v53 = vpop.f32.mrf.mxu2 }
  0xda   :  { %v263_v56 = vpop.f32.mrf.mxu0  ;;  %v283_v47 = vpop.f32.mrf.mxu1 }
  0xdb   :  { %v264_v57 = vadd.f32 %v263_v56, %v183_v51  ;;  %v284_v62 = vadd.f32 %v283_v47, %v203_v52  ;;  %v3420_v56 = vperm.slane %v162_v43, 2 }
  0xdd   :  { %v335_v48 = vadd.f32 %v3411_v63, %v264_v57  ;;  %v336_v60 = vadd.f32 %v3413_v58, %v284_v62  ;;  %6187 = vst [vmem:[#allocation96_spill] sm:$0xff] %v3420_v56 }
  0xdf   :  { %v2039_v55 = vmul.f32 -1.442695, %v335_v48  ;;  %v2040_v46 = vmul.f32 -1.442695, %v336_v60 }
  0xe1   :  { %2077 = vpow2.f32 %v2039_v55  ;;  %v323_v61 = vpop.f32.mrf.mxu3 }
  0xe2   :  { %2079 = vpow2.f32 %v2040_v46  ;;  %v324_v54 = vadd.f32 %v323_v61, %v243_v44 }
  0xe4   :  { %v338_v50 = vadd.f32 %v3417_v59, %v324_v54 }
  0xe6   :  { %v2041_v42 = vmul.f32 -1.442695, %v338_v50 }
  0xe7   :  { %v2078_v40 = vpop.eup %2077 }
  0xe8   :  { %v2080_v49 = vpop.eup %2079  ;;  %v342_v51 = vadd.f32 1.0, %v2078_v40  ;;  %2081 = vpow2.f32 %v2041_v42  ;;  %v303_v52 = vpop.f32.mrf.mxu2 }
  0xe9   :  { %v361_v47 = vadd.f32 1.0, %v2080_v49  ;;  %v304_v48 = vadd.f32 %v303_v52, %v223_v53 }
  0xea   :  { %2083 = vrcp.f32 %v342_v51  ;;  %v354_v40 = vand.u32 2147483648, %v342_v51  ;;  %v352_v59 = vand.u32 2147483647, %v342_v51  ;;  %vm348_vm2 = vweird.f32 %v342_v51 }
  0xeb   :  { %2085 = vrcp.f32 %v361_v47  ;;  %v337_v46 = vadd.f32 %v3420_v56, %v304_v48  ;;  %v373_v42 = vand.u32 2147483648, %v361_v47  ;;  %v371_v43 = vand.u32 2147483647, %v361_v47 }
  0xec   :  { %vm367_vm3 = vweird.f32 %v361_v47  ;;  %v355_v56 = vor.u32 1.1754944e-38, %v354_v40  ;;  %vm353_vm6 = vcmp.eq.f32.partialorder %v352_v59, 8.507059e+37 }
  0xed   :  { %vm372_vm7 = vcmp.eq.f32.partialorder %v371_v43, 8.507059e+37  ;;  %v6230_v43 = vld [vmem:[#allocation43_spill] sm:$0xff] }
  0xee   :  { %v2082_v57 = vpop.eup %2081 }
  0xef   :  { %v381_v62 = vadd.f32 1.0, %v2082_v57 }
  0xf0   :  { %v2084_v55 = vpop.eup %2083 }
  0xf1   :  { %v2086_v44 = vpop.eup %2085  ;;  %v344_v61 = vmul.f32 %v2084_v55, %v342_v51  ;;  %2087 = vrcp.f32 %v381_v62  ;;  %vm349_vm0 = vweird.f32 %v2084_v55  ;;  %vm387_vm9 = vweird.f32 %v381_v62 }
  0xf2   :  { %v363_v50 = vmul.f32 %v2086_v44, %v361_v47  ;;  %2089 = vtanh.f32 %v337_v46  ;;  %vm368_vm1 = vweird.f32 %v2086_v44  ;;  %vm350_vm4 = vmor %vm348_vm2, %vm349_vm0  ;;  %v32_v46 = vld [vmem:[%s5586_s2] sm:$0xff] }
  0xf3   :  { %v345_v54 = vsub.f32 1.0, %v344_v61  ;;  %vm369_vm5 = vmor %vm367_vm3, %vm368_vm1  ;;  %v374_v61 = vor.u32 1.1754944e-38, %v373_v42  ;;  %v393_v42 = vand.u32 2147483648, %v381_v62 }
  0xf4   :  { %v364_v60 = vsub.f32 1.0, %v363_v50 }
  0xf5   :  { %v346_v49 = vmul.f32 %v2084_v55, %v345_v54 }
  0xf6   :  { %v365_v53 = vmul.f32 %v2086_v44, %v364_v60 }
  0xf7   :  { %v2088_v52 = vpop.eup %2087  ;;  %v347_v57 = vadd.f32 %v2084_v55, %v346_v49 }
  0xf8   :  { %v383_v48 = vmul.f32 %v2088_v52, %v381_v62  ;;  %v366_v58 = vadd.f32 %v2086_v44, %v365_v53  ;;  %v2090_v54 = vpop.eup %2089  ;;  %vm388_vm8 = vweird.f32 %v2088_v52  ;;  %v391_v53 = vand.u32 2147483647, %v381_v62  ;;  %v6229_v62 = vld [vmem:[#allocation42_spill] sm:$0xff] }
  0xf9   :  { %v351_v50 = vsel %vm350_vm4, %v2084_v55, %v347_v57  ;;  %vm389_vm10 = vmor %vm387_vm9, %vm388_vm8  ;;  %v394_v55 = vor.u32 1.1754944e-38, %v393_v42  ;;  %v6232_v57 = vld [vmem:[#allocation44_spill] sm:$0xff]  ;;  %v6243_v42 = vld [vmem:[#allocation69_spill] sm:$0xff] }
  0xfa   :  { %v384_v60 = vsub.f32 1.0, %v383_v48  ;;  %v356_v63 = vsel %vm353_vm6, %v355_v56, %v351_v50  ;;  %v370_v39 = vsel %vm369_vm5, %v2086_v44, %v366_v58  ;;  %vm392_vm11 = vcmp.eq.f32.partialorder %v391_v53, 8.507059e+37  ;;  %v6233_v48 = vld [vmem:[#allocation46_spill] sm:$0xff]  ;;  %v6236_v50 = vld [vmem:[#allocation48_spill] sm:$0xff] }
  0xfb   :  { %v375_v49 = vsel %vm372_vm7, %v374_v61, %v370_v39  ;;  %v398_v51 = vmul.f32 %v2090_v54, %v356_v63  ;;  %v6225_v39 = vld [vmem:[#allocation38_spill] sm:$0xff]  ;;  %v6228_v63 = vld [vmem:[#allocation40_spill] sm:$0xff]  ;;  %v6234_v61 = vld [vmem:[#allocation47_spill] sm:$0xff] }
  0xfc   :  { %v385_v47 = vmul.f32 %v2088_v52, %v384_v60  ;;  %v397_v38 = vmul.f32 %v375_v49, %v32_v46  ;;  %v6235_v46 = vld [vmem:[#allocation61_spill] sm:$0xff]  ;;  %v6237_v54 = vld [vmem:[#allocation50_spill] sm:$0xff]  ;;  %v6238_v60 = vld [vmem:[#allocation51_spill] sm:$0xff] }
  0xfd   :  { %v6239_v49 = vld [vmem:[#allocation65_spill] sm:$0xff]  ;;  %v6244_v53 = vld [vmem:[#allocation56_spill] sm:$0xff] }
  0xfe   :  { %v3426_v36 = vadd.f32 %v398_v51, %v397_v38  ;;  %v386_v40 = vadd.f32 %v2088_v52, %v385_v47  ;;  %v2042_v38 = vld [vmem:[%s5584_s0 + $0x8] sm:$0xff]  ;;  %v6240_v51 = vld [vmem:[#allocation52_spill] sm:$0xff]  ;;  %v6241_v47 = vld [vmem:[#allocation54_spill] sm:$0xff] }
 0x100   :  { %2091 = vtanh.f32 %v3426_v36  ;;  %v390_v59 = vsel %vm389_vm10, %v2088_v52, %v386_v40  ;;  %v6231_v52 = vld [vmem:[#allocation57_spill] sm:$0xff]  ;;  %v6242_v40 = vld [vmem:[#allocation55_spill] sm:$0xff] }
 0x101   :  { %v395_v58 = vsel %vm392_vm11, %v394_v55, %v390_v59  ;;  %v6245_v59 = vld [vmem:[#allocation58_spill] sm:$0xff]  ;;  %v6246_v55 = vld [vmem:[#allocation59_spill] sm:$0xff] }
 0x106   :  { %v2092_v56 = vpop.eup %2091 }
 0x107   :  { %v401_v44 = vmul.f32 %v2092_v56, %v395_v58  ;;  %v6247_v56 = vld [vmem:[#allocation73_spill] sm:$0xff]  ;;  %v6248_v58 = vld [vmem:[#allocation60_spill] sm:$0xff] }
 0x109   :  { %402 = vst [vmem:[%s5587_s6] sm:$0xff] %v401_v44  ;;  %421 = vmatmul.f32.vlgmr.msra.gmra.mxu0 %v401_v44  ;;  %441 = vmatmul.f32.vlgmr.msra.gmra.mxu1 %v401_v44 }
 0x10a   :  { %461 = vmatmul.f32.vlgmr.msra.gmra.mxu2 %v401_v44  ;;  %481 = vmatmul.f32.vlgmr.msra.gmra.mxu3 %v401_v44  ;;  %v6249_v44 = vld [vmem:[#allocation62_spill] sm:$0xff] }
 0x10b   :  { %636 = vmatpush.msra.mxu0 %v2509_v0  ;;  %656 = vmatpush.msra.mxu1 %v2514_v1  ;;  %v6188_v0 = vld [vmem:[#allocation4_spill] sm:$0xff]  ;;  %v6189_v1 = vld [vmem:[#allocation5_spill] sm:$0xff] }
 0x10c   :  { %676 = vmatpush.msra.mxu2 %v2570_v11  ;;  %696 = vmatpush.msra.mxu3 %v2519_v2  ;;  %v6190_v2 = vld [vmem:[#allocation6_spill] sm:$0xff] }
 0x10d   :  { %637 = vmatpush.msra.mxu0 %v2526_v3  ;;  %657 = vmatpush.msra.mxu1 %v2531_v4  ;;  %v6191_v3 = vld [vmem:[#allocation14_spill] sm:$0xff]  ;;  %v6192_v4 = vld [vmem:[#allocation7_spill] sm:$0xff] }
 0x10e   :  { %677 = vmatpush.msra.mxu2 %v2582_v13  ;;  %697 = vmatpush.msra.mxu3 %v2536_v5  ;;  %v6193_v5 = vld [vmem:[#allocation8_spill] sm:$0xff]  ;;  %v6199_v11 = vld [vmem:[#allocation22_spill] sm:$0xff]  ;;  %v6201_v13 = vld [vmem:[#allocation15_spill] sm:$0xff] }
 0x10f   :  { %638 = vmatpush.msra.mxu0 %v2542_v6  ;;  %658 = vmatpush.msra.mxu1 %v2547_v7  ;;  %v6194_v6 = vld [vmem:[#allocation9_spill] sm:$0xff]  ;;  %v6195_v7 = vld [vmem:[#allocation18_spill] sm:$0xff] }
 0x110   :  { %678 = vmatpush.msra.mxu2 %v2606_v17  ;;  %698 = vmatpush.msra.mxu3 %v2554_v8  ;;  %v6196_v8 = vld [vmem:[#allocation10_spill] sm:$0xff]  ;;  %v6205_v17 = vld [vmem:[#allocation19_spill] sm:$0xff] }
 0x111   :  { %501 = vmatmul.f32.vlgmr.msrb.gmra.mxu0 %v2042_v38  ;;  %521 = vmatmul.f32.vlgmr.msrb.gmra.mxu1 %v2042_v38 }
 0x112   :  { %541 = vmatmul.f32.vlgmr.msrb.gmra.mxu2 %v2042_v38  ;;  %561 = vmatmul.f32.vlgmr.msrb.gmra.mxu3 %v2042_v38  ;;  %v6250_v38 = vld [vmem:[#allocation63_spill] sm:$0xff] }
 0x113   :  { %639 = vmatpush.msra.mxu0 %v2560_v9  ;;  %659 = vmatpush.msra.mxu1 %v2565_v10  ;;  %v6197_v9 = vld [vmem:[#allocation11_spill] sm:$0xff]  ;;  %v6198_v10 = vld [vmem:[#allocation12_spill] sm:$0xff] }
 0x114   :  { %679 = vmatpush.msra.mxu2 %v2630_v21  ;;  %699 = vmatpush.msra.mxu3 %v2577_v12  ;;  %v6200_v12 = vld [vmem:[#allocation13_spill] sm:$0xff]  ;;  %v6209_v21 = vld [vmem:[#allocation23_spill] sm:$0xff] }
 0x115   :  { %640 = vmatpush.msra.mxu0 %v2589_v14  ;;  %660 = vmatpush.msra.mxu1 %v2594_v15  ;;  %v6202_v14 = vld [vmem:[#allocation16_spill] sm:$0xff]  ;;  %v6203_v15 = vld [vmem:[#allocation29_spill] sm:$0xff] }
 0x116   :  { %680 = vmatpush.msra.mxu2 %v2654_v25  ;;  %700 = vmatpush.msra.mxu3 %v2601_v16  ;;  %v6204_v16 = vld [vmem:[#allocation17_spill] sm:$0xff]  ;;  %v6213_v25 = vld [vmem:[#allocation26_spill] sm:$0xff] }
 0x117   :  { %641 = vmatpush.msra.mxu0 %v2613_v18  ;;  %661 = vmatpush.msra.mxu1 %v2618_v19  ;;  %v6206_v18 = vld [vmem:[#allocation20_spill] sm:$0xff]  ;;  %v6207_v19 = vld [vmem:[#allocation33_spill] sm:$0xff] }
 0x118   :  { %681 = vmatpush.msra.mxu2 %v2678_v29  ;;  %701 = vmatpush.msra.mxu3 %v2625_v20  ;;  %v6208_v20 = vld [vmem:[#allocation21_spill] sm:$0xff]  ;;  %v6217_v29 = vld [vmem:[#allocation30_spill] sm:$0xff] }
 0x119   :  { %642 = vmatpush.msra.mxu0 %v2637_v22  ;;  %662 = vmatpush.msra.mxu1 %v2642_v23  ;;  %v6210_v22 = vld [vmem:[#allocation24_spill] sm:$0xff]  ;;  %v6211_v23 = vld [vmem:[#allocation37_spill] sm:$0xff] }
 0x11a   :  { %682 = vmatpush.msra.mxu2 %v2702_v33  ;;  %702 = vmatpush.msra.mxu3 %v2649_v24  ;;  %v6212_v24 = vld [vmem:[#allocation25_spill] sm:$0xff]  ;;  %v6221_v33 = vld [vmem:[#allocation34_spill] sm:$0xff] }
 0x11b   :  { %643 = vmatpush.msra.mxu0 %v2661_v26  ;;  %663 = vmatpush.msra.mxu1 %v2666_v27  ;;  %v6214_v26 = vld [vmem:[#allocation27_spill] sm:$0xff]  ;;  %v6215_v27 = vld [vmem:[#allocation41_spill] sm:$0xff] }
 0x11c   :  { %683 = vmatpush.msra.mxu2 %v2726_v37  ;;  %703 = vmatpush.msra.mxu3 %v2673_v28  ;;  %v6216_v28 = vld [vmem:[#allocation28_spill] sm:$0xff] }
 0x11d   :  { %644 = vmatpush.msra.mxu0 %v2685_v30  ;;  %664 = vmatpush.msra.mxu1 %v2690_v31  ;;  %v6218_v30 = vld [vmem:[#allocation31_spill] sm:$0xff]  ;;  %v6219_v31 = vld [vmem:[#allocation45_spill] sm:$0xff]  ;;  %v6224_v37 = vld [vmem:[#allocation36_spill] sm:$0xff] }
 0x11e   :  { %684 = vmatpush.msra.mxu2 %v2750_v41  ;;  %704 = vmatpush.msra.mxu3 %v2697_v32  ;;  %v6220_v32 = vld [vmem:[#allocation32_spill] sm:$0xff]  ;;  %v6226_v41 = vld [vmem:[#allocation39_spill] sm:$0xff] }
 0x11f   :  { %645 = vmatpush.msra.mxu0 %v2709_v34  ;;  %665 = vmatpush.msra.mxu1 %v2714_v35  ;;  %v6222_v34 = vld [vmem:[#allocation35_spill] sm:$0xff]  ;;  %v6223_v35 = vld [vmem:[#allocation49_spill] sm:$0xff] }
 0x120   :  { %685 = vmatpush.msra.mxu2 %v2774_v45  ;;  %705 = vmatpush.msra.mxu3 %v6188_v0  ;;  %v6227_v45 = vld [vmem:[#allocation53_spill] sm:$0xff] }
 0x121   :  { %646 = vmatpush.msra.mxu0 %v6189_v1  ;;  %666 = vmatpush.msra.mxu1 %v6190_v2  ;;  %v6251_v0 = vld [vmem:[#allocation77_spill] sm:$0xff]  ;;  %v6252_v1 = vld [vmem:[#allocation64_spill] sm:$0xff]  ;;  %v6253_v2 = vld [vmem:[#allocation66_spill] sm:$0xff] }
 0x122   :  { %686 = vmatpush.msra.mxu2 %v6191_v3  ;;  %706 = vmatpush.msra.mxu3 %v6192_v4  ;;  %v6254_v3 = vld [vmem:[#allocation67_spill] sm:$0xff]  ;;  %v6255_v4 = vld [vmem:[#allocation81_spill] sm:$0xff] }
 0x123   :  { %647 = vmatpush.msra.mxu0 %v6193_v5  ;;  %667 = vmatpush.msra.mxu1 %v6194_v6  ;;  %v6256_v5 = vld [vmem:[#allocation68_spill] sm:$0xff]  ;;  %v6257_v6 = vld [vmem:[#allocation70_spill] sm:$0xff] }
 0x124   :  { %687 = vmatpush.msra.mxu2 %v6195_v7  ;;  %707 = vmatpush.msra.mxu3 %v6196_v8  ;;  %v6258_v7 = vld [vmem:[#allocation71_spill] sm:$0xff]  ;;  %v6259_v8 = vld [vmem:[#allocation85_spill] sm:$0xff] }
 0x125   :  { %648 = vmatpush.msra.mxu0 %v6197_v9  ;;  %668 = vmatpush.msra.mxu1 %v6198_v10  ;;  %v6260_v9 = vld [vmem:[#allocation72_spill] sm:$0xff]  ;;  %v6261_v10 = vld [vmem:[#allocation74_spill] sm:$0xff] }
 0x126   :  { %688 = vmatpush.msra.mxu2 %v6199_v11  ;;  %708 = vmatpush.msra.mxu3 %v6200_v12  ;;  %v6262_v11 = vld [vmem:[#allocation75_spill] sm:$0xff]  ;;  %v6263_v12 = vld [vmem:[#allocation89_spill] sm:$0xff] }
 0x127   :  { %649 = vmatpush.msra.mxu0 %v6201_v13  ;;  %669 = vmatpush.msra.mxu1 %v6202_v14  ;;  %v6264_v13 = vld [vmem:[#allocation76_spill] sm:$0xff]  ;;  %v6265_v14 = vld [vmem:[#allocation78_spill] sm:$0xff] }
 0x128   :  { %689 = vmatpush.msra.mxu2 %v6203_v15  ;;  %709 = vmatpush.msra.mxu3 %v6204_v16  ;;  %v6266_v15 = vld [vmem:[#allocation79_spill] sm:$0xff]  ;;  %v6267_v16 = vld [vmem:[#allocation90_spill] sm:$0xff] }
 0x129   :  { %650 = vmatpush.msra.mxu0 %v6205_v17  ;;  %670 = vmatpush.msra.mxu1 %v6206_v18  ;;  %v6268_v17 = vld [vmem:[#allocation80_spill] sm:$0xff]  ;;  %v6269_v18 = vld [vmem:[#allocation82_spill] sm:$0xff] }
 0x12a   :  { %690 = vmatpush.msra.mxu2 %v6207_v19  ;;  %710 = vmatpush.msra.mxu3 %v6208_v20  ;;  %v6270_v19 = vld [vmem:[#allocation83_spill] sm:$0xff] }
 0x12b   :  { %651 = vmatpush.msra.mxu0 %v6209_v21  ;;  %671 = vmatpush.msra.mxu1 %v6210_v22  ;;  %v6271_v20 = vld [vmem:[#allocation91_spill] sm:$0xff]  ;;  %v6272_v21 = vld [vmem:[#allocation84_spill] sm:$0xff]  ;;  %v6273_v22 = vld [vmem:[#allocation86_spill] sm:$0xff] }
 0x12c   :  { %691 = vmatpush.msra.mxu2 %v6211_v23  ;;  %711 = vmatpush.msra.mxu3 %v6212_v24  ;;  %v6274_v23 = vld [vmem:[#allocation87_spill] sm:$0xff]  ;;  %v6275_v24 = vld [vmem:[#allocation92_spill] sm:$0xff] }
 0x12d   :  { %716 = vmatpush.msrb.mxu0 %v6213_v25  ;;  %736 = vmatpush.msrb.mxu1 %v6214_v26  ;;  %v6276_v25 = vld [vmem:[#allocation88_spill] sm:$0xff] }
 0x12e   :  { %756 = vmatpush.msrb.mxu2 %v6215_v27  ;;  %776 = vmatpush.msrb.mxu3 %v6216_v28 }
 0x12f   :  { %717 = vmatpush.msrb.mxu0 %v6217_v29  ;;  %737 = vmatpush.msrb.mxu1 %v6218_v30 }
 0x130   :  { %757 = vmatpush.msrb.mxu2 %v6219_v31  ;;  %777 = vmatpush.msrb.mxu3 %v6220_v32 }
 0x131   :  { %718 = vmatpush.msrb.mxu0 %v6221_v33  ;;  %738 = vmatpush.msrb.mxu1 %v6222_v34  ;;  %v6277_v33 = vld [vmem:[#allocation93_spill] sm:$0xff] }
 0x132   :  { %758 = vmatpush.msrb.mxu2 %v6223_v35  ;;  %778 = vmatpush.msrb.mxu3 %v6224_v37  ;;  %v6278_v35 = vld [vmem:[#allocation94_spill] sm:$0xff] }
 0x133   :  { %719 = vmatpush.msrb.mxu0 %v6225_v39  ;;  %739 = vmatpush.msrb.mxu1 %v6226_v41 }
 0x134   :  { %759 = vmatpush.msrb.mxu2 %v6227_v45  ;;  %779 = vmatpush.msrb.mxu3 %v6228_v63 }
 0x135   :  { %720 = vmatpush.msrb.mxu0 %v6229_v62  ;;  %740 = vmatpush.msrb.mxu1 %v6230_v43  ;;  %v6279_v43 = vld [vmem:[#allocation95_spill] sm:$0xff] }
 0x136   :  { %760 = vmatpush.msrb.mxu2 %v6231_v52  ;;  %780 = vmatpush.msrb.mxu3 %v6232_v57 }
 0x137   :  { %721 = vmatpush.msrb.mxu0 %v6233_v48  ;;  %741 = vmatpush.msrb.mxu1 %v6234_v61 }
 0x138   :  { %761 = vmatpush.msrb.mxu2 %v6235_v46  ;;  %781 = vmatpush.msrb.mxu3 %v6236_v50 }
 0x139   :  { %722 = vmatpush.msrb.mxu0 %v6237_v54  ;;  %742 = vmatpush.msrb.mxu1 %v6238_v60 }
 0x13a   :  { %762 = vmatpush.msrb.mxu2 %v6239_v49  ;;  %782 = vmatpush.msrb.mxu3 %v6240_v51 }
 0x13b   :  { %723 = vmatpush.msrb.mxu0 %v6241_v47  ;;  %743 = vmatpush.msrb.mxu1 %v6242_v40  ;;  %v6280_v40 = vld [vmem:[#allocation96_spill] sm:$0xff] }
 0x13c   :  { %763 = vmatpush.msrb.mxu2 %v6243_v42  ;;  %783 = vmatpush.msrb.mxu3 %v6244_v53 }
 0x13d   :  { %724 = vmatpush.msrb.mxu0 %v6245_v59  ;;  %744 = vmatpush.msrb.mxu1 %v6246_v55 }
 0x13e   :  { %764 = vmatpush.msrb.mxu2 %v6247_v56  ;;  %784 = vmatpush.msrb.mxu3 %v6248_v58 }
 0x13f   :  { %725 = vmatpush.msrb.mxu0 %v6249_v44  ;;  %745 = vmatpush.msrb.mxu1 %v6250_v38 }
 0x140   :  { %765 = vmatpush.msrb.mxu2 %v6251_v0  ;;  %785 = vmatpush.msrb.mxu3 %v6252_v1 }
 0x141   :  { %726 = vmatpush.msrb.mxu0 %v6253_v2  ;;  %746 = vmatpush.msrb.mxu1 %v6254_v3 }
 0x142   :  { %766 = vmatpush.msrb.mxu2 %v6255_v4  ;;  %786 = vmatpush.msrb.mxu3 %v6256_v5 }
 0x143   :  { %727 = vmatpush.msrb.mxu0 %v6257_v6  ;;  %747 = vmatpush.msrb.mxu1 %v6258_v7 }
 0x144   :  { %767 = vmatpush.msrb.mxu2 %v6259_v8  ;;  %787 = vmatpush.msrb.mxu3 %v6260_v9 }
 0x145   :  { %728 = vmatpush.msrb.mxu0 %v6261_v10  ;;  %748 = vmatpush.msrb.mxu1 %v6262_v11 }
 0x146   :  { %768 = vmatpush.msrb.mxu2 %v6263_v12  ;;  %788 = vmatpush.msrb.mxu3 %v6264_v13 }
 0x147   :  { %729 = vmatpush.msrb.mxu0 %v6265_v14  ;;  %749 = vmatpush.msrb.mxu1 %v6266_v15 }
 0x148   :  { %769 = vmatpush.msrb.mxu2 %v6267_v16  ;;  %789 = vmatpush.msrb.mxu3 %v6268_v17 }
 0x149   :  { %730 = vmatpush.msrb.mxu0 %v6269_v18  ;;  %750 = vmatpush.msrb.mxu1 %v6270_v19 }
 0x14a   :  { %770 = vmatpush.msrb.mxu2 %v6271_v20  ;;  %790 = vmatpush.msrb.mxu3 %v6272_v21 }
 0x14b   :  { %731 = vmatpush.msrb.mxu0 %v6273_v22  ;;  %751 = vmatpush.msrb.mxu1 %v6274_v23 }
 0x14c   :  { %771 = vmatpush.msrb.mxu2 %v6275_v24  ;;  %791 = vmatpush.msrb.mxu3 %v6276_v25 }
 0x186   :  { %v422_v26 = vpop.f32.mrf.mxu0  ;;  %v442_v27 = vpop.f32.mrf.mxu1 }
 0x18d   :  { %v482_v28 = vpop.f32.mrf.mxu3  ;;  %v462_v39 = vpop.f32.mrf.mxu2 }
 0x18e   :  { %v502_v29 = vpop.f32.mrf.mxu0  ;;  %v522_v30 = vpop.f32.mrf.mxu1 }
 0x18f   :  { %v503_v31 = vadd.f32 %v502_v29, %v422_v26  ;;  %v523_v32 = vadd.f32 %v522_v30, %v442_v27  ;;  %v3589_v29 = vld [vmem:[%s5581_s4 + $0x1f0] sm:$0xff]  ;;  %v3595_v30 = vld [vmem:[%s5581_s4 + $0x1f8] sm:$0xff] }
 0x191   :  { %v565_v34 = vadd.f32 %v503_v31, %v6277_v33  ;;  %v566_v37 = vadd.f32 %v523_v32, %v6278_v35  ;;  %v3601_v31 = vld [vmem:[%s5581_s4 + $0x1c0] sm:$0xff]  ;;  %v3607_v32 = vld [vmem:[%s5581_s4 + $0x1c8] sm:$0xff] }
 0x193   :  { %v2043_v41 = vmul.f32 -1.442695, %v565_v34  ;;  %v2044_v45 = vmul.f32 -1.442695, %v566_v37  ;;  %v2047_v34 = vld [vmem:[%s5584_s0 + $0x10] sm:$0xff] }
 0x194   :  { %v3616_v37 = vld [vmem:[%s5581_s4 + $0x1d0] sm:$0xff] }
 0x195   :  { %2093 = vpow2.f32 %v2043_v41  ;;  %v562_v63 = vpop.f32.mrf.mxu3  ;;  %v542_v54 = vpop.f32.mrf.mxu2  ;;  %v3628_v41 = vld [vmem:[%s5581_s4 + $0x1a0] sm:$0xff] }
 0x196   :  { %2095 = vpow2.f32 %v2044_v45  ;;  %v563_v62 = vadd.f32 %v562_v63, %v482_v28  ;;  %v543_v60 = vadd.f32 %v542_v54, %v462_v39  ;;  %v3583_v28 = vld [vmem:[%s5581_s4 + $0x1e8] sm:$0xff]  ;;  %v3622_v39 = vld [vmem:[%s5581_s4 + $0x1d8] sm:$0xff]  ;;  %v3640_v63 = vld [vmem:[%s5581_s4 + $0x1b0] sm:$0xff] }
 0x197   :  { %v3634_v45 = vld [vmem:[%s5581_s4 + $0x1a8] sm:$0xff]  ;;  %v3688_v54 = vld [vmem:[%s5581_s4 + $0x170] sm:$0xff] }
 0x198   :  { %v568_v52 = vadd.f32 %v563_v62, %v6279_v43  ;;  %v567_v42 = vadd.f32 %v543_v60, %v6280_v40  ;;  %v3646_v62 = vld [vmem:[%s5581_s4 + $0x1b8] sm:$0xff] }
 0x199   :  { %v3694_v60 = vld [vmem:[%s5581_s4 + $0x178] sm:$0xff] }
 0x19a   :  { %v2045_v57 = vmul.f32 -1.442695, %v568_v52  ;;  %v3652_v52 = vld [vmem:[%s5581_s4 + $0x180] sm:$0xff] }
 0x19b   :  { %v2094_v48 = vpop.eup %2093 }
 0x19c   :  { %v2096_v61 = vpop.eup %2095  ;;  %v572_v46 = vadd.f32 1.0, %v2094_v48  ;;  %2097 = vpow2.f32 %v2045_v57  ;;  %v3658_v57 = vld [vmem:[%s5581_s4 + $0x188] sm:$0xff]  ;;  %v3664_v48 = vld [vmem:[%s5581_s4 + $0x190] sm:$0xff] }
 0x19d   :  { %v591_v50 = vadd.f32 1.0, %v2096_v61  ;;  %v3670_v61 = vld [vmem:[%s5581_s4 + $0x198] sm:$0xff] }
 0x19e   :  { %2099 = vrcp.f32 %v572_v46  ;;  %v584_v44 = vand.u32 2147483648, %v572_v46  ;;  %v582_v1 = vand.u32 2147483647, %v572_v46  ;;  %vm578_vm14 = vweird.f32 %v572_v46 }
 0x19f   :  { %2101 = vrcp.f32 %v591_v50  ;;  %v603_v38 = vand.u32 2147483648, %v591_v50  ;;  %v601_v3 = vand.u32 2147483647, %v591_v50  ;;  %vm597_vm15 = vweird.f32 %v591_v50 }
 0x1a0   :  { %v585_v6 = vor.u32 1.1754944e-38, %v584_v44  ;;  %vm583_vm2 = vcmp.eq.f32.partialorder %v582_v1, 8.507059e+37  ;;  %v3754_v44 = vld [vmem:[%s5581_s4 + $0x108] sm:$0xff]  ;;  %v3772_v1 = vld [vmem:[%s5581_s4 + $0xe0] sm:$0xff] }
 0x1a1   :  { %v604_v9 = vor.u32 1.1754944e-38, %v603_v38  ;;  %vm602_vm3 = vcmp.eq.f32.partialorder %v601_v3, 8.507059e+37  ;;  %v3760_v38 = vld [vmem:[%s5581_s4 + $0x110] sm:$0xff] }
 0x1a2   :  { %v2098_v49 = vpop.eup %2097  ;;  %v3784_v3 = vld [vmem:[%s5581_s4 + $0xf0] sm:$0xff] }
 0x1a3   :  { %v611_v51 = vadd.f32 1.0, %v2098_v49  ;;  %v3700_v49 = vld [vmem:[%s5581_s4 + $0x140] sm:$0xff] }
 0x1a4   :  { %v2100_v47 = vpop.eup %2099 }
 0x1a5   :  { %v2102_v53 = vpop.eup %2101  ;;  %v574_v59 = vmul.f32 %v2100_v47, %v572_v46  ;;  %2103 = vrcp.f32 %v611_v51  ;;  %vm579_vm12 = vweird.f32 %v2100_v47  ;;  %v623_v21 = vand.u32 2147483648, %v611_v51  ;;  %v3676_v46 = vld [vmem:[%s5581_s4 + $0x160] sm:$0xff] }
 0x1a6   :  { %v593_v55 = vmul.f32 %v2102_v53, %v591_v50  ;;  %2105 = vtanh.f32 %v567_v42  ;;  %vm598_vm13 = vweird.f32 %v2102_v53  ;;  %vm580_vm0 = vmor %vm578_vm14, %vm579_vm12  ;;  %vm617_vm5 = vweird.f32 %v611_v51  ;;  %v3682_v50 = vld [vmem:[%s5581_s4 + $0x168] sm:$0xff]  ;;  %v3718_v42 = vld [vmem:[%s5581_s4 + $0x158] sm:$0xff] }
 0x1a7   :  { %v575_v56 = vsub.f32 1.0, %v574_v59  ;;  %vm599_vm1 = vmor %vm597_vm15, %vm598_vm13  ;;  %v621_v22 = vand.u32 2147483647, %v611_v51  ;;  %v624_v24 = vor.u32 1.1754944e-38, %v623_v21  ;;  %v3730_v59 = vld [vmem:[%s5581_s4 + $0x128] sm:$0xff]  ;;  %v3886_v21 = vld [vmem:[%s5581_s4 + $0x78] sm:$0xff] }
 0x1a8   :  { %v594_v58 = vsub.f32 1.0, %v593_v55  ;;  %v3736_v55 = vld [vmem:[%s5581_s4 + $0x130] sm:$0xff]  ;;  %6294 = vst [vmem:[#allocation15_spill] sm:$0xff] %v3886_v21 }
 0x1a9   :  { %v576_v0 = vmul.f32 %v2100_v47, %v575_v56  ;;  %vm622_vm7 = vcmp.eq.f32.partialorder %v621_v22, 8.507059e+37  ;;  %v3742_v56 = vld [vmem:[%s5581_s4 + $0x138] sm:$0xff]  ;;  %v3892_v22 = vld [vmem:[%s5581_s4 + $0x40] sm:$0xff] }
 0x1aa   :  { %v595_v2 = vmul.f32 %v2102_v53, %v594_v58  ;;  %v3748_v58 = vld [vmem:[%s5581_s4 + $0x100] sm:$0xff]  ;;  %6295 = vst [vmem:[#allocation16_spill] sm:$0xff] %v3892_v22 }
 0x1ab   :  { %v2104_v4 = vpop.eup %2103  ;;  %v577_v5 = vadd.f32 %v2100_v47, %v576_v0  ;;  %v3766_v0 = vld [vmem:[%s5581_s4 + $0x118] sm:$0xff] }
 0x1ac   :  { %v596_v7 = vadd.f32 %v2102_v53, %v595_v2  ;;  %v613_v8 = vmul.f32 %v2104_v4, %v611_v51  ;;  %v2106_v11 = vpop.eup %2105  ;;  %vm618_vm4 = vweird.f32 %v2104_v4  ;;  %v3706_v51 = vld [vmem:[%s5581_s4 + $0x148] sm:$0xff] }
 0x1ad   :  { %v581_v10 = vsel %vm580_vm0, %v2100_v47, %v577_v5  ;;  %vm619_vm6 = vmor %vm617_vm5, %vm618_vm4  ;;  %v3712_v47 = vld [vmem:[%s5581_s4 + $0x150] sm:$0xff]  ;;  %v3778_v2 = vld [vmem:[%s5581_s4 + $0xe8] sm:$0xff] }
 0x1ae   :  { %v586_v12 = vsel %vm583_vm2, %v585_v6, %v581_v10  ;;  %v600_v13 = vsel %vm599_vm1, %v2102_v53, %v596_v7  ;;  %v614_v14 = vsub.f32 1.0, %v613_v8  ;;  %v3724_v53 = vld [vmem:[%s5581_s4 + $0x120] sm:$0xff]  ;;  %v3802_v6 = vld [vmem:[%s5581_s4 + $0xc8] sm:$0xff]  ;;  %v3808_v7 = vld [vmem:[%s5581_s4 + $0xd0] sm:$0xff] }
 0x1af   :  { %v605_v15 = vsel %vm602_vm3, %v604_v9, %v600_v13  ;;  %v628_v16 = vmul.f32 %v2106_v11, %v586_v12  ;;  %v3796_v5 = vld [vmem:[%s5581_s4 + $0xc0] sm:$0xff]  ;;  %6281 = vst [vmem:[#allocation4_spill] sm:$0xff] %v3808_v7  ;;  %v3814_v8 = vld [vmem:[%s5581_s4 + $0xd8] sm:$0xff]  ;;  %v3826_v10 = vld [vmem:[%s5581_s4 + $0xa8] sm:$0xff] }
 0x1b0   :  { %v627_v17 = vmul.f32 %v605_v15, %v3426_v36  ;;  %v615_v18 = vmul.f32 %v2104_v4, %v614_v14  ;;  %v3577_v36 = vld [vmem:[%s5581_s4 + $0x1e0] sm:$0xff]  ;;  %6282 = vst [vmem:[#allocation5_spill] sm:$0xff] %v3814_v8  ;;  %v3832_v11 = vld [vmem:[%s5581_s4 + $0xb0] sm:$0xff]  ;;  %v3838_v12 = vld [vmem:[%s5581_s4 + $0xb8] sm:$0xff] }
 0x1b1   :  { %v3820_v9 = vld [vmem:[%s5581_s4 + $0xa0] sm:$0xff]  ;;  %6284 = vst [vmem:[#allocation14_spill] sm:$0xff] %v3826_v10  ;;  %v3850_v14 = vld [vmem:[%s5581_s4 + $0x88] sm:$0xff]  ;;  %v3856_v15 = vld [vmem:[%s5581_s4 + $0x90] sm:$0xff] }
 0x1b2   :  { %v3568_v19 = vadd.f32 %v628_v16, %v627_v17  ;;  %v616_v20 = vadd.f32 %v2104_v4, %v615_v18  ;;  %6283 = vst [vmem:[#allocation6_spill] sm:$0xff] %v3820_v9  ;;  %v3844_v13 = vld [vmem:[%s5581_s4 + $0x80] sm:$0xff]  ;;  %v3862_v16 = vld [vmem:[%s5581_s4 + $0x98] sm:$0xff]  ;;  %v3874_v18 = vld [vmem:[%s5581_s4 + $0x68] sm:$0xff] }
 0x1b3   :  { %6285 = vst [vmem:[#allocation7_spill] sm:$0xff] %v3832_v11  ;;  %v3868_v17 = vld [vmem:[%s5581_s4 + $0x60] sm:$0xff] }
 0x1b4   :  { %2107 = vtanh.f32 %v3568_v19  ;;  %v620_v23 = vsel %vm619_vm6, %v2104_v4, %v616_v20  ;;  %v3790_v4 = vld [vmem:[%s5581_s4 + $0xf8] sm:$0xff]  ;;  %6286 = vst [vmem:[#allocation8_spill] sm:$0xff] %v3838_v12  ;;  %v3880_v20 = vld [vmem:[%s5581_s4 + $0x70] sm:$0xff] }
 0x1b5   :  { %v625_v26 = vsel %vm622_vm7, %v624_v24, %v620_v23  ;;  %6287 = vst [vmem:[#allocation9_spill] sm:$0xff] %v3844_v13  ;;  %v3898_v23 = vld [vmem:[%s5581_s4 + $0x48] sm:$0xff]  ;;  %v3904_v24 = vld [vmem:[%s5581_s4 + $0x50] sm:$0xff] }
 0x1b6   :  { %6288 = vst [vmem:[#allocation18_spill] sm:$0xff] %v3850_v14 }
 0x1b7   :  { %6289 = vst [vmem:[#allocation10_spill] sm:$0xff] %v3856_v15 }
 0x1b8   :  { %6290 = vst [vmem:[#allocation11_spill] sm:$0xff] %v3862_v16 }
 0x1b9   :  { %6291 = vst [vmem:[#allocation12_spill] sm:$0xff] %v3868_v17 }
 0x1ba   :  { %v2108_v25 = vpop.eup %2107  ;;  %6292 = vst [vmem:[#allocation22_spill] sm:$0xff] %v3874_v18 }
 0x1bb   :  { %v631_v27 = vmul.f32 %v2108_v25, %v625_v26  ;;  %6293 = vst [vmem:[#allocation13_spill] sm:$0xff] %v3880_v20  ;;  %v3910_v25 = vld [vmem:[%s5581_s4 + $0x58] sm:$0xff]  ;;  %v3916_v26 = vld [vmem:[%s5581_s4 + $0x20] sm:$0xff] }
 0x1bc   :  { %6296 = vst [vmem:[#allocation29_spill] sm:$0xff] %v3898_v23 }
 0x1bd   :  { %2046 = vst [vmem:[%s5587_s6 + $0x8] sm:$0xff] %v631_v27  ;;  %652 = vmatmul.f32.vlgmr.msra.gmra.mxu0 %v631_v27  ;;  %672 = vmatmul.f32.vlgmr.msra.gmra.mxu1 %v631_v27 }
 0x1be   :  { %692 = vmatmul.f32.vlgmr.msra.gmra.mxu2 %v631_v27  ;;  %712 = vmatmul.f32.vlgmr.msra.gmra.mxu3 %v631_v27  ;;  %6297 = vst [vmem:[#allocation17_spill] sm:$0xff] %v3904_v24  ;;  %v3922_v27 = vld [vmem:[%s5581_s4 + $0x28] sm:$0xff] }
 0x1bf   :  { %867 = vmatpush.msra.mxu0 %v3577_v36  ;;  %887 = vmatpush.msra.mxu1 %v3583_v28  ;;  %6298 = vst [vmem:[#allocation19_spill] sm:$0xff] %v3910_v25 }
 0x1c0   :  { %907 = vmatpush.msra.mxu2 %v3589_v29  ;;  %927 = vmatpush.msra.mxu3 %v3595_v30  ;;  %6299 = vst [vmem:[#allocation20_spill] sm:$0xff] %v3916_v26 }
 0x1c1   :  { %868 = vmatpush.msra.mxu0 %v3601_v31  ;;  %888 = vmatpush.msra.mxu1 %v3607_v32  ;;  %6300 = vst [vmem:[#allocation33_spill] sm:$0xff] %v3922_v27 }
 0x1c2   :  { %908 = vmatpush.msra.mxu2 %v3616_v37  ;;  %928 = vmatpush.msra.mxu3 %v3622_v39 }
 0x1c3   :  { %869 = vmatpush.msra.mxu0 %v3628_v41  ;;  %889 = vmatpush.msra.mxu1 %v3634_v45 }
 0x1c4   :  { %909 = vmatpush.msra.mxu2 %v3640_v63  ;;  %929 = vmatpush.msra.mxu3 %v3646_v62 }
 0x1c5   :  { %732 = vmatmul.f32.vlgmr.msrb.gmra.mxu0 %v2047_v34  ;;  %752 = vmatmul.f32.vlgmr.msrb.gmra.mxu1 %v2047_v34 }
 0x1c6   :  { %772 = vmatmul.f32.vlgmr.msrb.gmra.mxu2 %v2047_v34  ;;  %792 = vmatmul.f32.vlgmr.msrb.gmra.mxu3 %v2047_v34  ;;  %v3928_v34 = vld [vmem:[%s5581_s4 + $0x30] sm:$0xff] }
 0x1c7   :  { %870 = vmatpush.msra.mxu0 %v3652_v52  ;;  %890 = vmatpush.msra.mxu1 %v3658_v57  ;;  %6301 = vst [vmem:[#allocation21_spill] sm:$0xff] %v3928_v34 }
 0x1c8   :  { %910 = vmatpush.msra.mxu2 %v3664_v48  ;;  %930 = vmatpush.msra.mxu3 %v3670_v61 }
 0x1c9   :  { %871 = vmatpush.msra.mxu0 %v3676_v46  ;;  %891 = vmatpush.msra.mxu1 %v3682_v50 }
 0x1ca   :  { %911 = vmatpush.msra.mxu2 %v3688_v54  ;;  %931 = vmatpush.msra.mxu3 %v3694_v60 }
 0x1cb   :  { %872 = vmatpush.msra.mxu0 %v3700_v49  ;;  %892 = vmatpush.msra.mxu1 %v3706_v51 }
 0x1cc   :  { %912 = vmatpush.msra.mxu2 %v3712_v47  ;;  %932 = vmatpush.msra.mxu3 %v3718_v42 }
 0x1cd   :  { %873 = vmatpush.msra.mxu0 %v3724_v53  ;;  %893 = vmatpush.msra.mxu1 %v3730_v59 }
 0x1ce   :  { %913 = vmatpush.msra.mxu2 %v3736_v55  ;;  %933 = vmatpush.msra.mxu3 %v3742_v56 }
 0x1cf   :  { %874 = vmatpush.msra.mxu0 %v3748_v58  ;;  %894 = vmatpush.msra.mxu1 %v3754_v44 }
 0x1d0   :  { %914 = vmatpush.msra.mxu2 %v3760_v38  ;;  %934 = vmatpush.msra.mxu3 %v3766_v0 }
 0x1d1   :  { %875 = vmatpush.msra.mxu0 %v3772_v1  ;;  %895 = vmatpush.msra.mxu1 %v3778_v2 }
 0x1d2   :  { %915 = vmatpush.msra.mxu2 %v3784_v3  ;;  %935 = vmatpush.msra.mxu3 %v3790_v4 }
 0x1d3   :  { %876 = vmatpush.msra.mxu0 %v3796_v5  ;;  %896 = vmatpush.msra.mxu1 %v3802_v6 }
 0x1d4   :  { %916 = vmatpush.msra.mxu2 %v3808_v7  ;;  %936 = vmatpush.msra.mxu3 %v3814_v8 }
 0x1d5   :  { %877 = vmatpush.msra.mxu0 %v3820_v9  ;;  %897 = vmatpush.msra.mxu1 %v3826_v10 }
 0x1d6   :  { %917 = vmatpush.msra.mxu2 %v3832_v11  ;;  %937 = vmatpush.msra.mxu3 %v3838_v12 }
 0x1d7   :  { %878 = vmatpush.msra.mxu0 %v3844_v13  ;;  %898 = vmatpush.msra.mxu1 %v3850_v14 }
 0x1d8   :  { %918 = vmatpush.msra.mxu2 %v3856_v15  ;;  %938 = vmatpush.msra.mxu3 %v3862_v16 }
 0x1d9   :  { %879 = vmatpush.msra.mxu0 %v3868_v17  ;;  %899 = vmatpush.msra.mxu1 %v3874_v18 }
 0x1da   :  { %919 = vmatpush.msra.mxu2 %v3880_v20  ;;  %939 = vmatpush.msra.mxu3 %v3886_v21 }
 0x1db   :  { %880 = vmatpush.msra.mxu0 %v3892_v22  ;;  %900 = vmatpush.msra.mxu1 %v3898_v23 }
 0x1dc   :  { %920 = vmatpush.msra.mxu2 %v3904_v24  ;;  %940 = vmatpush.msra.mxu3 %v3910_v25  ;;  %v3934_v25 = vld [vmem:[%s5581_s4 + $0x38] sm:$0xff] }
 0x1dd   :  { %881 = vmatpush.msra.mxu0 %v3916_v26  ;;  %901 = vmatpush.msra.mxu1 %v3922_v27  ;;  %6302 = vst [vmem:[#allocation23_spill] sm:$0xff] %v3934_v25  ;;  %v3940_v26 = vld [vmem:[%s5581_s4] sm:$0xff]  ;;  %v3946_v27 = vld [vmem:[%s5581_s4 + $0x8] sm:$0xff] }
 0x1de   :  { %921 = vmatpush.msra.mxu2 %v3928_v34  ;;  %941 = vmatpush.msra.mxu3 %v3934_v25  ;;  %6303 = vst [vmem:[#allocation24_spill] sm:$0xff] %v3940_v26  ;;  %v3952_v34 = vld [vmem:[%s5581_s4 + $0x10] sm:$0xff]  ;;  %v3958_v25 = vld [vmem:[%s5581_s4 + $0x18] sm:$0xff] }
 0x1df   :  { %882 = vmatpush.msra.mxu0 %v3940_v26  ;;  %6304 = vst [vmem:[#allocation37_spill] sm:$0xff] %v3946_v27  ;;  %902 = vmatpush.msra.mxu1 %v3946_v27  ;;  %v3964_v26 = vld [vmem:[%s5582_s3 + $0x1e0] sm:$0xff]  ;;  %v3970_v27 = vld [vmem:[%s5582_s3 + $0x1e8] sm:$0xff] }
 0x1e0   :  { %6305 = vst [vmem:[#allocation25_spill] sm:$0xff] %v3952_v34  ;;  %922 = vmatpush.msra.mxu2 %v3952_v34  ;;  %942 = vmatpush.msra.mxu3 %v3958_v25  ;;  %v3976_v34 = vld [vmem:[%s5582_s3 + $0x1f0] sm:$0xff] }
 0x1e1   :  { %6306 = vst [vmem:[#allocation26_spill] sm:$0xff] %v3958_v25  ;;  %947 = vmatpush.msrb.mxu0 %v3964_v26  ;;  %967 = vmatpush.msrb.mxu1 %v3970_v27  ;;  %v3982_v25 = vld [vmem:[%s5582_s3 + $0x1f8] sm:$0xff] }
 0x1e2   :  { %6307 = vst [vmem:[#allocation27_spill] sm:$0xff] %v3964_v26  ;;  %987 = vmatpush.msrb.mxu2 %v3976_v34  ;;  %1007 = vmatpush.msrb.mxu3 %v3982_v25  ;;  %v3988_v26 = vld [vmem:[%s5582_s3 + $0x1c0] sm:$0xff] }
 0x1e3   :  { %6308 = vst [vmem:[#allocation41_spill] sm:$0xff] %v3970_v27  ;;  %948 = vmatpush.msrb.mxu0 %v3988_v26  ;;  %v3994_v27 = vld [vmem:[%s5582_s3 + $0x1c8] sm:$0xff] }
 0x1e4   :  { %6309 = vst [vmem:[#allocation28_spill] sm:$0xff] %v3976_v34  ;;  %968 = vmatpush.msrb.mxu1 %v3994_v27  ;;  %v4000_v34 = vld [vmem:[%s5582_s3 + $0x1d0] sm:$0xff] }
 0x1e5   :  { %6310 = vst [vmem:[#allocation30_spill] sm:$0xff] %v3982_v25  ;;  %988 = vmatpush.msrb.mxu2 %v4000_v34  ;;  %v4006_v25 = vld [vmem:[%s5582_s3 + $0x1d8] sm:$0xff] }
 0x1e6   :  { %6311 = vst [vmem:[#allocation31_spill] sm:$0xff] %v3988_v26  ;;  %1008 = vmatpush.msrb.mxu3 %v4006_v25  ;;  %v4012_v26 = vld [vmem:[%s5582_s3 + $0x1a0] sm:$0xff] }
 0x1e7   :  { %6312 = vst [vmem:[#allocation45_spill] sm:$0xff] %v3994_v27  ;;  %949 = vmatpush.msrb.mxu0 %v4012_v26  ;;  %v4018_v27 = vld [vmem:[%s5582_s3 + $0x1a8] sm:$0xff] }
 0x1e8   :  { %6313 = vst [vmem:[#allocation32_spill] sm:$0xff] %v4000_v34  ;;  %969 = vmatpush.msrb.mxu1 %v4018_v27  ;;  %v4024_v34 = vld [vmem:[%s5582_s3 + $0x1b0] sm:$0xff] }
 0x1e9   :  { %6314 = vst [vmem:[#allocation34_spill] sm:$0xff] %v4006_v25  ;;  %989 = vmatpush.msrb.mxu2 %v4024_v34  ;;  %v4030_v25 = vld [vmem:[%s5582_s3 + $0x1b8] sm:$0xff] }
 0x1ea   :  { %6315 = vst [vmem:[#allocation35_spill] sm:$0xff] %v4012_v26  ;;  %1009 = vmatpush.msrb.mxu3 %v4030_v25  ;;  %v4036_v26 = vld [vmem:[%s5582_s3 + $0x180] sm:$0xff] }
 0x1eb   :  { %6316 = vst [vmem:[#allocation49_spill] sm:$0xff] %v4018_v27  ;;  %950 = vmatpush.msrb.mxu0 %v4036_v26  ;;  %v4042_v27 = vld [vmem:[%s5582_s3 + $0x188] sm:$0xff] }
 0x1ec   :  { %6317 = vst [vmem:[#allocation36_spill] sm:$0xff] %v4024_v34  ;;  %970 = vmatpush.msrb.mxu1 %v4042_v27  ;;  %v4048_v34 = vld [vmem:[%s5582_s3 + $0x190] sm:$0xff] }
 0x1ed   :  { %6318 = vst [vmem:[#allocation38_spill] sm:$0xff] %v4030_v25  ;;  %990 = vmatpush.msrb.mxu2 %v4048_v34  ;;  %v4054_v25 = vld [vmem:[%s5582_s3 + $0x198] sm:$0xff] }
 0x1ee   :  { %6319 = vst [vmem:[#allocation39_spill] sm:$0xff] %v4036_v26  ;;  %1010 = vmatpush.msrb.mxu3 %v4054_v25  ;;  %v4060_v26 = vld [vmem:[%s5582_s3 + $0x160] sm:$0xff] }
 0x1ef   :  { %6320 = vst [vmem:[#allocation53_spill] sm:$0xff] %v4042_v27  ;;  %951 = vmatpush.msrb.mxu0 %v4060_v26  ;;  %v4066_v27 = vld [vmem:[%s5582_s3 + $0x168] sm:$0xff] }
 0x1f0   :  { %6321 = vst [vmem:[#allocation40_spill] sm:$0xff] %v4048_v34  ;;  %971 = vmatpush.msrb.mxu1 %v4066_v27  ;;  %v4072_v34 = vld [vmem:[%s5582_s3 + $0x170] sm:$0xff] }
 0x1f1   :  { %6322 = vst [vmem:[#allocation42_spill] sm:$0xff] %v4054_v25  ;;  %991 = vmatpush.msrb.mxu2 %v4072_v34  ;;  %v4078_v25 = vld [vmem:[%s5582_s3 + $0x178] sm:$0xff] }
 0x1f2   :  { %6323 = vst [vmem:[#allocation43_spill] sm:$0xff] %v4060_v26  ;;  %1011 = vmatpush.msrb.mxu3 %v4078_v25  ;;  %v4084_v26 = vld [vmem:[%s5582_s3 + $0x140] sm:$0xff] }
 0x1f3   :  { %6324 = vst [vmem:[#allocation57_spill] sm:$0xff] %v4066_v27  ;;  %952 = vmatpush.msrb.mxu0 %v4084_v26  ;;  %v4090_v27 = vld [vmem:[%s5582_s3 + $0x148] sm:$0xff] }
 0x1f4   :  { %6325 = vst [vmem:[#allocation44_spill] sm:$0xff] %v4072_v34  ;;  %972 = vmatpush.msrb.mxu1 %v4090_v27  ;;  %v4096_v34 = vld [vmem:[%s5582_s3 + $0x150] sm:$0xff] }
 0x1f5   :  { %6326 = vst [vmem:[#allocation46_spill] sm:$0xff] %v4078_v25  ;;  %992 = vmatpush.msrb.mxu2 %v4096_v34  ;;  %v4102_v25 = vld [vmem:[%s5582_s3 + $0x158] sm:$0xff] }
 0x1f6   :  { %6327 = vst [vmem:[#allocation47_spill] sm:$0xff] %v4084_v26  ;;  %1012 = vmatpush.msrb.mxu3 %v4102_v25  ;;  %v4108_v26 = vld [vmem:[%s5582_s3 + $0x120] sm:$0xff] }
 0x1f7   :  { %6328 = vst [vmem:[#allocation61_spill] sm:$0xff] %v4090_v27  ;;  %953 = vmatpush.msrb.mxu0 %v4108_v26  ;;  %v4114_v27 = vld [vmem:[%s5582_s3 + $0x128] sm:$0xff] }
 0x1f8   :  { %6329 = vst [vmem:[#allocation48_spill] sm:$0xff] %v4096_v34  ;;  %973 = vmatpush.msrb.mxu1 %v4114_v27  ;;  %v4120_v34 = vld [vmem:[%s5582_s3 + $0x130] sm:$0xff] }
 0x1f9   :  { %6330 = vst [vmem:[#allocation50_spill] sm:$0xff] %v4102_v25  ;;  %993 = vmatpush.msrb.mxu2 %v4120_v34  ;;  %v4126_v25 = vld [vmem:[%s5582_s3 + $0x138] sm:$0xff] }
 0x1fa   :  { %6331 = vst [vmem:[#allocation51_spill] sm:$0xff] %v4108_v26  ;;  %1013 = vmatpush.msrb.mxu3 %v4126_v25  ;;  %v4132_v26 = vld [vmem:[%s5582_s3 + $0x100] sm:$0xff] }
 0x1fb   :  { %6332 = vst [vmem:[#allocation65_spill] sm:$0xff] %v4114_v27  ;;  %954 = vmatpush.msrb.mxu0 %v4132_v26  ;;  %v4138_v27 = vld [vmem:[%s5582_s3 + $0x108] sm:$0xff] }
 0x1fc   :  { %6333 = vst [vmem:[#allocation52_spill] sm:$0xff] %v4120_v34  ;;  %974 = vmatpush.msrb.mxu1 %v4138_v27  ;;  %v4144_v34 = vld [vmem:[%s5582_s3 + $0x110] sm:$0xff] }
 0x1fd   :  { %6334 = vst [vmem:[#allocation54_spill] sm:$0xff] %v4126_v25  ;;  %994 = vmatpush.msrb.mxu2 %v4144_v34  ;;  %v4150_v25 = vld [vmem:[%s5582_s3 + $0x118] sm:$0xff] }
 0x1fe   :  { %6335 = vst [vmem:[#allocation55_spill] sm:$0xff] %v4132_v26  ;;  %1014 = vmatpush.msrb.mxu3 %v4150_v25  ;;  %v4156_v26 = vld [vmem:[%s5582_s3 + $0xe0] sm:$0xff] }
 0x1ff   :  { %6336 = vst [vmem:[#allocation69_spill] sm:$0xff] %v4138_v27  ;;  %955 = vmatpush.msrb.mxu0 %v4156_v26  ;;  %v4162_v27 = vld [vmem:[%s5582_s3 + $0xe8] sm:$0xff] }
 0x200   :  { %6337 = vst [vmem:[#allocation56_spill] sm:$0xff] %v4144_v34  ;;  %975 = vmatpush.msrb.mxu1 %v4162_v27  ;;  %v4168_v34 = vld [vmem:[%s5582_s3 + $0xf0] sm:$0xff] }
 0x201   :  { %6338 = vst [vmem:[#allocation58_spill] sm:$0xff] %v4150_v25  ;;  %995 = vmatpush.msrb.mxu2 %v4168_v34  ;;  %v4174_v25 = vld [vmem:[%s5582_s3 + $0xf8] sm:$0xff] }
 0x202   :  { %6339 = vst [vmem:[#allocation59_spill] sm:$0xff] %v4156_v26  ;;  %1015 = vmatpush.msrb.mxu3 %v4174_v25  ;;  %v4180_v26 = vld [vmem:[%s5582_s3 + $0xc0] sm:$0xff] }
 0x203   :  { %6340 = vst [vmem:[#allocation73_spill] sm:$0xff] %v4162_v27  ;;  %956 = vmatpush.msrb.mxu0 %v4180_v26  ;;  %v4186_v27 = vld [vmem:[%s5582_s3 + $0xc8] sm:$0xff] }
 0x204   :  { %6341 = vst [vmem:[#allocation60_spill] sm:$0xff] %v4168_v34  ;;  %976 = vmatpush.msrb.mxu1 %v4186_v27  ;;  %v4192_v34 = vld [vmem:[%s5582_s3 + $0xd0] sm:$0xff] }
 0x205   :  { %6342 = vst [vmem:[#allocation62_spill] sm:$0xff] %v4174_v25  ;;  %996 = vmatpush.msrb.mxu2 %v4192_v34  ;;  %v4198_v25 = vld [vmem:[%s5582_s3 + $0xd8] sm:$0xff] }
 0x206   :  { %6343 = vst [vmem:[#allocation63_spill] sm:$0xff] %v4180_v26  ;;  %1016 = vmatpush.msrb.mxu3 %v4198_v25  ;;  %v4204_v26 = vld [vmem:[%s5582_s3 + $0xa0] sm:$0xff] }
 0x207   :  { %6344 = vst [vmem:[#allocation77_spill] sm:$0xff] %v4186_v27  ;;  %957 = vmatpush.msrb.mxu0 %v4204_v26  ;;  %v4210_v27 = vld [vmem:[%s5582_s3 + $0xa8] sm:$0xff] }
 0x208   :  { %6345 = vst [vmem:[#allocation64_spill] sm:$0xff] %v4192_v34  ;;  %977 = vmatpush.msrb.mxu1 %v4210_v27  ;;  %v4216_v34 = vld [vmem:[%s5582_s3 + $0xb0] sm:$0xff] }
 0x209   :  { %6346 = vst [vmem:[#allocation66_spill] sm:$0xff] %v4198_v25  ;;  %997 = vmatpush.msrb.mxu2 %v4216_v34  ;;  %v4222_v25 = vld [vmem:[%s5582_s3 + $0xb8] sm:$0xff] }
 0x20a   :  { %6347 = vst [vmem:[#allocation67_spill] sm:$0xff] %v4204_v26  ;;  %1017 = vmatpush.msrb.mxu3 %v4222_v25  ;;  %v4228_v26 = vld [vmem:[%s5582_s3 + $0x80] sm:$0xff] }
 0x20b   :  { %6348 = vst [vmem:[#allocation81_spill] sm:$0xff] %v4210_v27  ;;  %958 = vmatpush.msrb.mxu0 %v4228_v26  ;;  %v4234_v27 = vld [vmem:[%s5582_s3 + $0x88] sm:$0xff] }
 0x20c   :  { %6349 = vst [vmem:[#allocation68_spill] sm:$0xff] %v4216_v34  ;;  %978 = vmatpush.msrb.mxu1 %v4234_v27  ;;  %v4240_v34 = vld [vmem:[%s5582_s3 + $0x90] sm:$0xff] }
 0x20d   :  { %6350 = vst [vmem:[#allocation70_spill] sm:$0xff] %v4222_v25  ;;  %998 = vmatpush.msrb.mxu2 %v4240_v34  ;;  %v4246_v25 = vld [vmem:[%s5582_s3 + $0x98] sm:$0xff] }
 0x20e   :  { %6351 = vst [vmem:[#allocation71_spill] sm:$0xff] %v4228_v26  ;;  %1018 = vmatpush.msrb.mxu3 %v4246_v25  ;;  %v4252_v26 = vld [vmem:[%s5582_s3 + $0x60] sm:$0xff] }
 0x20f   :  { %6352 = vst [vmem:[#allocation85_spill] sm:$0xff] %v4234_v27  ;;  %959 = vmatpush.msrb.mxu0 %v4252_v26  ;;  %v4258_v27 = vld [vmem:[%s5582_s3 + $0x68] sm:$0xff] }
 0x210   :  { %6353 = vst [vmem:[#allocation72_spill] sm:$0xff] %v4240_v34  ;;  %979 = vmatpush.msrb.mxu1 %v4258_v27  ;;  %v4264_v34 = vld [vmem:[%s5582_s3 + $0x70] sm:$0xff] }
 0x211   :  { %6354 = vst [vmem:[#allocation74_spill] sm:$0xff] %v4246_v25  ;;  %999 = vmatpush.msrb.mxu2 %v4264_v34  ;;  %v4270_v25 = vld [vmem:[%s5582_s3 + $0x78] sm:$0xff] }
 0x212   :  { %6355 = vst [vmem:[#allocation75_spill] sm:$0xff] %v4252_v26  ;;  %1019 = vmatpush.msrb.mxu3 %v4270_v25  ;;  %v4276_v26 = vld [vmem:[%s5582_s3 + $0x40] sm:$0xff] }
 0x213   :  { %6356 = vst [vmem:[#allocation89_spill] sm:$0xff] %v4258_v27  ;;  %960 = vmatpush.msrb.mxu0 %v4276_v26  ;;  %v4282_v27 = vld [vmem:[%s5582_s3 + $0x48] sm:$0xff] }
 0x214   :  { %6357 = vst [vmem:[#allocation76_spill] sm:$0xff] %v4264_v34  ;;  %980 = vmatpush.msrb.mxu1 %v4282_v27  ;;  %v4288_v34 = vld [vmem:[%s5582_s3 + $0x50] sm:$0xff] }
 0x215   :  { %6358 = vst [vmem:[#allocation78_spill] sm:$0xff] %v4270_v25  ;;  %1000 = vmatpush.msrb.mxu2 %v4288_v34  ;;  %v4294_v25 = vld [vmem:[%s5582_s3 + $0x58] sm:$0xff] }
 0x216   :  { %6359 = vst [vmem:[#allocation79_spill] sm:$0xff] %v4276_v26  ;;  %1020 = vmatpush.msrb.mxu3 %v4294_v25  ;;  %v4300_v26 = vld [vmem:[%s5582_s3 + $0x20] sm:$0xff] }
 0x217   :  { %6360 = vst [vmem:[#allocation90_spill] sm:$0xff] %v4282_v27  ;;  %961 = vmatpush.msrb.mxu0 %v4300_v26  ;;  %v4306_v27 = vld [vmem:[%s5582_s3 + $0x28] sm:$0xff] }
 0x218   :  { %6361 = vst [vmem:[#allocation80_spill] sm:$0xff] %v4288_v34  ;;  %981 = vmatpush.msrb.mxu1 %v4306_v27  ;;  %v4312_v34 = vld [vmem:[%s5582_s3 + $0x30] sm:$0xff] }
 0x219   :  { %6362 = vst [vmem:[#allocation82_spill] sm:$0xff] %v4294_v25  ;;  %1001 = vmatpush.msrb.mxu2 %v4312_v34  ;;  %v4318_v25 = vld [vmem:[%s5582_s3 + $0x38] sm:$0xff] }
 0x21a   :  { %6363 = vst [vmem:[#allocation83_spill] sm:$0xff] %v4300_v26  ;;  %1021 = vmatpush.msrb.mxu3 %v4318_v25  ;;  %v4324_v26 = vld [vmem:[%s5582_s3] sm:$0xff] }
 0x21b   :  { %6364 = vst [vmem:[#allocation91_spill] sm:$0xff] %v4306_v27  ;;  %962 = vmatpush.msrb.mxu0 %v4324_v26  ;;  %v4330_v27 = vld [vmem:[%s5582_s3 + $0x8] sm:$0xff] }
 0x21c   :  { %6365 = vst [vmem:[#allocation84_spill] sm:$0xff] %v4312_v34  ;;  %982 = vmatpush.msrb.mxu1 %v4330_v27  ;;  %v4336_v34 = vld [vmem:[%s5582_s3 + $0x10] sm:$0xff] }
 0x21d   :  { %6366 = vst [vmem:[#allocation86_spill] sm:$0xff] %v4318_v25  ;;  %1002 = vmatpush.msrb.mxu2 %v4336_v34  ;;  %v4342_v25 = vld [vmem:[%s5582_s3 + $0x18] sm:$0xff] }
 0x21e   :  { %6367 = vst [vmem:[#allocation87_spill] sm:$0xff] %v4324_v26  ;;  %1022 = vmatpush.msrb.mxu3 %v4342_v25 }
 0x21f   :  { %6368 = vst [vmem:[#allocation92_spill] sm:$0xff] %v4330_v27 }
 0x220   :  { %6369 = vst [vmem:[#allocation88_spill] sm:$0xff] %v4336_v34 }
 0x221   :  { %6370 = vst [vmem:[#allocation97_spill] sm:$0xff] %v4342_v25 }
 0x23a   :  { %v653_v26 = vpop.f32.mrf.mxu0  ;;  %v673_v24 = vpop.f32.mrf.mxu1 }
 0x241   :  { %v713_v23 = vpop.f32.mrf.mxu3  ;;  %v693_v16 = vpop.f32.mrf.mxu2 }
 0x242   :  { %v733_v22 = vpop.f32.mrf.mxu0  ;;  %v753_v21 = vpop.f32.mrf.mxu1 }
 0x243   :  { %v734_v27 = vadd.f32 %v733_v22, %v653_v26  ;;  %v754_v20 = vadd.f32 %v753_v21, %v673_v24 }
 0x245   :  { %v796_v18 = vadd.f32 %v734_v27, %v6277_v33  ;;  %v797_v17 = vadd.f32 %v754_v20, %v6278_v35 }
 0x247   :  { %v2048_v34 = vmul.f32 -1.442695, %v796_v18  ;;  %v2049_v15 = vmul.f32 -1.442695, %v797_v17 }
 0x249   :  { %2109 = vpow2.f32 %v2048_v34  ;;  %v793_v14 = vpop.f32.mrf.mxu3  ;;  %v773_v21 = vpop.f32.mrf.mxu2 }
 0x24a   :  { %2111 = vpow2.f32 %v2049_v15  ;;  %v794_v13 = vadd.f32 %v793_v14, %v713_v23  ;;  %v774_v24 = vadd.f32 %v773_v21, %v693_v16 }
 0x24c   :  { %v799_v25 = vadd.f32 %v794_v13, %v6279_v43  ;;  %v798_v17 = vadd.f32 %v774_v24, %v6280_v40 }
 0x24e   :  { %v2050_v12 = vmul.f32 -1.442695, %v799_v25 }
 0x24f   :  { %v2110_v11 = vpop.eup %2109 }
 0x250   :  { %v2112_v10 = vpop.eup %2111  ;;  %v803_v9 = vadd.f32 1.0, %v2110_v11  ;;  %2113 = vpow2.f32 %v2050_v12 }
 0x251   :  { %v822_v22 = vadd.f32 1.0, %v2112_v10 }
 0x252   :  { %2115 = vrcp.f32 %v803_v9  ;;  %v815_v25 = vand.u32 2147483648, %v803_v9  ;;  %v813_v10 = vand.u32 2147483647, %v803_v9  ;;  %vm809_vm10 = vweird.f32 %v803_v9 }
 0x253   :  { %2117 = vrcp.f32 %v822_v22  ;;  %v834_v11 = vand.u32 2147483648, %v822_v22  ;;  %v832_v16 = vand.u32 2147483647, %v822_v22  ;;  %vm828_vm11 = vweird.f32 %v822_v22 }
 0x254   :  { %v816_v24 = vor.u32 1.1754944e-38, %v815_v25  ;;  %vm814_vm14 = vcmp.eq.f32.partialorder %v813_v10, 8.507059e+37 }
 0x255   :  { %vm833_vm15 = vcmp.eq.f32.partialorder %v832_v16, 8.507059e+37  ;;  %v6377_v16 = vld [vmem:[#allocation9_spill] sm:$0xff] }
 0x256   :  { %v2114_v20 = vpop.eup %2113 }
 0x257   :  { %v842_v26 = vadd.f32 1.0, %v2114_v20 }
 0x258   :  { %v2116_v18 = vpop.eup %2115 }
 0x259   :  { %v2118_v27 = vpop.eup %2117  ;;  %v805_v15 = vmul.f32 %v2116_v18, %v803_v9  ;;  %2119 = vrcp.f32 %v842_v26  ;;  %vm810_vm8 = vweird.f32 %v2116_v18  ;;  %v854_v25 = vand.u32 2147483648, %v842_v26 }
 0x25a   :  { %v824_v14 = vmul.f32 %v2118_v27, %v822_v22  ;;  %2121 = vtanh.f32 %v798_v17  ;;  %vm829_vm9 = vweird.f32 %v2118_v27  ;;  %vm811_vm12 = vmor %vm809_vm10, %vm810_vm8  ;;  %vm848_vm1 = vweird.f32 %v842_v26 }
 0x25b   :  { %v806_v13 = vsub.f32 1.0, %v805_v15  ;;  %vm830_vm13 = vmor %vm828_vm11, %vm829_vm9  ;;  %v835_v15 = vor.u32 1.1754944e-38, %v834_v11  ;;  %v855_v10 = vor.u32 1.1754944e-38, %v854_v25  ;;  %v6388_v25 = vld [vmem:[#allocation19_spill] sm:$0xff] }
 0x25c   :  { %v825_v23 = vsub.f32 1.0, %v824_v14 }
 0x25d   :  { %v807_v12 = vmul.f32 %v2116_v18, %v806_v13 }
 0x25e   :  { %v826_v34 = vmul.f32 %v2118_v27, %v825_v23 }
 0x25f   :  { %v2120_v21 = vpop.eup %2119  ;;  %v808_v20 = vadd.f32 %v2116_v18, %v807_v12 }
 0x260   :  { %v827_v40 = vadd.f32 %v2118_v27, %v826_v34  ;;  %v844_v43 = vmul.f32 %v2120_v21, %v842_v26  ;;  %v2122_v17 = vpop.eup %2121  ;;  %vm849_vm0 = vweird.f32 %v2120_v21  ;;  %v6376_v34 = vld [vmem:[#allocation8_spill] sm:$0xff] }
 0x261   :  { %v812_v14 = vsel %vm811_vm12, %v2116_v18, %v808_v20  ;;  %v852_v18 = vand.u32 2147483647, %v842_v26  ;;  %vm850_vm2 = vmor %vm848_vm1, %vm849_vm0  ;;  %v6375_v26 = vld [vmem:[#allocation7_spill] sm:$0xff]  ;;  %v6379_v20 = vld [vmem:[#allocation10_spill] sm:$0xff] }
 0x262   :  { %v817_v35 = vsel %vm814_vm14, %v816_v24, %v812_v14  ;;  %v831_v13 = vsel %vm830_vm13, %v2118_v27, %v827_v40  ;;  %v845_v33 = vsub.f32 1.0, %v844_v43  ;;  %v6380_v24 = vld [vmem:[#allocation11_spill] sm:$0xff]  ;;  %v6382_v14 = vld [vmem:[#allocation22_spill] sm:$0xff] }
 0x263   :  { %v836_v23 = vsel %vm833_vm15, %v835_v15, %v831_v13  ;;  %v859_v8 = vmul.f32 %v2122_v17, %v817_v35  ;;  %vm853_vm3 = vcmp.eq.f32.partialorder %v852_v18, 8.507059e+37  ;;  %v6371_v35 = vld [vmem:[#allocation4_spill] sm:$0xff]  ;;  %v6383_v17 = vld [vmem:[#allocation13_spill] sm:$0xff]  ;;  %v6384_v13 = vld [vmem:[#allocation15_spill] sm:$0xff] }
 0x264   :  { %v858_v7 = vmul.f32 %v836_v23, %v3568_v19  ;;  %v846_v12 = vmul.f32 %v2120_v21, %v845_v33  ;;  %v2052_v33 = vld [vmem:[%s5584_s0 + $0x18] sm:$0xff]  ;;  %v6372_v19 = vld [vmem:[#allocation5_spill] sm:$0xff]  ;;  %v6381_v15 = vld [vmem:[#allocation12_spill] sm:$0xff] }
 0x265   :  { %v6385_v23 = vld [vmem:[#allocation16_spill] sm:$0xff] }
 0x266   :  { %v4350_v9 = vadd.f32 %v859_v8, %v858_v7  ;;  %v847_v22 = vadd.f32 %v2120_v21, %v846_v12  ;;  %v6373_v7 = vld [vmem:[#allocation6_spill] sm:$0xff]  ;;  %v6386_v12 = vld [vmem:[#allocation29_spill] sm:$0xff]  ;;  %v6389_v18 = vld [vmem:[#allocation20_spill] sm:$0xff] }
 0x267   :  { %v6374_v8 = vld [vmem:[#allocation14_spill] sm:$0xff] }
 0x268   :  { %2123 = vtanh.f32 %v4350_v9  ;;  %v851_v11 = vsel %vm850_vm2, %v2120_v21, %v847_v22  ;;  %v6378_v21 = vld [vmem:[#allocation18_spill] sm:$0xff]  ;;  %v6387_v22 = vld [vmem:[#allocation17_spill] sm:$0xff] }
 0x269   :  { %v856_v43 = vsel %vm853_vm3, %v855_v10, %v851_v11  ;;  %v6390_v11 = vld [vmem:[#allocation33_spill] sm:$0xff] }
 0x26a   :  { %v6391_v10 = vld [vmem:[#allocation21_spill] sm:$0xff] }
 0x26e   :  { %v2124_v40 = vpop.eup %2123 }
 0x26f   :  { %v862_v27 = vmul.f32 %v2124_v40, %v856_v43  ;;  %v6392_v40 = vld [vmem:[#allocation23_spill] sm:$0xff]  ;;  %v6393_v43 = vld [vmem:[#allocation24_spill] sm:$0xff] }
 0x271   :  { %2051 = vst [vmem:[%s5587_s6 + $0x10] sm:$0xff] %v862_v27  ;;  %883 = vmatmul.f32.vlgmr.msra.gmra.mxu0 %v862_v27  ;;  %903 = vmatmul.f32.vlgmr.msra.gmra.mxu1 %v862_v27 }
 0x272   :  { %923 = vmatmul.f32.vlgmr.msra.gmra.mxu2 %v862_v27  ;;  %943 = vmatmul.f32.vlgmr.msra.gmra.mxu3 %v862_v27  ;;  %v6394_v27 = vld [vmem:[#allocation37_spill] sm:$0xff] }
 0x273   :  { %1098 = vmatpush.msra.mxu0 %v3577_v36  ;;  %1118 = vmatpush.msra.mxu1 %v3583_v28 }
 0x274   :  { %1138 = vmatpush.msra.mxu2 %v3589_v29  ;;  %1158 = vmatpush.msra.mxu3 %v3595_v30 }
 0x275   :  { %1099 = vmatpush.msra.mxu0 %v3601_v31  ;;  %1119 = vmatpush.msra.mxu1 %v3607_v32 }
 0x276   :  { %1139 = vmatpush.msra.mxu2 %v3616_v37  ;;  %1159 = vmatpush.msra.mxu3 %v3622_v39 }
 0x277   :  { %1100 = vmatpush.msra.mxu0 %v3628_v41  ;;  %1120 = vmatpush.msra.mxu1 %v3634_v45 }
 0x278   :  { %1140 = vmatpush.msra.mxu2 %v3640_v63  ;;  %1160 = vmatpush.msra.mxu3 %v3646_v62 }
 0x279   :  { %963 = vmatmul.f32.vlgmr.msrb.gmra.mxu0 %v2052_v33  ;;  %983 = vmatmul.f32.vlgmr.msrb.gmra.mxu1 %v2052_v33 }
 0x27a   :  { %1003 = vmatmul.f32.vlgmr.msrb.gmra.mxu2 %v2052_v33  ;;  %1023 = vmatmul.f32.vlgmr.msrb.gmra.mxu3 %v2052_v33  ;;  %v6395_v33 = vld [vmem:[#allocation25_spill] sm:$0xff] }
 0x27b   :  { %1101 = vmatpush.msra.mxu0 %v3652_v52  ;;  %1121 = vmatpush.msra.mxu1 %v3658_v57 }
 0x27c   :  { %1141 = vmatpush.msra.mxu2 %v3664_v48  ;;  %1161 = vmatpush.msra.mxu3 %v3670_v61 }
 0x27d   :  { %1102 = vmatpush.msra.mxu0 %v3676_v46  ;;  %1122 = vmatpush.msra.mxu1 %v3682_v50 }
 0x27e   :  { %1142 = vmatpush.msra.mxu2 %v3688_v54  ;;  %1162 = vmatpush.msra.mxu3 %v3694_v60 }
 0x27f   :  { %1103 = vmatpush.msra.mxu0 %v3700_v49  ;;  %1123 = vmatpush.msra.mxu1 %v3706_v51 }
 0x280   :  { %1143 = vmatpush.msra.mxu2 %v3712_v47  ;;  %1163 = vmatpush.msra.mxu3 %v3718_v42 }
 0x281   :  { %1104 = vmatpush.msra.mxu0 %v3724_v53  ;;  %1124 = vmatpush.msra.mxu1 %v3730_v59 }
 0x282   :  { %1144 = vmatpush.msra.mxu2 %v3736_v55  ;;  %1164 = vmatpush.msra.mxu3 %v3742_v56 }
 0x283   :  { %1105 = vmatpush.msra.mxu0 %v3748_v58  ;;  %1125 = vmatpush.msra.mxu1 %v3754_v44 }
 0x284   :  { %1145 = vmatpush.msra.mxu2 %v3760_v38  ;;  %1165 = vmatpush.msra.mxu3 %v3766_v0 }
 0x285   :  { %1106 = vmatpush.msra.mxu0 %v3772_v1  ;;  %1126 = vmatpush.msra.mxu1 %v3778_v2 }
 0x286   :  { %1146 = vmatpush.msra.mxu2 %v3784_v3  ;;  %1166 = vmatpush.msra.mxu3 %v3790_v4 }
 0x287   :  { %1107 = vmatpush.msra.mxu0 %v3796_v5  ;;  %1127 = vmatpush.msra.mxu1 %v3802_v6 }
 0x288   :  { %1147 = vmatpush.msra.mxu2 %v6371_v35  ;;  %1167 = vmatpush.msra.mxu3 %v6372_v19 }
 0x289   :  { %1108 = vmatpush.msra.mxu0 %v6373_v7  ;;  %1128 = vmatpush.msra.mxu1 %v6374_v8 }
 0x28a   :  { %1148 = vmatpush.msra.mxu2 %v6375_v26  ;;  %1168 = vmatpush.msra.mxu3 %v6376_v34 }
 0x28b   :  { %1109 = vmatpush.msra.mxu0 %v6377_v16  ;;  %1129 = vmatpush.msra.mxu1 %v6378_v21  ;;  %v6463_v21 = vld [vmem:[#allocation95_spill] sm:$0xff] }
 0x28c   :  { %1149 = vmatpush.msra.mxu2 %v6379_v20  ;;  %1169 = vmatpush.msra.mxu3 %v6380_v24 }
 0x28d   :  { %1110 = vmatpush.msra.mxu0 %v6381_v15  ;;  %1130 = vmatpush.msra.mxu1 %v6382_v14 }
 0x28e   :  { %1150 = vmatpush.msra.mxu2 %v6383_v17  ;;  %1170 = vmatpush.msra.mxu3 %v6384_v13 }
 0x28f   :  { %1111 = vmatpush.msra.mxu0 %v6385_v23  ;;  %1131 = vmatpush.msra.mxu1 %v6386_v12  ;;  %v6396_v23 = vld [vmem:[#allocation26_spill] sm:$0xff]  ;;  %v6397_v12 = vld [vmem:[#allocation27_spill] sm:$0xff] }
 0x290   :  { %1151 = vmatpush.msra.mxu2 %v6387_v22  ;;  %1171 = vmatpush.msra.mxu3 %v6388_v25  ;;  %v6398_v22 = vld [vmem:[#allocation41_spill] sm:$0xff]  ;;  %v6399_v25 = vld [vmem:[#allocation28_spill] sm:$0xff] }
 0x291   :  { %1112 = vmatpush.msra.mxu0 %v6389_v18  ;;  %1132 = vmatpush.msra.mxu1 %v6390_v11  ;;  %v6400_v18 = vld [vmem:[#allocation30_spill] sm:$0xff]  ;;  %v6401_v11 = vld [vmem:[#allocation31_spill] sm:$0xff] }
 0x292   :  { %1152 = vmatpush.msra.mxu2 %v6391_v10  ;;  %1172 = vmatpush.msra.mxu3 %v6392_v40  ;;  %v6402_v10 = vld [vmem:[#allocation45_spill] sm:$0xff]  ;;  %v6403_v40 = vld [vmem:[#allocation32_spill] sm:$0xff] }
 0x293   :  { %1113 = vmatpush.msra.mxu0 %v6393_v43  ;;  %1133 = vmatpush.msra.mxu1 %v6394_v27  ;;  %v6404_v43 = vld [vmem:[#allocation34_spill] sm:$0xff]  ;;  %v6405_v27 = vld [vmem:[#allocation35_spill] sm:$0xff] }
 0x294   :  { %1153 = vmatpush.msra.mxu2 %v6395_v33  ;;  %1173 = vmatpush.msra.mxu3 %v6396_v23  ;;  %v6406_v33 = vld [vmem:[#allocation49_spill] sm:$0xff]  ;;  %v6407_v23 = vld [vmem:[#allocation36_spill] sm:$0xff] }
 0x295   :  { %1178 = vmatpush.msrb.mxu0 %v6397_v12  ;;  %1198 = vmatpush.msrb.mxu1 %v6398_v22  ;;  %v6408_v12 = vld [vmem:[#allocation38_spill] sm:$0xff]  ;;  %v6409_v22 = vld [vmem:[#allocation39_spill] sm:$0xff] }
 0x296   :  { %1218 = vmatpush.msrb.mxu2 %v6399_v25  ;;  %1238 = vmatpush.msrb.mxu3 %v6400_v18  ;;  %v6410_v25 = vld [vmem:[#allocation53_spill] sm:$0xff]  ;;  %v6411_v18 = vld [vmem:[#allocation40_spill] sm:$0xff] }
 0x297   :  { %1179 = vmatpush.msrb.mxu0 %v6401_v11  ;;  %1199 = vmatpush.msrb.mxu1 %v6402_v10  ;;  %v6412_v11 = vld [vmem:[#allocation42_spill] sm:$0xff]  ;;  %v6413_v10 = vld [vmem:[#allocation43_spill] sm:$0xff] }
 0x298   :  { %1219 = vmatpush.msrb.mxu2 %v6403_v40  ;;  %1239 = vmatpush.msrb.mxu3 %v6404_v43  ;;  %v6414_v40 = vld [vmem:[#allocation57_spill] sm:$0xff]  ;;  %v6415_v43 = vld [vmem:[#allocation44_spill] sm:$0xff] }
 0x299   :  { %1180 = vmatpush.msrb.mxu0 %v6405_v27  ;;  %1200 = vmatpush.msrb.mxu1 %v6406_v33  ;;  %v6416_v27 = vld [vmem:[#allocation46_spill] sm:$0xff]  ;;  %v6417_v33 = vld [vmem:[#allocation47_spill] sm:$0xff] }
 0x29a   :  { %1220 = vmatpush.msrb.mxu2 %v6407_v23  ;;  %1240 = vmatpush.msrb.mxu3 %v6408_v12  ;;  %v6418_v23 = vld [vmem:[#allocation61_spill] sm:$0xff]  ;;  %v6419_v12 = vld [vmem:[#allocation48_spill] sm:$0xff] }
 0x29b   :  { %1181 = vmatpush.msrb.mxu0 %v6409_v22  ;;  %1201 = vmatpush.msrb.mxu1 %v6410_v25  ;;  %v6420_v22 = vld [vmem:[#allocation50_spill] sm:$0xff]  ;;  %v6421_v25 = vld [vmem:[#allocation51_spill] sm:$0xff] }
 0x29c   :  { %1221 = vmatpush.msrb.mxu2 %v6411_v18  ;;  %1241 = vmatpush.msrb.mxu3 %v6412_v11  ;;  %v6422_v18 = vld [vmem:[#allocation65_spill] sm:$0xff]  ;;  %v6423_v11 = vld [vmem:[#allocation52_spill] sm:$0xff] }
 0x29d   :  { %1182 = vmatpush.msrb.mxu0 %v6413_v10  ;;  %1202 = vmatpush.msrb.mxu1 %v6414_v40  ;;  %v6424_v10 = vld [vmem:[#allocation54_spill] sm:$0xff]  ;;  %v6425_v40 = vld [vmem:[#allocation55_spill] sm:$0xff] }
 0x29e   :  { %1222 = vmatpush.msrb.mxu2 %v6415_v43  ;;  %1242 = vmatpush.msrb.mxu3 %v6416_v27  ;;  %v6426_v43 = vld [vmem:[#allocation69_spill] sm:$0xff]  ;;  %v6427_v27 = vld [vmem:[#allocation56_spill] sm:$0xff] }
 0x29f   :  { %1183 = vmatpush.msrb.mxu0 %v6417_v33  ;;  %1203 = vmatpush.msrb.mxu1 %v6418_v23  ;;  %v6428_v33 = vld [vmem:[#allocation58_spill] sm:$0xff]  ;;  %v6429_v23 = vld [vmem:[#allocation59_spill] sm:$0xff] }
 0x2a0   :  { %1223 = vmatpush.msrb.mxu2 %v6419_v12  ;;  %1243 = vmatpush.msrb.mxu3 %v6420_v22  ;;  %v6430_v12 = vld [vmem:[#allocation73_spill] sm:$0xff]  ;;  %v6431_v22 = vld [vmem:[#allocation60_spill] sm:$0xff] }
 0x2a1   :  { %1184 = vmatpush.msrb.mxu0 %v6421_v25  ;;  %1204 = vmatpush.msrb.mxu1 %v6422_v18  ;;  %v6432_v25 = vld [vmem:[#allocation62_spill] sm:$0xff]  ;;  %v6433_v18 = vld [vmem:[#allocation63_spill] sm:$0xff] }
 0x2a2   :  { %1224 = vmatpush.msrb.mxu2 %v6423_v11  ;;  %1244 = vmatpush.msrb.mxu3 %v6424_v10  ;;  %v6434_v11 = vld [vmem:[#allocation77_spill] sm:$0xff]  ;;  %v6435_v10 = vld [vmem:[#allocation64_spill] sm:$0xff] }
 0x2a3   :  { %1185 = vmatpush.msrb.mxu0 %v6425_v40  ;;  %1205 = vmatpush.msrb.mxu1 %v6426_v43  ;;  %v6436_v40 = vld [vmem:[#allocation66_spill] sm:$0xff]  ;;  %v6437_v43 = vld [vmem:[#allocation67_spill] sm:$0xff] }
 0x2a4   :  { %1225 = vmatpush.msrb.mxu2 %v6427_v27  ;;  %1245 = vmatpush.msrb.mxu3 %v6428_v33  ;;  %v6438_v27 = vld [vmem:[#allocation81_spill] sm:$0xff]  ;;  %v6439_v33 = vld [vmem:[#allocation68_spill] sm:$0xff] }
 0x2a5   :  { %1186 = vmatpush.msrb.mxu0 %v6429_v23  ;;  %1206 = vmatpush.msrb.mxu1 %v6430_v12  ;;  %v6440_v23 = vld [vmem:[#allocation70_spill] sm:$0xff]  ;;  %v6441_v12 = vld [vmem:[#allocation71_spill] sm:$0xff] }
 0x2a6   :  { %1226 = vmatpush.msrb.mxu2 %v6431_v22  ;;  %1246 = vmatpush.msrb.mxu3 %v6432_v25  ;;  %v6442_v22 = vld [vmem:[#allocation85_spill] sm:$0xff]  ;;  %v6443_v25 = vld [vmem:[#allocation72_spill] sm:$0xff] }
 0x2a7   :  { %1187 = vmatpush.msrb.mxu0 %v6433_v18  ;;  %1207 = vmatpush.msrb.mxu1 %v6434_v11  ;;  %v6444_v18 = vld [vmem:[#allocation74_spill] sm:$0xff]  ;;  %v6445_v11 = vld [vmem:[#allocation75_spill] sm:$0xff] }
 0x2a8   :  { %1227 = vmatpush.msrb.mxu2 %v6435_v10  ;;  %1247 = vmatpush.msrb.mxu3 %v6436_v40  ;;  %v6446_v10 = vld [vmem:[#allocation89_spill] sm:$0xff]  ;;  %v6447_v40 = vld [vmem:[#allocation76_spill] sm:$0xff] }
 0x2a9   :  { %1188 = vmatpush.msrb.mxu0 %v6437_v43  ;;  %1208 = vmatpush.msrb.mxu1 %v6438_v27  ;;  %v6448_v43 = vld [vmem:[#allocation78_spill] sm:$0xff]  ;;  %v6449_v27 = vld [vmem:[#allocation79_spill] sm:$0xff] }
 0x2aa   :  { %1228 = vmatpush.msrb.mxu2 %v6439_v33  ;;  %1248 = vmatpush.msrb.mxu3 %v6440_v23  ;;  %v6450_v33 = vld [vmem:[#allocation90_spill] sm:$0xff]  ;;  %v6451_v23 = vld [vmem:[#allocation80_spill] sm:$0xff] }
 0x2ab   :  { %1189 = vmatpush.msrb.mxu0 %v6441_v12  ;;  %1209 = vmatpush.msrb.mxu1 %v6442_v22  ;;  %v6452_v12 = vld [vmem:[#allocation82_spill] sm:$0xff]  ;;  %v6453_v22 = vld [vmem:[#allocation83_spill] sm:$0xff] }
 0x2ac   :  { %1229 = vmatpush.msrb.mxu2 %v6443_v25  ;;  %1249 = vmatpush.msrb.mxu3 %v6444_v18  ;;  %v6454_v25 = vld [vmem:[#allocation91_spill] sm:$0xff]  ;;  %v6455_v18 = vld [vmem:[#allocation84_spill] sm:$0xff] }
 0x2ad   :  { %1190 = vmatpush.msrb.mxu0 %v6445_v11  ;;  %1210 = vmatpush.msrb.mxu1 %v6446_v10  ;;  %v6456_v11 = vld [vmem:[#allocation86_spill] sm:$0xff]  ;;  %v6457_v10 = vld [vmem:[#allocation87_spill] sm:$0xff] }
 0x2ae   :  { %1230 = vmatpush.msrb.mxu2 %v6447_v40  ;;  %1250 = vmatpush.msrb.mxu3 %v6448_v43  ;;  %v6458_v40 = vld [vmem:[#allocation92_spill] sm:$0xff] }
 0x2af   :  { %1191 = vmatpush.msrb.mxu0 %v6449_v27  ;;  %1211 = vmatpush.msrb.mxu1 %v6450_v33  ;;  %v6459_v43 = vld [vmem:[#allocation88_spill] sm:$0xff]  ;;  %v6460_v27 = vld [vmem:[#allocation97_spill] sm:$0xff] }
 0x2b0   :  { %1231 = vmatpush.msrb.mxu2 %v6451_v23  ;;  %1251 = vmatpush.msrb.mxu3 %v6452_v12 }
 0x2b1   :  { %1192 = vmatpush.msrb.mxu0 %v6453_v22  ;;  %1212 = vmatpush.msrb.mxu1 %v6454_v25  ;;  %v6461_v25 = vld [vmem:[#allocation93_spill] sm:$0xff] }
 0x2b2   :  { %1232 = vmatpush.msrb.mxu2 %v6455_v18  ;;  %1252 = vmatpush.msrb.mxu3 %v6456_v11  ;;  %v6462_v18 = vld [vmem:[#allocation94_spill] sm:$0xff] }
 0x2b3   :  { %1193 = vmatpush.msrb.mxu0 %v6457_v10  ;;  %1213 = vmatpush.msrb.mxu1 %v6458_v40 }
 0x2b4   :  { %1233 = vmatpush.msrb.mxu2 %v6459_v43  ;;  %1253 = vmatpush.msrb.mxu3 %v6460_v27 }
 0x2ee   :  { %v884_v33 = vpop.f32.mrf.mxu0  ;;  %v904_v23 = vpop.f32.mrf.mxu1 }
 0x2f5   :  { %v944_v13 = vpop.f32.mrf.mxu3  ;;  %v924_v11 = vpop.f32.mrf.mxu2 }
 0x2f6   :  { %v964_v12 = vpop.f32.mrf.mxu0  ;;  %v984_v17 = vpop.f32.mrf.mxu1 }
 0x2f7   :  { %v965_v22 = vadd.f32 %v964_v12, %v884_v33  ;;  %v985_v14 = vadd.f32 %v984_v17, %v904_v23 }
 0x2f9   :  { %v1027_v15 = vadd.f32 %v965_v22, %v6461_v25  ;;  %v1028_v24 = vadd.f32 %v985_v14, %v6462_v18 }
 0x2fb   :  { %v2053_v20 = vmul.f32 -1.442695, %v1027_v15  ;;  %v2054_v10 = vmul.f32 -1.442695, %v1028_v24  ;;  %v6464_v24 = vld [vmem:[#allocation96_spill] sm:$0xff] }
 0x2fd   :  { %2125 = vpow2.f32 %v2053_v20  ;;  %v1024_v40 = vpop.f32.mrf.mxu3  ;;  %v1004_v17 = vpop.f32.mrf.mxu2 }
 0x2fe   :  { %2127 = vpow2.f32 %v2054_v10  ;;  %v1025_v43 = vadd.f32 %v1024_v40, %v944_v13  ;;  %v1005_v23 = vadd.f32 %v1004_v17, %v924_v11 }
 0x300   :  { %v1030_v27 = vadd.f32 %v1025_v43, %v6463_v21  ;;  %v1029_v20 = vadd.f32 %v1005_v23, %v6464_v24 }
 0x302   :  { %v2055_v16 = vmul.f32 -1.442695, %v1030_v27 }
 0x303   :  { %v2126_v34 = vpop.eup %2125 }
 0x304   :  { %v2128_v26 = vpop.eup %2127  ;;  %v1034_v8 = vadd.f32 1.0, %v2126_v34  ;;  %2129 = vpow2.f32 %v2055_v16 }
 0x305   :  { %v1053_v12 = vadd.f32 1.0, %v2128_v26 }
 0x306   :  { %2131 = vrcp.f32 %v1034_v8  ;;  %v1046_v27 = vand.u32 2147483648, %v1034_v8  ;;  %v1044_v26 = vand.u32 2147483647, %v1034_v8  ;;  %vm1040_vm6 = vweird.f32 %v1034_v8 }
 0x307   :  { %2133 = vrcp.f32 %v1053_v12  ;;  %v1065_v34 = vand.u32 2147483648, %v1053_v12  ;;  %v1063_v11 = vand.u32 2147483647, %v1053_v12  ;;  %vm1059_vm7 = vweird.f32 %v1053_v12 }
 0x308   :  { %v1047_v23 = vor.u32 1.1754944e-38, %v1046_v27  ;;  %vm1045_vm10 = vcmp.eq.f32.partialorder %v1044_v26, 8.507059e+37  ;;  %v6508_v26 = vld [vmem:[#allocation57_spill] sm:$0xff] }
 0x309   :  { %vm1064_vm11 = vcmp.eq.f32.partialorder %v1063_v11, 8.507059e+37  ;;  %v6509_v11 = vld [vmem:[#allocation44_spill] sm:$0xff] }
 0x30a   :  { %v2130_v14 = vpop.eup %2129 }
 0x30b   :  { %v1073_v22 = vadd.f32 1.0, %v2130_v14 }
 0x30c   :  { %v2132_v15 = vpop.eup %2131 }
 0x30d   :  { %v2134_v33 = vpop.eup %2133  ;;  %v1036_v10 = vmul.f32 %v2132_v15, %v1034_v8  ;;  %2135 = vrcp.f32 %v1073_v22  ;;  %vm1041_vm4 = vweird.f32 %v2132_v15  ;;  %vm1079_vm13 = vweird.f32 %v1073_v22 }
 0x30e   :  { %v1055_v13 = vmul.f32 %v2134_v33, %v1053_v12  ;;  %2137 = vtanh.f32 %v1029_v20  ;;  %vm1060_vm5 = vweird.f32 %v2134_v33  ;;  %vm1042_vm8 = vmor %vm1040_vm6, %vm1041_vm4 }
 0x30f   :  { %v1037_v40 = vsub.f32 1.0, %v1036_v10  ;;  %vm1061_vm9 = vmor %vm1059_vm7, %vm1060_vm5  ;;  %v1066_v10 = vor.u32 1.1754944e-38, %v1065_v34 }
 0x310   :  { %v1056_v43 = vsub.f32 1.0, %v1055_v13 }
 0x311   :  { %v1038_v16 = vmul.f32 %v2132_v15, %v1037_v40 }
 0x312   :  { %v1057_v21 = vmul.f32 %v2134_v33, %v1056_v43 }
 0x313   :  { %v2136_v17 = vpop.eup %2135  ;;  %v1039_v14 = vadd.f32 %v2132_v15, %v1038_v16 }
 0x314   :  { %v1058_v24 = vadd.f32 %v2134_v33, %v1057_v21  ;;  %v1075_v18 = vmul.f32 %v2136_v17, %v1073_v22  ;;  %v2138_v20 = vpop.eup %2137  ;;  %vm1080_vm12 = vweird.f32 %v2136_v17  ;;  %v1085_v21 = vand.u32 2147483648, %v1073_v22 }
 0x315   :  { %v1043_v13 = vsel %vm1042_vm8, %v2132_v15, %v1039_v14  ;;  %v1083_v15 = vand.u32 2147483647, %v1073_v22  ;;  %vm1081_vm14 = vmor %vm1079_vm13, %vm1080_vm12  ;;  %v6507_v22 = vld [vmem:[#allocation43_spill] sm:$0xff] }
 0x316   :  { %v1048_v25 = vsel %vm1045_vm10, %v1047_v23, %v1043_v13  ;;  %v1062_v40 = vsel %vm1061_vm9, %v2134_v33, %v1058_v24  ;;  %v1076_v7 = vsub.f32 1.0, %v1075_v18  ;;  %v1086_v34 = vor.u32 1.1754944e-38, %v1085_v21  ;;  %v6511_v14 = vld [vmem:[#allocation47_spill] sm:$0xff]  ;;  %v6512_v23 = vld [vmem:[#allocation61_spill] sm:$0xff]  ;;  %v6514_v13 = vld [vmem:[#allocation50_spill] sm:$0xff] }
 0x317   :  { %v1067_v43 = vsel %vm1064_vm11, %v1066_v10, %v1062_v40  ;;  %v1090_v19 = vmul.f32 %v2138_v20, %v1048_v25  ;;  %vm1084_vm15 = vcmp.eq.f32.partialorder %v1083_v15, 8.507059e+37  ;;  %v6506_v25 = vld [vmem:[#allocation42_spill] sm:$0xff]  ;;  %v6513_v10 = vld [vmem:[#allocation48_spill] sm:$0xff]  ;;  %v6515_v20 = vld [vmem:[#allocation51_spill] sm:$0xff] }
 0x318   :  { %v1089_v35 = vmul.f32 %v1067_v43, %v4350_v9  ;;  %v1077_v16 = vmul.f32 %v2136_v17, %v1076_v7  ;;  %v2057_v9 = vld [vmem:[%s5584_s0 + $0x20] sm:$0xff]  ;;  %v6516_v40 = vld [vmem:[#allocation65_spill] sm:$0xff] }
 0x319   :  { %v6505_v7 = vld [vmem:[#allocation40_spill] sm:$0xff]  ;;  %v6520_v21 = vld [vmem:[#allocation69_spill] sm:$0xff] }
 0x31a   :  { %v4492_v8 = vadd.f32 %v1090_v19, %v1089_v35  ;;  %v1078_v12 = vadd.f32 %v2136_v17, %v1077_v16  ;;  %v6503_v35 = vld [vmem:[#allocation39_spill] sm:$0xff]  ;;  %v6504_v19 = vld [vmem:[#allocation53_spill] sm:$0xff]  ;;  %v6517_v43 = vld [vmem:[#allocation52_spill] sm:$0xff] }
 0x31b   :  { %v6518_v16 = vld [vmem:[#allocation54_spill] sm:$0xff]  ;;  %v6521_v15 = vld [vmem:[#allocation56_spill] sm:$0xff] }
 0x31c   :  { %2139 = vtanh.f32 %v4492_v8  ;;  %v1082_v27 = vsel %vm1081_vm14, %v2136_v17, %v1078_v12  ;;  %v6510_v17 = vld [vmem:[#allocation46_spill] sm:$0xff]  ;;  %v6519_v12 = vld [vmem:[#allocation55_spill] sm:$0xff] }
 0x31d   :  { %v1087_v18 = vsel %vm1084_vm15, %v1086_v34, %v1082_v27  ;;  %v6522_v27 = vld [vmem:[#allocation58_spill] sm:$0xff]  ;;  %v6523_v34 = vld [vmem:[#allocation59_spill] sm:$0xff] }
 0x322   :  { %v2140_v24 = vpop.eup %2139 }
 0x323   :  { %v1093_v33 = vmul.f32 %v2140_v24, %v1087_v18  ;;  %v6524_v24 = vld [vmem:[#allocation73_spill] sm:$0xff]  ;;  %v6525_v18 = vld [vmem:[#allocation60_spill] sm:$0xff] }
 0x325   :  { %2056 = vst [vmem:[%s5587_s6 + $0x18] sm:$0xff] %v1093_v33  ;;  %1114 = vmatmul.f32.vlgmr.msra.gmra.mxu0 %v1093_v33  ;;  %1134 = vmatmul.f32.vlgmr.msra.gmra.mxu1 %v1093_v33 }
 0x326   :  { %1154 = vmatmul.f32.vlgmr.msra.gmra.mxu2 %v1093_v33  ;;  %1174 = vmatmul.f32.vlgmr.msra.gmra.mxu3 %v1093_v33  ;;  %v6526_v33 = vld [vmem:[#allocation62_spill] sm:$0xff] }
 0x327   :  { %1329 = vmatpush.msra.mxu0 %v3577_v36  ;;  %1349 = vmatpush.msra.mxu1 %v3583_v28  ;;  %v6465_v36 = vld [vmem:[#allocation4_spill] sm:$0xff]  ;;  %v6466_v28 = vld [vmem:[#allocation5_spill] sm:$0xff] }
 0x328   :  { %1369 = vmatpush.msra.mxu2 %v3589_v29  ;;  %1389 = vmatpush.msra.mxu3 %v3595_v30  ;;  %v6467_v29 = vld [vmem:[#allocation6_spill] sm:$0xff] }
 0x329   :  { %1330 = vmatpush.msra.mxu0 %v3601_v31  ;;  %1350 = vmatpush.msra.mxu1 %v3607_v32  ;;  %v6468_v30 = vld [vmem:[#allocation14_spill] sm:$0xff]  ;;  %v6469_v31 = vld [vmem:[#allocation7_spill] sm:$0xff]  ;;  %v6470_v32 = vld [vmem:[#allocation8_spill] sm:$0xff] }
 0x32a   :  { %1370 = vmatpush.msra.mxu2 %v3616_v37  ;;  %1390 = vmatpush.msra.mxu3 %v3622_v39  ;;  %v6471_v37 = vld [vmem:[#allocation9_spill] sm:$0xff]  ;;  %v6472_v39 = vld [vmem:[#allocation18_spill] sm:$0xff] }
 0x32b   :  { %1331 = vmatpush.msra.mxu0 %v3628_v41  ;;  %1351 = vmatpush.msra.mxu1 %v3634_v45  ;;  %v6473_v41 = vld [vmem:[#allocation10_spill] sm:$0xff]  ;;  %v6474_v45 = vld [vmem:[#allocation11_spill] sm:$0xff] }
 0x32c   :  { %1371 = vmatpush.msra.mxu2 %v3640_v63  ;;  %1391 = vmatpush.msra.mxu3 %v3646_v62  ;;  %v6475_v63 = vld [vmem:[#allocation12_spill] sm:$0xff]  ;;  %v6476_v62 = vld [vmem:[#allocation22_spill] sm:$0xff] }
 0x32d   :  { %1194 = vmatmul.f32.vlgmr.msrb.gmra.mxu0 %v2057_v9  ;;  %1214 = vmatmul.f32.vlgmr.msrb.gmra.mxu1 %v2057_v9 }
 0x32e   :  { %1234 = vmatmul.f32.vlgmr.msrb.gmra.mxu2 %v2057_v9  ;;  %1254 = vmatmul.f32.vlgmr.msrb.gmra.mxu3 %v2057_v9  ;;  %v6527_v9 = vld [vmem:[#allocation63_spill] sm:$0xff] }
 0x32f   :  { %1332 = vmatpush.msra.mxu0 %v3652_v52  ;;  %1352 = vmatpush.msra.mxu1 %v3658_v57  ;;  %v6477_v52 = vld [vmem:[#allocation13_spill] sm:$0xff]  ;;  %v6478_v57 = vld [vmem:[#allocation15_spill] sm:$0xff] }
 0x330   :  { %1372 = vmatpush.msra.mxu2 %v3664_v48  ;;  %1392 = vmatpush.msra.mxu3 %v3670_v61  ;;  %v6479_v48 = vld [vmem:[#allocation16_spill] sm:$0xff]  ;;  %v6480_v61 = vld [vmem:[#allocation29_spill] sm:$0xff] }
 0x331   :  { %1333 = vmatpush.msra.mxu0 %v3676_v46  ;;  %1353 = vmatpush.msra.mxu1 %v3682_v50  ;;  %v6481_v46 = vld [vmem:[#allocation17_spill] sm:$0xff]  ;;  %v6482_v50 = vld [vmem:[#allocation19_spill] sm:$0xff] }
 0x332   :  { %1373 = vmatpush.msra.mxu2 %v3688_v54  ;;  %1393 = vmatpush.msra.mxu3 %v3694_v60  ;;  %v6483_v54 = vld [vmem:[#allocation20_spill] sm:$0xff]  ;;  %v6484_v60 = vld [vmem:[#allocation33_spill] sm:$0xff] }
 0x333   :  { %1334 = vmatpush.msra.mxu0 %v3700_v49  ;;  %1354 = vmatpush.msra.mxu1 %v3706_v51  ;;  %v6485_v49 = vld [vmem:[#allocation21_spill] sm:$0xff]  ;;  %v6486_v51 = vld [vmem:[#allocation23_spill] sm:$0xff] }
 0x334   :  { %1374 = vmatpush.msra.mxu2 %v3712_v47  ;;  %1394 = vmatpush.msra.mxu3 %v3718_v42  ;;  %v6487_v47 = vld [vmem:[#allocation24_spill] sm:$0xff]  ;;  %v6488_v42 = vld [vmem:[#allocation37_spill] sm:$0xff] }
 0x335   :  { %1335 = vmatpush.msra.mxu0 %v3724_v53  ;;  %1355 = vmatpush.msra.mxu1 %v3730_v59  ;;  %v6489_v53 = vld [vmem:[#allocation25_spill] sm:$0xff]  ;;  %v6490_v59 = vld [vmem:[#allocation26_spill] sm:$0xff] }
 0x336   :  { %1375 = vmatpush.msra.mxu2 %v3736_v55  ;;  %1395 = vmatpush.msra.mxu3 %v3742_v56  ;;  %v6491_v55 = vld [vmem:[#allocation27_spill] sm:$0xff]  ;;  %v6492_v56 = vld [vmem:[#allocation41_spill] sm:$0xff] }
 0x337   :  { %1336 = vmatpush.msra.mxu0 %v3748_v58  ;;  %1356 = vmatpush.msra.mxu1 %v3754_v44  ;;  %v6493_v58 = vld [vmem:[#allocation28_spill] sm:$0xff]  ;;  %v6494_v44 = vld [vmem:[#allocation30_spill] sm:$0xff] }
 0x338   :  { %1376 = vmatpush.msra.mxu2 %v3760_v38  ;;  %1396 = vmatpush.msra.mxu3 %v3766_v0  ;;  %v6495_v38 = vld [vmem:[#allocation31_spill] sm:$0xff]  ;;  %v6496_v0 = vld [vmem:[#allocation45_spill] sm:$0xff] }
 0x339   :  { %1337 = vmatpush.msra.mxu0 %v3772_v1  ;;  %1357 = vmatpush.msra.mxu1 %v3778_v2  ;;  %v6497_v1 = vld [vmem:[#allocation32_spill] sm:$0xff]  ;;  %v6498_v2 = vld [vmem:[#allocation34_spill] sm:$0xff] }
 0x33a   :  { %1377 = vmatpush.msra.mxu2 %v3784_v3  ;;  %1397 = vmatpush.msra.mxu3 %v3790_v4  ;;  %v6499_v3 = vld [vmem:[#allocation35_spill] sm:$0xff]  ;;  %v6500_v4 = vld [vmem:[#allocation49_spill] sm:$0xff] }
 0x33b   :  { %1338 = vmatpush.msra.mxu0 %v3796_v5  ;;  %1358 = vmatpush.msra.mxu1 %v3802_v6  ;;  %v6501_v5 = vld [vmem:[#allocation36_spill] sm:$0xff]  ;;  %v6502_v6 = vld [vmem:[#allocation38_spill] sm:$0xff] }
 0x33c   :  { %1378 = vmatpush.msra.mxu2 %v6465_v36  ;;  %1398 = vmatpush.msra.mxu3 %v6466_v28  ;;  %v6528_v36 = vld [vmem:[#allocation77_spill] sm:$0xff]  ;;  %v6529_v28 = vld [vmem:[#allocation64_spill] sm:$0xff] }
 0x33d   :  { %1339 = vmatpush.msra.mxu0 %v6467_v29  ;;  %1359 = vmatpush.msra.mxu1 %v6468_v30  ;;  %v6530_v29 = vld [vmem:[#allocation66_spill] sm:$0xff]  ;;  %v6531_v30 = vld [vmem:[#allocation67_spill] sm:$0xff] }
 0x33e   :  { %1379 = vmatpush.msra.mxu2 %v6469_v31  ;;  %1399 = vmatpush.msra.mxu3 %v6470_v32  ;;  %v6532_v31 = vld [vmem:[#allocation81_spill] sm:$0xff]  ;;  %v6533_v32 = vld [vmem:[#allocation68_spill] sm:$0xff] }
 0x33f   :  { %1340 = vmatpush.msra.mxu0 %v6471_v37  ;;  %1360 = vmatpush.msra.mxu1 %v6472_v39  ;;  %v6534_v37 = vld [vmem:[#allocation70_spill] sm:$0xff]  ;;  %v6535_v39 = vld [vmem:[#allocation71_spill] sm:$0xff] }
 0x340   :  { %1380 = vmatpush.msra.mxu2 %v6473_v41  ;;  %1400 = vmatpush.msra.mxu3 %v6474_v45  ;;  %v6536_v41 = vld [vmem:[#allocation85_spill] sm:$0xff]  ;;  %v6537_v45 = vld [vmem:[#allocation72_spill] sm:$0xff] }
 0x341   :  { %1341 = vmatpush.msra.mxu0 %v6475_v63  ;;  %1361 = vmatpush.msra.mxu1 %v6476_v62  ;;  %v6538_v63 = vld [vmem:[#allocation74_spill] sm:$0xff]  ;;  %v6539_v62 = vld [vmem:[#allocation75_spill] sm:$0xff] }
 0x342   :  { %1381 = vmatpush.msra.mxu2 %v6477_v52  ;;  %1401 = vmatpush.msra.mxu3 %v6478_v57  ;;  %v6540_v52 = vld [vmem:[#allocation89_spill] sm:$0xff]  ;;  %v6541_v57 = vld [vmem:[#allocation76_spill] sm:$0xff] }
 0x343   :  { %1342 = vmatpush.msra.mxu0 %v6479_v48  ;;  %1362 = vmatpush.msra.mxu1 %v6480_v61  ;;  %v6542_v48 = vld [vmem:[#allocation78_spill] sm:$0xff]  ;;  %v6543_v61 = vld [vmem:[#allocation79_spill] sm:$0xff] }
 0x344   :  { %1382 = vmatpush.msra.mxu2 %v6481_v46  ;;  %1402 = vmatpush.msra.mxu3 %v6482_v50  ;;  %v6544_v46 = vld [vmem:[#allocation90_spill] sm:$0xff]  ;;  %v6545_v50 = vld [vmem:[#allocation80_spill] sm:$0xff] }
 0x345   :  { %1343 = vmatpush.msra.mxu0 %v6483_v54  ;;  %1363 = vmatpush.msra.mxu1 %v6484_v60  ;;  %v6546_v54 = vld [vmem:[#allocation82_spill] sm:$0xff]  ;;  %v6547_v60 = vld [vmem:[#allocation83_spill] sm:$0xff] }
 0x346   :  { %1383 = vmatpush.msra.mxu2 %v6485_v49  ;;  %1403 = vmatpush.msra.mxu3 %v6486_v51  ;;  %v6548_v49 = vld [vmem:[#allocation91_spill] sm:$0xff]  ;;  %v6549_v51 = vld [vmem:[#allocation84_spill] sm:$0xff] }
 0x347   :  { %1344 = vmatpush.msra.mxu0 %v6487_v47  ;;  %1364 = vmatpush.msra.mxu1 %v6488_v42  ;;  %v6550_v47 = vld [vmem:[#allocation86_spill] sm:$0xff]  ;;  %v6551_v42 = vld [vmem:[#allocation87_spill] sm:$0xff] }
 0x348   :  { %1384 = vmatpush.msra.mxu2 %v6489_v53  ;;  %1404 = vmatpush.msra.mxu3 %v6490_v59  ;;  %v6552_v53 = vld [vmem:[#allocation92_spill] sm:$0xff] }
 0x349   :  { %1409 = vmatpush.msrb.mxu0 %v6491_v55  ;;  %1429 = vmatpush.msrb.mxu1 %v6492_v56  ;;  %v6553_v59 = vld [vmem:[#allocation88_spill] sm:$0xff]  ;;  %v6554_v55 = vld [vmem:[#allocation97_spill] sm:$0xff] }
 0x34a   :  { %1449 = vmatpush.msrb.mxu2 %v6493_v58  ;;  %1469 = vmatpush.msrb.mxu3 %v6494_v44 }
 0x34b   :  { %1410 = vmatpush.msrb.mxu0 %v6495_v38  ;;  %1430 = vmatpush.msrb.mxu1 %v6496_v0 }
 0x34c   :  { %1450 = vmatpush.msrb.mxu2 %v6497_v1  ;;  %1470 = vmatpush.msrb.mxu3 %v6498_v2 }
 0x34d   :  { %1411 = vmatpush.msrb.mxu0 %v6499_v3  ;;  %1431 = vmatpush.msrb.mxu1 %v6500_v4  ;;  %v6555_v3 = vld [vmem:[#allocation93_spill] sm:$0xff] }
 0x34e   :  { %1451 = vmatpush.msrb.mxu2 %v6501_v5  ;;  %1471 = vmatpush.msrb.mxu3 %v6502_v6  ;;  %v6556_v5 = vld [vmem:[#allocation94_spill] sm:$0xff] }
 0x34f   :  { %1412 = vmatpush.msrb.mxu0 %v6503_v35  ;;  %1432 = vmatpush.msrb.mxu1 %v6504_v19 }
 0x350   :  { %1452 = vmatpush.msrb.mxu2 %v6505_v7  ;;  %1472 = vmatpush.msrb.mxu3 %v6506_v25 }
 0x351   :  { %1413 = vmatpush.msrb.mxu0 %v6507_v22  ;;  %1433 = vmatpush.msrb.mxu1 %v6508_v26  ;;  %v6557_v26 = vld [vmem:[#allocation95_spill] sm:$0xff] }
 0x352   :  { %1453 = vmatpush.msrb.mxu2 %v6509_v11  ;;  %1473 = vmatpush.msrb.mxu3 %v6510_v17 }
 0x353   :  { %1414 = vmatpush.msrb.mxu0 %v6511_v14  ;;  %1434 = vmatpush.msrb.mxu1 %v6512_v23 }
 0x354   :  { %1454 = vmatpush.msrb.mxu2 %v6513_v10  ;;  %1474 = vmatpush.msrb.mxu3 %v6514_v13 }
 0x355   :  { %1415 = vmatpush.msrb.mxu0 %v6515_v20  ;;  %1435 = vmatpush.msrb.mxu1 %v6516_v40 }
 0x356   :  { %1455 = vmatpush.msrb.mxu2 %v6517_v43  ;;  %1475 = vmatpush.msrb.mxu3 %v6518_v16 }
 0x357   :  { %1416 = vmatpush.msrb.mxu0 %v6519_v12  ;;  %1436 = vmatpush.msrb.mxu1 %v6520_v21  ;;  %v6558_v21 = vld [vmem:[#allocation96_spill] sm:$0xff] }
 0x358   :  { %1456 = vmatpush.msrb.mxu2 %v6521_v15  ;;  %1476 = vmatpush.msrb.mxu3 %v6522_v27 }
 0x359   :  { %1417 = vmatpush.msrb.mxu0 %v6523_v34  ;;  %1437 = vmatpush.msrb.mxu1 %v6524_v24 }
 0x35a   :  { %1457 = vmatpush.msrb.mxu2 %v6525_v18  ;;  %1477 = vmatpush.msrb.mxu3 %v6526_v33 }
 0x35b   :  { %1418 = vmatpush.msrb.mxu0 %v6527_v9  ;;  %1438 = vmatpush.msrb.mxu1 %v6528_v36 }
 0x35c   :  { %1458 = vmatpush.msrb.mxu2 %v6529_v28  ;;  %1478 = vmatpush.msrb.mxu3 %v6530_v29 }
 0x35d   :  { %1419 = vmatpush.msrb.mxu0 %v6531_v30  ;;  %1439 = vmatpush.msrb.mxu1 %v6532_v31 }
 0x35e   :  { %1459 = vmatpush.msrb.mxu2 %v6533_v32  ;;  %1479 = vmatpush.msrb.mxu3 %v6534_v37 }
 0x35f   :  { %1420 = vmatpush.msrb.mxu0 %v6535_v39  ;;  %1440 = vmatpush.msrb.mxu1 %v6536_v41 }
 0x360   :  { %1460 = vmatpush.msrb.mxu2 %v6537_v45  ;;  %1480 = vmatpush.msrb.mxu3 %v6538_v63 }
 0x361   :  { %1421 = vmatpush.msrb.mxu0 %v6539_v62  ;;  %1441 = vmatpush.msrb.mxu1 %v6540_v52 }
 0x362   :  { %1461 = vmatpush.msrb.mxu2 %v6541_v57  ;;  %1481 = vmatpush.msrb.mxu3 %v6542_v48 }
 0x363   :  { %1422 = vmatpush.msrb.mxu0 %v6543_v61  ;;  %1442 = vmatpush.msrb.mxu1 %v6544_v46 }
 0x364   :  { %1462 = vmatpush.msrb.mxu2 %v6545_v50  ;;  %1482 = vmatpush.msrb.mxu3 %v6546_v54 }
 0x365   :  { %1423 = vmatpush.msrb.mxu0 %v6547_v60  ;;  %1443 = vmatpush.msrb.mxu1 %v6548_v49 }
 0x366   :  { %1463 = vmatpush.msrb.mxu2 %v6549_v51  ;;  %1483 = vmatpush.msrb.mxu3 %v6550_v47 }
 0x367   :  { %1424 = vmatpush.msrb.mxu0 %v6551_v42  ;;  %1444 = vmatpush.msrb.mxu1 %v6552_v53 }
 0x368   :  { %1464 = vmatpush.msrb.mxu2 %v6553_v59  ;;  %1484 = vmatpush.msrb.mxu3 %v6554_v55 }
 0x3a2   :  { %v1115_v56 = vpop.f32.mrf.mxu0  ;;  %v1135_v58 = vpop.f32.mrf.mxu1 }
 0x3a9   :  { %v1175_v44 = vpop.f32.mrf.mxu3  ;;  %v1155_v35 = vpop.f32.mrf.mxu2 }
 0x3aa   :  { %v1195_v38 = vpop.f32.mrf.mxu0  ;;  %v1215_v0 = vpop.f32.mrf.mxu1 }
 0x3ab   :  { %v1196_v1 = vadd.f32 %v1195_v38, %v1115_v56  ;;  %v1216_v2 = vadd.f32 %v1215_v0, %v1135_v58  ;;  %v4655_v38 = vld [vmem:[%s5581_s4 + $0x1f0] sm:$0xff]  ;;  %v4661_v0 = vld [vmem:[%s5581_s4 + $0x1f8] sm:$0xff] }
 0x3ad   :  { %v1258_v4 = vadd.f32 %v1196_v1, %v6555_v3  ;;  %v1259_v6 = vadd.f32 %v1216_v2, %v6556_v5  ;;  %v4667_v1 = vld [vmem:[%s5581_s4 + $0x1c0] sm:$0xff]  ;;  %v4673_v2 = vld [vmem:[%s5581_s4 + $0x1c8] sm:$0xff] }
 0x3af   :  { %v2058_v19 = vmul.f32 -1.442695, %v1258_v4  ;;  %v2059_v7 = vmul.f32 -1.442695, %v1259_v6  ;;  %v2062_v4 = vld [vmem:[%s5584_s0 + $0x28] sm:$0xff]  ;;  %v4682_v6 = vld [vmem:[%s5581_s4 + $0x1d0] sm:$0xff] }
 0x3b1   :  { %2141 = vpow2.f32 %v2058_v19  ;;  %v1255_v25 = vpop.f32.mrf.mxu3  ;;  %v1235_v20 = vpop.f32.mrf.mxu2  ;;  %v4694_v19 = vld [vmem:[%s5581_s4 + $0x1a0] sm:$0xff] }
 0x3b2   :  { %2143 = vpow2.f32 %v2059_v7  ;;  %v1256_v22 = vadd.f32 %v1255_v25, %v1175_v44  ;;  %v1236_v40 = vadd.f32 %v1235_v20, %v1155_v35  ;;  %v4649_v44 = vld [vmem:[%s5581_s4 + $0x1e8] sm:$0xff]  ;;  %v4688_v35 = vld [vmem:[%s5581_s4 + $0x1d8] sm:$0xff]  ;;  %v4706_v25 = vld [vmem:[%s5581_s4 + $0x1b0] sm:$0xff] }
 0x3b3   :  { %v4700_v7 = vld [vmem:[%s5581_s4 + $0x1a8] sm:$0xff]  ;;  %v4754_v20 = vld [vmem:[%s5581_s4 + $0x170] sm:$0xff] }
 0x3b4   :  { %v1261_v11 = vadd.f32 %v1256_v22, %v6557_v26  ;;  %v1260_v15 = vadd.f32 %v1236_v40, %v6558_v21  ;;  %v4712_v22 = vld [vmem:[%s5581_s4 + $0x1b8] sm:$0xff] }
 0x3b5   :  { %v4760_v40 = vld [vmem:[%s5581_s4 + $0x178] sm:$0xff] }
 0x3b6   :  { %v2060_v17 = vmul.f32 -1.442695, %v1261_v11  ;;  %v4718_v11 = vld [vmem:[%s5581_s4 + $0x180] sm:$0xff] }
 0x3b7   :  { %v2142_v14 = vpop.eup %2141 }
 0x3b8   :  { %v2144_v23 = vpop.eup %2143  ;;  %v1265_v10 = vadd.f32 1.0, %v2142_v14  ;;  %2145 = vpow2.f32 %v2060_v17  ;;  %v4724_v17 = vld [vmem:[%s5581_s4 + $0x188] sm:$0xff]  ;;  %v4730_v14 = vld [vmem:[%s5581_s4 + $0x190] sm:$0xff] }
 0x3b9   :  { %v1284_v13 = vadd.f32 1.0, %v2144_v23  ;;  %v4736_v23 = vld [vmem:[%s5581_s4 + $0x198] sm:$0xff] }
 0x3ba   :  { %2147 = vrcp.f32 %v1265_v10  ;;  %v1277_v9 = vand.u32 2147483648, %v1265_v10  ;;  %v1275_v29 = vand.u32 2147483647, %v1265_v10  ;;  %vm1271_vm2 = vweird.f32 %v1265_v10 }
 0x3bb   :  { %2149 = vrcp.f32 %v1284_v13  ;;  %v1296_v36 = vand.u32 2147483648, %v1284_v13  ;;  %v1294_v31 = vand.u32 2147483647, %v1284_v13  ;;  %vm1290_vm3 = vweird.f32 %v1284_v13 }
 0x3bc   :  { %v1278_v39 = vor.u32 1.1754944e-38, %v1277_v9  ;;  %vm1276_vm6 = vcmp.eq.f32.partialorder %v1275_v29, 8.507059e+37  ;;  %v4820_v9 = vld [vmem:[%s5581_s4 + $0x108] sm:$0xff]  ;;  %v4838_v29 = vld [vmem:[%s5581_s4 + $0xe0] sm:$0xff] }
 0x3bd   :  { %v1297_v63 = vor.u32 1.1754944e-38, %v1296_v36  ;;  %vm1295_vm7 = vcmp.eq.f32.partialorder %v1294_v31, 8.507059e+37  ;;  %v4826_v36 = vld [vmem:[%s5581_s4 + $0x110] sm:$0xff] }
 0x3be   :  { %v2146_v43 = vpop.eup %2145  ;;  %v4850_v31 = vld [vmem:[%s5581_s4 + $0xf0] sm:$0xff] }
 0x3bf   :  { %v1304_v16 = vadd.f32 1.0, %v2146_v43  ;;  %v4766_v43 = vld [vmem:[%s5581_s4 + $0x140] sm:$0xff] }
 0x3c0   :  { %v2148_v12 = vpop.eup %2147 }
 0x3c1   :  { %v2150_v27 = vpop.eup %2149  ;;  %v1267_v34 = vmul.f32 %v2148_v12, %v1265_v10  ;;  %2151 = vrcp.f32 %v1304_v16  ;;  %vm1272_vm0 = vweird.f32 %v2148_v12  ;;  %v1316_v47 = vand.u32 2147483648, %v1304_v16  ;;  %v4742_v10 = vld [vmem:[%s5581_s4 + $0x160] sm:$0xff] }
 0x3c2   :  { %v1286_v24 = vmul.f32 %v2150_v27, %v1284_v13  ;;  %2153 = vtanh.f32 %v1260_v15  ;;  %vm1291_vm1 = vweird.f32 %v2150_v27  ;;  %vm1273_vm4 = vmor %vm1271_vm2, %vm1272_vm0  ;;  %vm1310_vm9 = vweird.f32 %v1304_v16  ;;  %v4748_v13 = vld [vmem:[%s5581_s4 + $0x168] sm:$0xff]  ;;  %v4784_v15 = vld [vmem:[%s5581_s4 + $0x158] sm:$0xff] }
 0x3c3   :  { %v1268_v18 = vsub.f32 1.0, %v1267_v34  ;;  %vm1292_vm5 = vmor %vm1290_vm3, %vm1291_vm1  ;;  %v1314_v42 = vand.u32 2147483647, %v1304_v16  ;;  %v1317_v59 = vor.u32 1.1754944e-38, %v1316_v47  ;;  %v4796_v34 = vld [vmem:[%s5581_s4 + $0x128] sm:$0xff]  ;;  %v4952_v47 = vld [vmem:[%s5581_s4 + $0x78] sm:$0xff] }
 0x3c4   :  { %v1287_v33 = vsub.f32 1.0, %v1286_v24  ;;  %v4802_v24 = vld [vmem:[%s5581_s4 + $0x130] sm:$0xff]  ;;  %6572 = vst [vmem:[#allocation15_spill] sm:$0xff] %v4952_v47 }
 0x3c5   :  { %v1269_v28 = vmul.f32 %v2148_v12, %v1268_v18  ;;  %vm1315_vm11 = vcmp.eq.f32.partialorder %v1314_v42, 8.507059e+37  ;;  %v4808_v18 = vld [vmem:[%s5581_s4 + $0x138] sm:$0xff]  ;;  %v4958_v42 = vld [vmem:[%s5581_s4 + $0x40] sm:$0xff] }
 0x3c6   :  { %v1288_v30 = vmul.f32 %v2150_v27, %v1287_v33  ;;  %v4814_v33 = vld [vmem:[%s5581_s4 + $0x100] sm:$0xff]  ;;  %6573 = vst [vmem:[#allocation16_spill] sm:$0xff] %v4958_v42 }
 0x3c7   :  { %v2152_v32 = vpop.eup %2151  ;;  %v1270_v37 = vadd.f32 %v2148_v12, %v1269_v28  ;;  %v4832_v28 = vld [vmem:[%s5581_s4 + $0x118] sm:$0xff] }
 0x3c8   :  { %v1289_v41 = vadd.f32 %v2150_v27, %v1288_v30  ;;  %v1306_v45 = vmul.f32 %v2152_v32, %v1304_v16  ;;  %v2154_v52 = vpop.eup %2153  ;;  %vm1311_vm8 = vweird.f32 %v2152_v32  ;;  %v4772_v16 = vld [vmem:[%s5581_s4 + $0x148] sm:$0xff] }
 0x3c9   :  { %v1274_v62 = vsel %vm1273_vm4, %v2148_v12, %v1270_v37  ;;  %vm1312_vm10 = vmor %vm1310_vm9, %vm1311_vm8  ;;  %v4778_v12 = vld [vmem:[%s5581_s4 + $0x150] sm:$0xff]  ;;  %v4844_v30 = vld [vmem:[%s5581_s4 + $0xe8] sm:$0xff] }
 0x3ca   :  { %v1279_v57 = vsel %vm1276_vm6, %v1278_v39, %v1274_v62  ;;  %v1293_v48 = vsel %vm1292_vm5, %v2150_v27, %v1289_v41  ;;  %v1307_v61 = vsub.f32 1.0, %v1306_v45  ;;  %v4790_v27 = vld [vmem:[%s5581_s4 + $0x120] sm:$0xff]  ;;  %v4868_v39 = vld [vmem:[%s5581_s4 + $0xc8] sm:$0xff]  ;;  %v4874_v41 = vld [vmem:[%s5581_s4 + $0xd0] sm:$0xff] }
 0x3cb   :  { %v1298_v46 = vsel %vm1295_vm7, %v1297_v63, %v1293_v48  ;;  %v1321_v50 = vmul.f32 %v2154_v52, %v1279_v57  ;;  %v4862_v37 = vld [vmem:[%s5581_s4 + $0xc0] sm:$0xff]  ;;  %6559 = vst [vmem:[#allocation4_spill] sm:$0xff] %v4874_v41  ;;  %v4880_v45 = vld [vmem:[%s5581_s4 + $0xd8] sm:$0xff]  ;;  %v4892_v62 = vld [vmem:[%s5581_s4 + $0xa8] sm:$0xff] }
 0x3cc   :  { %v1320_v54 = vmul.f32 %v1298_v46, %v4492_v8  ;;  %v1308_v60 = vmul.f32 %v2152_v32, %v1307_v61  ;;  %v4643_v8 = vld [vmem:[%s5581_s4 + $0x1e0] sm:$0xff]  ;;  %6560 = vst [vmem:[#allocation5_spill] sm:$0xff] %v4880_v45  ;;  %v4898_v52 = vld [vmem:[%s5581_s4 + $0xb0] sm:$0xff]  ;;  %v4904_v57 = vld [vmem:[%s5581_s4 + $0xb8] sm:$0xff] }
 0x3cd   :  { %v4886_v63 = vld [vmem:[%s5581_s4 + $0xa0] sm:$0xff]  ;;  %6562 = vst [vmem:[#allocation14_spill] sm:$0xff] %v4892_v62  ;;  %v4916_v61 = vld [vmem:[%s5581_s4 + $0x88] sm:$0xff]  ;;  %v4922_v46 = vld [vmem:[%s5581_s4 + $0x90] sm:$0xff] }
 0x3ce   :  { %v4634_v49 = vadd.f32 %v1321_v50, %v1320_v54  ;;  %v1309_v51 = vadd.f32 %v2152_v32, %v1308_v60  ;;  %6561 = vst [vmem:[#allocation6_spill] sm:$0xff] %v4886_v63  ;;  %v4910_v48 = vld [vmem:[%s5581_s4 + $0x80] sm:$0xff]  ;;  %v4928_v50 = vld [vmem:[%s5581_s4 + $0x98] sm:$0xff]  ;;  %v4940_v60 = vld [vmem:[%s5581_s4 + $0x68] sm:$0xff] }
 0x3cf   :  { %6563 = vst [vmem:[#allocation7_spill] sm:$0xff] %v4898_v52  ;;  %v4934_v54 = vld [vmem:[%s5581_s4 + $0x60] sm:$0xff] }
 0x3d0   :  { %2155 = vtanh.f32 %v4634_v49  ;;  %v1313_v53 = vsel %vm1312_vm10, %v2152_v32, %v1309_v51  ;;  %v4856_v32 = vld [vmem:[%s5581_s4 + $0xf8] sm:$0xff]  ;;  %6564 = vst [vmem:[#allocation8_spill] sm:$0xff] %v4904_v57  ;;  %v4946_v51 = vld [vmem:[%s5581_s4 + $0x70] sm:$0xff] }
 0x3d1   :  { %v1318_v56 = vsel %vm1315_vm11, %v1317_v59, %v1313_v53  ;;  %6565 = vst [vmem:[#allocation9_spill] sm:$0xff] %v4910_v48  ;;  %v4964_v53 = vld [vmem:[%s5581_s4 + $0x48] sm:$0xff]  ;;  %v4970_v59 = vld [vmem:[%s5581_s4 + $0x50] sm:$0xff] }
 0x3d2   :  { %6566 = vst [vmem:[#allocation18_spill] sm:$0xff] %v4916_v61 }
 0x3d3   :  { %6567 = vst [vmem:[#allocation10_spill] sm:$0xff] %v4922_v46 }
 0x3d4   :  { %6568 = vst [vmem:[#allocation11_spill] sm:$0xff] %v4928_v50 }
 0x3d5   :  { %6569 = vst [vmem:[#allocation12_spill] sm:$0xff] %v4934_v54 }
 0x3d6   :  { %v2156_v55 = vpop.eup %2155  ;;  %6570 = vst [vmem:[#allocation22_spill] sm:$0xff] %v4940_v60 }
 0x3d7   :  { %v1324_v58 = vmul.f32 %v2156_v55, %v1318_v56  ;;  %6571 = vst [vmem:[#allocation13_spill] sm:$0xff] %v4946_v51  ;;  %v4976_v55 = vld [vmem:[%s5581_s4 + $0x58] sm:$0xff]  ;;  %v4982_v56 = vld [vmem:[%s5581_s4 + $0x20] sm:$0xff] }
 0x3d8   :  { %6574 = vst [vmem:[#allocation29_spill] sm:$0xff] %v4964_v53 }
 0x3d9   :  { %2061 = vst [vmem:[%s5587_s6 + $0x20] sm:$0xff] %v1324_v58  ;;  %1345 = vmatmul.f32.vlgmr.msra.gmra.mxu0 %v1324_v58  ;;  %1365 = vmatmul.f32.vlgmr.msra.gmra.mxu1 %v1324_v58 }
 0x3da   :  { %1385 = vmatmul.f32.vlgmr.msra.gmra.mxu2 %v1324_v58  ;;  %1405 = vmatmul.f32.vlgmr.msra.gmra.mxu3 %v1324_v58  ;;  %6575 = vst [vmem:[#allocation17_spill] sm:$0xff] %v4970_v59  ;;  %v4988_v58 = vld [vmem:[%s5581_s4 + $0x28] sm:$0xff] }
 0x3db   :  { %1560 = vmatpush.msra.mxu0 %v4643_v8  ;;  %1580 = vmatpush.msra.mxu1 %v4649_v44  ;;  %6576 = vst [vmem:[#allocation19_spill] sm:$0xff] %v4976_v55 }
 0x3dc   :  { %1600 = vmatpush.msra.mxu2 %v4655_v38  ;;  %1620 = vmatpush.msra.mxu3 %v4661_v0  ;;  %6577 = vst [vmem:[#allocation20_spill] sm:$0xff] %v4982_v56 }
 0x3dd   :  { %1561 = vmatpush.msra.mxu0 %v4667_v1  ;;  %1581 = vmatpush.msra.mxu1 %v4673_v2  ;;  %6578 = vst [vmem:[#allocation33_spill] sm:$0xff] %v4988_v58 }
 0x3de   :  { %1601 = vmatpush.msra.mxu2 %v4682_v6  ;;  %1621 = vmatpush.msra.mxu3 %v4688_v35 }
 0x3df   :  { %1562 = vmatpush.msra.mxu0 %v4694_v19  ;;  %1582 = vmatpush.msra.mxu1 %v4700_v7 }
 0x3e0   :  { %1602 = vmatpush.msra.mxu2 %v4706_v25  ;;  %1622 = vmatpush.msra.mxu3 %v4712_v22 }
 0x3e1   :  { %1425 = vmatmul.f32.vlgmr.msrb.gmra.mxu0 %v2062_v4  ;;  %1445 = vmatmul.f32.vlgmr.msrb.gmra.mxu1 %v2062_v4 }
 0x3e2   :  { %1465 = vmatmul.f32.vlgmr.msrb.gmra.mxu2 %v2062_v4  ;;  %1485 = vmatmul.f32.vlgmr.msrb.gmra.mxu3 %v2062_v4  ;;  %v4994_v4 = vld [vmem:[%s5581_s4 + $0x30] sm:$0xff] }
 0x3e3   :  { %1563 = vmatpush.msra.mxu0 %v4718_v11  ;;  %1583 = vmatpush.msra.mxu1 %v4724_v17  ;;  %6579 = vst [vmem:[#allocation21_spill] sm:$0xff] %v4994_v4 }
 0x3e4   :  { %1603 = vmatpush.msra.mxu2 %v4730_v14  ;;  %1623 = vmatpush.msra.mxu3 %v4736_v23 }
 0x3e5   :  { %1564 = vmatpush.msra.mxu0 %v4742_v10  ;;  %1584 = vmatpush.msra.mxu1 %v4748_v13 }
 0x3e6   :  { %1604 = vmatpush.msra.mxu2 %v4754_v20  ;;  %1624 = vmatpush.msra.mxu3 %v4760_v40 }
 0x3e7   :  { %1565 = vmatpush.msra.mxu0 %v4766_v43  ;;  %1585 = vmatpush.msra.mxu1 %v4772_v16 }
 0x3e8   :  { %1605 = vmatpush.msra.mxu2 %v4778_v12  ;;  %1625 = vmatpush.msra.mxu3 %v4784_v15 }
 0x3e9   :  { %1566 = vmatpush.msra.mxu0 %v4790_v27  ;;  %1586 = vmatpush.msra.mxu1 %v4796_v34 }
 0x3ea   :  { %1606 = vmatpush.msra.mxu2 %v4802_v24  ;;  %1626 = vmatpush.msra.mxu3 %v4808_v18 }
 0x3eb   :  { %1567 = vmatpush.msra.mxu0 %v4814_v33  ;;  %1587 = vmatpush.msra.mxu1 %v4820_v9 }
 0x3ec   :  { %1607 = vmatpush.msra.mxu2 %v4826_v36  ;;  %1627 = vmatpush.msra.mxu3 %v4832_v28 }
 0x3ed   :  { %1568 = vmatpush.msra.mxu0 %v4838_v29  ;;  %1588 = vmatpush.msra.mxu1 %v4844_v30 }
 0x3ee   :  { %1608 = vmatpush.msra.mxu2 %v4850_v31  ;;  %1628 = vmatpush.msra.mxu3 %v4856_v32 }
 0x3ef   :  { %1569 = vmatpush.msra.mxu0 %v4862_v37  ;;  %1589 = vmatpush.msra.mxu1 %v4868_v39 }
 0x3f0   :  { %1609 = vmatpush.msra.mxu2 %v4874_v41  ;;  %1629 = vmatpush.msra.mxu3 %v4880_v45 }
 0x3f1   :  { %1570 = vmatpush.msra.mxu0 %v4886_v63  ;;  %1590 = vmatpush.msra.mxu1 %v4892_v62 }
 0x3f2   :  { %1610 = vmatpush.msra.mxu2 %v4898_v52  ;;  %1630 = vmatpush.msra.mxu3 %v4904_v57 }
 0x3f3   :  { %1571 = vmatpush.msra.mxu0 %v4910_v48  ;;  %1591 = vmatpush.msra.mxu1 %v4916_v61 }
 0x3f4   :  { %1611 = vmatpush.msra.mxu2 %v4922_v46  ;;  %1631 = vmatpush.msra.mxu3 %v4928_v50 }
 0x3f5   :  { %1572 = vmatpush.msra.mxu0 %v4934_v54  ;;  %1592 = vmatpush.msra.mxu1 %v4940_v60 }
 0x3f6   :  { %1612 = vmatpush.msra.mxu2 %v4946_v51  ;;  %1632 = vmatpush.msra.mxu3 %v4952_v47 }
 0x3f7   :  { %1573 = vmatpush.msra.mxu0 %v4958_v42  ;;  %1593 = vmatpush.msra.mxu1 %v4964_v53 }
 0x3f8   :  { %1613 = vmatpush.msra.mxu2 %v4970_v59  ;;  %1633 = vmatpush.msra.mxu3 %v4976_v55  ;;  %v5000_v55 = vld [vmem:[%s5581_s4 + $0x38] sm:$0xff] }
 0x3f9   :  { %1574 = vmatpush.msra.mxu0 %v4982_v56  ;;  %1594 = vmatpush.msra.mxu1 %v4988_v58  ;;  %6580 = vst [vmem:[#allocation23_spill] sm:$0xff] %v5000_v55  ;;  %v5006_v56 = vld [vmem:[%s5581_s4] sm:$0xff]  ;;  %v5012_v58 = vld [vmem:[%s5581_s4 + $0x8] sm:$0xff] }
 0x3fa   :  { %1614 = vmatpush.msra.mxu2 %v4994_v4  ;;  %1634 = vmatpush.msra.mxu3 %v5000_v55  ;;  %6581 = vst [vmem:[#allocation24_spill] sm:$0xff] %v5006_v56  ;;  %v5018_v4 = vld [vmem:[%s5581_s4 + $0x10] sm:$0xff]  ;;  %v5024_v55 = vld [vmem:[%s5581_s4 + $0x18] sm:$0xff] }
 0x3fb   :  { %1575 = vmatpush.msra.mxu0 %v5006_v56  ;;  %6582 = vst [vmem:[#allocation37_spill] sm:$0xff] %v5012_v58  ;;  %1595 = vmatpush.msra.mxu1 %v5012_v58  ;;  %v5030_v56 = vld [vmem:[%s5582_s3 + $0x1e0] sm:$0xff]  ;;  %v5036_v58 = vld [vmem:[%s5582_s3 + $0x1e8] sm:$0xff] }
 0x3fc   :  { %6583 = vst [vmem:[#allocation25_spill] sm:$0xff] %v5018_v4  ;;  %1615 = vmatpush.msra.mxu2 %v5018_v4  ;;  %1635 = vmatpush.msra.mxu3 %v5024_v55  ;;  %v5042_v4 = vld [vmem:[%s5582_s3 + $0x1f0] sm:$0xff] }
 0x3fd   :  { %6584 = vst [vmem:[#allocation26_spill] sm:$0xff] %v5024_v55  ;;  %1640 = vmatpush.msrb.mxu0 %v5030_v56  ;;  %1660 = vmatpush.msrb.mxu1 %v5036_v58  ;;  %v5048_v55 = vld [vmem:[%s5582_s3 + $0x1f8] sm:$0xff] }
 0x3fe   :  { %6585 = vst [vmem:[#allocation27_spill] sm:$0xff] %v5030_v56  ;;  %1680 = vmatpush.msrb.mxu2 %v5042_v4  ;;  %1700 = vmatpush.msrb.mxu3 %v5048_v55  ;;  %v5054_v56 = vld [vmem:[%s5582_s3 + $0x1c0] sm:$0xff] }
 0x3ff   :  { %6586 = vst [vmem:[#allocation41_spill] sm:$0xff] %v5036_v58  ;;  %1641 = vmatpush.msrb.mxu0 %v5054_v56  ;;  %v5060_v58 = vld [vmem:[%s5582_s3 + $0x1c8] sm:$0xff] }
 0x400   :  { %6587 = vst [vmem:[#allocation28_spill] sm:$0xff] %v5042_v4  ;;  %1661 = vmatpush.msrb.mxu1 %v5060_v58  ;;  %v5066_v4 = vld [vmem:[%s5582_s3 + $0x1d0] sm:$0xff] }
 0x401   :  { %6588 = vst [vmem:[#allocation30_spill] sm:$0xff] %v5048_v55  ;;  %1681 = vmatpush.msrb.mxu2 %v5066_v4  ;;  %v5072_v55 = vld [vmem:[%s5582_s3 + $0x1d8] sm:$0xff] }
 0x402   :  { %6589 = vst [vmem:[#allocation31_spill] sm:$0xff] %v5054_v56  ;;  %1701 = vmatpush.msrb.mxu3 %v5072_v55  ;;  %v5078_v56 = vld [vmem:[%s5582_s3 + $0x1a0] sm:$0xff] }
 0x403   :  { %6590 = vst [vmem:[#allocation45_spill] sm:$0xff] %v5060_v58  ;;  %1642 = vmatpush.msrb.mxu0 %v5078_v56  ;;  %v5084_v58 = vld [vmem:[%s5582_s3 + $0x1a8] sm:$0xff] }
 0x404   :  { %6591 = vst [vmem:[#allocation32_spill] sm:$0xff] %v5066_v4  ;;  %1662 = vmatpush.msrb.mxu1 %v5084_v58  ;;  %v5090_v4 = vld [vmem:[%s5582_s3 + $0x1b0] sm:$0xff] }
 0x405   :  { %6592 = vst [vmem:[#allocation34_spill] sm:$0xff] %v5072_v55  ;;  %1682 = vmatpush.msrb.mxu2 %v5090_v4  ;;  %v5096_v55 = vld [vmem:[%s5582_s3 + $0x1b8] sm:$0xff] }
 0x406   :  { %6593 = vst [vmem:[#allocation35_spill] sm:$0xff] %v5078_v56  ;;  %1702 = vmatpush.msrb.mxu3 %v5096_v55  ;;  %v5102_v56 = vld [vmem:[%s5582_s3 + $0x180] sm:$0xff] }
 0x407   :  { %6594 = vst [vmem:[#allocation49_spill] sm:$0xff] %v5084_v58  ;;  %1643 = vmatpush.msrb.mxu0 %v5102_v56  ;;  %v5108_v58 = vld [vmem:[%s5582_s3 + $0x188] sm:$0xff] }
 0x408   :  { %6595 = vst [vmem:[#allocation36_spill] sm:$0xff] %v5090_v4  ;;  %1663 = vmatpush.msrb.mxu1 %v5108_v58  ;;  %v5114_v4 = vld [vmem:[%s5582_s3 + $0x190] sm:$0xff] }
 0x409   :  { %6596 = vst [vmem:[#allocation38_spill] sm:$0xff] %v5096_v55  ;;  %1683 = vmatpush.msrb.mxu2 %v5114_v4  ;;  %v5120_v55 = vld [vmem:[%s5582_s3 + $0x198] sm:$0xff] }
 0x40a   :  { %6597 = vst [vmem:[#allocation39_spill] sm:$0xff] %v5102_v56  ;;  %1703 = vmatpush.msrb.mxu3 %v5120_v55  ;;  %v5126_v56 = vld [vmem:[%s5582_s3 + $0x160] sm:$0xff] }
 0x40b   :  { %6598 = vst [vmem:[#allocation53_spill] sm:$0xff] %v5108_v58  ;;  %1644 = vmatpush.msrb.mxu0 %v5126_v56  ;;  %v5132_v58 = vld [vmem:[%s5582_s3 + $0x168] sm:$0xff] }
 0x40c   :  { %6599 = vst [vmem:[#allocation40_spill] sm:$0xff] %v5114_v4  ;;  %1664 = vmatpush.msrb.mxu1 %v5132_v58  ;;  %v5138_v4 = vld [vmem:[%s5582_s3 + $0x170] sm:$0xff] }
 0x40d   :  { %6600 = vst [vmem:[#allocation42_spill] sm:$0xff] %v5120_v55  ;;  %1684 = vmatpush.msrb.mxu2 %v5138_v4  ;;  %v5144_v55 = vld [vmem:[%s5582_s3 + $0x178] sm:$0xff] }
 0x40e   :  { %6601 = vst [vmem:[#allocation43_spill] sm:$0xff] %v5126_v56  ;;  %1704 = vmatpush.msrb.mxu3 %v5144_v55  ;;  %v5150_v56 = vld [vmem:[%s5582_s3 + $0x140] sm:$0xff] }
 0x40f   :  { %6602 = vst [vmem:[#allocation57_spill] sm:$0xff] %v5132_v58  ;;  %1645 = vmatpush.msrb.mxu0 %v5150_v56  ;;  %v5156_v58 = vld [vmem:[%s5582_s3 + $0x148] sm:$0xff] }
 0x410   :  { %6603 = vst [vmem:[#allocation44_spill] sm:$0xff] %v5138_v4  ;;  %1665 = vmatpush.msrb.mxu1 %v5156_v58  ;;  %v5162_v4 = vld [vmem:[%s5582_s3 + $0x150] sm:$0xff] }
 0x411   :  { %6604 = vst [vmem:[#allocation46_spill] sm:$0xff] %v5144_v55  ;;  %1685 = vmatpush.msrb.mxu2 %v5162_v4  ;;  %v5168_v55 = vld [vmem:[%s5582_s3 + $0x158] sm:$0xff] }
 0x412   :  { %6605 = vst [vmem:[#allocation47_spill] sm:$0xff] %v5150_v56  ;;  %1705 = vmatpush.msrb.mxu3 %v5168_v55  ;;  %v5174_v56 = vld [vmem:[%s5582_s3 + $0x120] sm:$0xff] }
 0x413   :  { %6606 = vst [vmem:[#allocation61_spill] sm:$0xff] %v5156_v58  ;;  %1646 = vmatpush.msrb.mxu0 %v5174_v56  ;;  %v5180_v58 = vld [vmem:[%s5582_s3 + $0x128] sm:$0xff] }
 0x414   :  { %6607 = vst [vmem:[#allocation48_spill] sm:$0xff] %v5162_v4  ;;  %1666 = vmatpush.msrb.mxu1 %v5180_v58  ;;  %v5186_v4 = vld [vmem:[%s5582_s3 + $0x130] sm:$0xff] }
 0x415   :  { %6608 = vst [vmem:[#allocation50_spill] sm:$0xff] %v5168_v55  ;;  %1686 = vmatpush.msrb.mxu2 %v5186_v4  ;;  %v5192_v55 = vld [vmem:[%s5582_s3 + $0x138] sm:$0xff] }
 0x416   :  { %6609 = vst [vmem:[#allocation51_spill] sm:$0xff] %v5174_v56  ;;  %1706 = vmatpush.msrb.mxu3 %v5192_v55  ;;  %v5198_v56 = vld [vmem:[%s5582_s3 + $0x100] sm:$0xff] }
 0x417   :  { %6610 = vst [vmem:[#allocation65_spill] sm:$0xff] %v5180_v58  ;;  %1647 = vmatpush.msrb.mxu0 %v5198_v56  ;;  %v5204_v58 = vld [vmem:[%s5582_s3 + $0x108] sm:$0xff] }
 0x418   :  { %6611 = vst [vmem:[#allocation52_spill] sm:$0xff] %v5186_v4  ;;  %1667 = vmatpush.msrb.mxu1 %v5204_v58  ;;  %v5210_v4 = vld [vmem:[%s5582_s3 + $0x110] sm:$0xff] }
 0x419   :  { %6612 = vst [vmem:[#allocation54_spill] sm:$0xff] %v5192_v55  ;;  %1687 = vmatpush.msrb.mxu2 %v5210_v4  ;;  %v5216_v55 = vld [vmem:[%s5582_s3 + $0x118] sm:$0xff] }
 0x41a   :  { %6613 = vst [vmem:[#allocation55_spill] sm:$0xff] %v5198_v56  ;;  %1707 = vmatpush.msrb.mxu3 %v5216_v55  ;;  %v5222_v56 = vld [vmem:[%s5582_s3 + $0xe0] sm:$0xff] }
 0x41b   :  { %6614 = vst [vmem:[#allocation69_spill] sm:$0xff] %v5204_v58  ;;  %1648 = vmatpush.msrb.mxu0 %v5222_v56  ;;  %v5228_v58 = vld [vmem:[%s5582_s3 + $0xe8] sm:$0xff] }
 0x41c   :  { %6615 = vst [vmem:[#allocation56_spill] sm:$0xff] %v5210_v4  ;;  %1668 = vmatpush.msrb.mxu1 %v5228_v58  ;;  %v5234_v4 = vld [vmem:[%s5582_s3 + $0xf0] sm:$0xff] }
 0x41d   :  { %6616 = vst [vmem:[#allocation58_spill] sm:$0xff] %v5216_v55  ;;  %1688 = vmatpush.msrb.mxu2 %v5234_v4  ;;  %v5240_v55 = vld [vmem:[%s5582_s3 + $0xf8] sm:$0xff] }
 0x41e   :  { %6617 = vst [vmem:[#allocation59_spill] sm:$0xff] %v5222_v56  ;;  %1708 = vmatpush.msrb.mxu3 %v5240_v55  ;;  %v5246_v56 = vld [vmem:[%s5582_s3 + $0xc0] sm:$0xff] }
 0x41f   :  { %6618 = vst [vmem:[#allocation73_spill] sm:$0xff] %v5228_v58  ;;  %1649 = vmatpush.msrb.mxu0 %v5246_v56  ;;  %v5252_v58 = vld [vmem:[%s5582_s3 + $0xc8] sm:$0xff] }
 0x420   :  { %6619 = vst [vmem:[#allocation60_spill] sm:$0xff] %v5234_v4  ;;  %1669 = vmatpush.msrb.mxu1 %v5252_v58  ;;  %v5258_v4 = vld [vmem:[%s5582_s3 + $0xd0] sm:$0xff] }
 0x421   :  { %6620 = vst [vmem:[#allocation62_spill] sm:$0xff] %v5240_v55  ;;  %1689 = vmatpush.msrb.mxu2 %v5258_v4  ;;  %v5264_v55 = vld [vmem:[%s5582_s3 + $0xd8] sm:$0xff] }
 0x422   :  { %6621 = vst [vmem:[#allocation63_spill] sm:$0xff] %v5246_v56  ;;  %1709 = vmatpush.msrb.mxu3 %v5264_v55  ;;  %v5270_v56 = vld [vmem:[%s5582_s3 + $0xa0] sm:$0xff] }
 0x423   :  { %6622 = vst [vmem:[#allocation77_spill] sm:$0xff] %v5252_v58  ;;  %1650 = vmatpush.msrb.mxu0 %v5270_v56  ;;  %v5276_v58 = vld [vmem:[%s5582_s3 + $0xa8] sm:$0xff] }
 0x424   :  { %6623 = vst [vmem:[#allocation64_spill] sm:$0xff] %v5258_v4  ;;  %1670 = vmatpush.msrb.mxu1 %v5276_v58  ;;  %v5282_v4 = vld [vmem:[%s5582_s3 + $0xb0] sm:$0xff] }
 0x425   :  { %6624 = vst [vmem:[#allocation66_spill] sm:$0xff] %v5264_v55  ;;  %1690 = vmatpush.msrb.mxu2 %v5282_v4  ;;  %v5288_v55 = vld [vmem:[%s5582_s3 + $0xb8] sm:$0xff] }
 0x426   :  { %6625 = vst [vmem:[#allocation67_spill] sm:$0xff] %v5270_v56  ;;  %1710 = vmatpush.msrb.mxu3 %v5288_v55  ;;  %v5294_v56 = vld [vmem:[%s5582_s3 + $0x80] sm:$0xff] }
 0x427   :  { %6626 = vst [vmem:[#allocation81_spill] sm:$0xff] %v5276_v58  ;;  %1651 = vmatpush.msrb.mxu0 %v5294_v56  ;;  %v5300_v58 = vld [vmem:[%s5582_s3 + $0x88] sm:$0xff] }
 0x428   :  { %6627 = vst [vmem:[#allocation68_spill] sm:$0xff] %v5282_v4  ;;  %1671 = vmatpush.msrb.mxu1 %v5300_v58  ;;  %v5306_v4 = vld [vmem:[%s5582_s3 + $0x90] sm:$0xff] }
 0x429   :  { %6628 = vst [vmem:[#allocation70_spill] sm:$0xff] %v5288_v55  ;;  %1691 = vmatpush.msrb.mxu2 %v5306_v4  ;;  %v5312_v55 = vld [vmem:[%s5582_s3 + $0x98] sm:$0xff] }
 0x42a   :  { %6629 = vst [vmem:[#allocation71_spill] sm:$0xff] %v5294_v56  ;;  %1711 = vmatpush.msrb.mxu3 %v5312_v55  ;;  %v5318_v56 = vld [vmem:[%s5582_s3 + $0x60] sm:$0xff] }
 0x42b   :  { %6630 = vst [vmem:[#allocation85_spill] sm:$0xff] %v5300_v58  ;;  %1652 = vmatpush.msrb.mxu0 %v5318_v56  ;;  %v5324_v58 = vld [vmem:[%s5582_s3 + $0x68] sm:$0xff] }
 0x42c   :  { %6631 = vst [vmem:[#allocation72_spill] sm:$0xff] %v5306_v4  ;;  %1672 = vmatpush.msrb.mxu1 %v5324_v58  ;;  %v5330_v4 = vld [vmem:[%s5582_s3 + $0x70] sm:$0xff] }
 0x42d   :  { %6632 = vst [vmem:[#allocation74_spill] sm:$0xff] %v5312_v55  ;;  %1692 = vmatpush.msrb.mxu2 %v5330_v4  ;;  %v5336_v55 = vld [vmem:[%s5582_s3 + $0x78] sm:$0xff] }
 0x42e   :  { %6633 = vst [vmem:[#allocation75_spill] sm:$0xff] %v5318_v56  ;;  %1712 = vmatpush.msrb.mxu3 %v5336_v55  ;;  %v5342_v56 = vld [vmem:[%s5582_s3 + $0x40] sm:$0xff] }
 0x42f   :  { %6634 = vst [vmem:[#allocation89_spill] sm:$0xff] %v5324_v58  ;;  %1653 = vmatpush.msrb.mxu0 %v5342_v56  ;;  %v5348_v58 = vld [vmem:[%s5582_s3 + $0x48] sm:$0xff] }
 0x430   :  { %6635 = vst [vmem:[#allocation76_spill] sm:$0xff] %v5330_v4  ;;  %1673 = vmatpush.msrb.mxu1 %v5348_v58  ;;  %v5354_v4 = vld [vmem:[%s5582_s3 + $0x50] sm:$0xff] }
 0x431   :  { %6636 = vst [vmem:[#allocation78_spill] sm:$0xff] %v5336_v55  ;;  %1693 = vmatpush.msrb.mxu2 %v5354_v4  ;;  %v5360_v55 = vld [vmem:[%s5582_s3 + $0x58] sm:$0xff] }
 0x432   :  { %6637 = vst [vmem:[#allocation79_spill] sm:$0xff] %v5342_v56  ;;  %1713 = vmatpush.msrb.mxu3 %v5360_v55  ;;  %v5366_v56 = vld [vmem:[%s5582_s3 + $0x20] sm:$0xff] }
 0x433   :  { %6638 = vst [vmem:[#allocation90_spill] sm:$0xff] %v5348_v58  ;;  %1654 = vmatpush.msrb.mxu0 %v5366_v56  ;;  %v5372_v58 = vld [vmem:[%s5582_s3 + $0x28] sm:$0xff] }
 0x434   :  { %6639 = vst [vmem:[#allocation80_spill] sm:$0xff] %v5354_v4  ;;  %1674 = vmatpush.msrb.mxu1 %v5372_v58  ;;  %v5378_v4 = vld [vmem:[%s5582_s3 + $0x30] sm:$0xff] }
 0x435   :  { %6640 = vst [vmem:[#allocation82_spill] sm:$0xff] %v5360_v55  ;;  %1694 = vmatpush.msrb.mxu2 %v5378_v4  ;;  %v5384_v55 = vld [vmem:[%s5582_s3 + $0x38] sm:$0xff] }
 0x436   :  { %6641 = vst [vmem:[#allocation83_spill] sm:$0xff] %v5366_v56  ;;  %1714 = vmatpush.msrb.mxu3 %v5384_v55  ;;  %v5390_v56 = vld [vmem:[%s5582_s3] sm:$0xff] }
 0x437   :  { %6642 = vst [vmem:[#allocation91_spill] sm:$0xff] %v5372_v58  ;;  %1655 = vmatpush.msrb.mxu0 %v5390_v56  ;;  %v5396_v58 = vld [vmem:[%s5582_s3 + $0x8] sm:$0xff] }
 0x438   :  { %6643 = vst [vmem:[#allocation84_spill] sm:$0xff] %v5378_v4  ;;  %1675 = vmatpush.msrb.mxu1 %v5396_v58  ;;  %v5402_v4 = vld [vmem:[%s5582_s3 + $0x10] sm:$0xff] }
 0x439   :  { %6644 = vst [vmem:[#allocation86_spill] sm:$0xff] %v5384_v55  ;;  %1695 = vmatpush.msrb.mxu2 %v5402_v4  ;;  %v5408_v55 = vld [vmem:[%s5582_s3 + $0x18] sm:$0xff] }
 0x43a   :  { %6645 = vst [vmem:[#allocation87_spill] sm:$0xff] %v5390_v56  ;;  %1715 = vmatpush.msrb.mxu3 %v5408_v55 }
 0x43b   :  { %6646 = vst [vmem:[#allocation92_spill] sm:$0xff] %v5396_v58 }
 0x43c   :  { %6647 = vst [vmem:[#allocation88_spill] sm:$0xff] %v5402_v4 }
 0x43d   :  { %6648 = vst [vmem:[#allocation97_spill] sm:$0xff] %v5408_v55 }
 0x456   :  { %v1346_v56 = vpop.f32.mrf.mxu0  ;;  %v1366_v59 = vpop.f32.mrf.mxu1 }
 0x45d   :  { %v1406_v53 = vpop.f32.mrf.mxu3  ;;  %v1386_v50 = vpop.f32.mrf.mxu2 }
 0x45e   :  { %v1426_v42 = vpop.f32.mrf.mxu0  ;;  %v1446_v47 = vpop.f32.mrf.mxu1 }
 0x45f   :  { %v1427_v58 = vadd.f32 %v1426_v42, %v1346_v56  ;;  %v1447_v51 = vadd.f32 %v1446_v47, %v1366_v59 }
 0x461   :  { %v1489_v60 = vadd.f32 %v1427_v58, %v6555_v3  ;;  %v1490_v54 = vadd.f32 %v1447_v51, %v6556_v5 }
 0x463   :  { %v2063_v4 = vmul.f32 -1.442695, %v1489_v60  ;;  %v2064_v46 = vmul.f32 -1.442695, %v1490_v54 }
 0x465   :  { %2157 = vpow2.f32 %v2063_v4  ;;  %v1486_v61 = vpop.f32.mrf.mxu3  ;;  %v1466_v47 = vpop.f32.mrf.mxu2 }
 0x466   :  { %2159 = vpow2.f32 %v2064_v46  ;;  %v1487_v48 = vadd.f32 %v1486_v61, %v1406_v53  ;;  %v1467_v59 = vadd.f32 %v1466_v47, %v1386_v50 }
 0x468   :  { %v1492_v55 = vadd.f32 %v1487_v48, %v6557_v26  ;;  %v1491_v54 = vadd.f32 %v1467_v59, %v6558_v21 }
 0x46a   :  { %v2065_v57 = vmul.f32 -1.442695, %v1492_v55 }
 0x46b   :  { %v2158_v52 = vpop.eup %2157 }
 0x46c   :  { %v2160_v62 = vpop.eup %2159  ;;  %v1496_v63 = vadd.f32 1.0, %v2158_v52  ;;  %2161 = vpow2.f32 %v2065_v57 }
 0x46d   :  { %v1515_v42 = vadd.f32 1.0, %v2160_v62 }
 0x46e   :  { %2163 = vrcp.f32 %v1496_v63  ;;  %v1508_v55 = vand.u32 2147483648, %v1496_v63  ;;  %v1506_v62 = vand.u32 2147483647, %v1496_v63  ;;  %vm1502_vm14 = vweird.f32 %v1496_v63 }
 0x46f   :  { %2165 = vrcp.f32 %v1515_v42  ;;  %v1527_v52 = vand.u32 2147483648, %v1515_v42  ;;  %v1525_v50 = vand.u32 2147483647, %v1515_v42  ;;  %vm1521_vm15 = vweird.f32 %v1515_v42 }
 0x470   :  { %v1509_v59 = vor.u32 1.1754944e-38, %v1508_v55  ;;  %vm1507_vm2 = vcmp.eq.f32.partialorder %v1506_v62, 8.507059e+37 }
 0x471   :  { %vm1526_vm3 = vcmp.eq.f32.partialorder %v1525_v50, 8.507059e+37  ;;  %v6693_v50 = vld [vmem:[#allocation44_spill] sm:$0xff] }
 0x472   :  { %v2162_v51 = vpop.eup %2161 }
 0x473   :  { %v1535_v56 = vadd.f32 1.0, %v2162_v51 }
 0x474   :  { %v2164_v60 = vpop.eup %2163 }
 0x475   :  { %v2166_v58 = vpop.eup %2165  ;;  %v1498_v46 = vmul.f32 %v2164_v60, %v1496_v63  ;;  %2167 = vrcp.f32 %v1535_v56  ;;  %vm1503_vm12 = vweird.f32 %v2164_v60  ;;  %v1547_v55 = vand.u32 2147483648, %v1535_v56 }
 0x476   :  { %v1517_v61 = vmul.f32 %v2166_v58, %v1515_v42  ;;  %2169 = vtanh.f32 %v1491_v54  ;;  %vm1522_vm13 = vweird.f32 %v2166_v58  ;;  %vm1504_vm0 = vmor %vm1502_vm14, %vm1503_vm12  ;;  %vm1541_vm5 = vweird.f32 %v1535_v56 }
 0x477   :  { %v1499_v48 = vsub.f32 1.0, %v1498_v46  ;;  %vm1523_vm1 = vmor %vm1521_vm15, %vm1522_vm13  ;;  %v1528_v46 = vor.u32 1.1754944e-38, %v1527_v52  ;;  %v1548_v62 = vor.u32 1.1754944e-38, %v1547_v55  ;;  %v6704_v55 = vld [vmem:[#allocation69_spill] sm:$0xff] }
 0x478   :  { %v1518_v53 = vsub.f32 1.0, %v1517_v61 }
 0x479   :  { %v1500_v57 = vmul.f32 %v2164_v60, %v1499_v48 }
 0x47a   :  { %v1519_v4 = vmul.f32 %v2166_v58, %v1518_v53 }
 0x47b   :  { %v2168_v47 = vpop.eup %2167  ;;  %v1501_v51 = vadd.f32 %v2164_v60, %v1500_v57 }
 0x47c   :  { %v1520_v21 = vadd.f32 %v2166_v58, %v1519_v4  ;;  %v1537_v26 = vmul.f32 %v2168_v47, %v1535_v56  ;;  %v2170_v54 = vpop.eup %2169  ;;  %vm1542_vm4 = vweird.f32 %v2168_v47  ;;  %v6692_v4 = vld [vmem:[#allocation57_spill] sm:$0xff] }
 0x47d   :  { %v1505_v61 = vsel %vm1504_vm0, %v2164_v60, %v1501_v51  ;;  %v1545_v60 = vand.u32 2147483647, %v1535_v56  ;;  %vm1543_vm6 = vmor %vm1541_vm5, %vm1542_vm4  ;;  %v6691_v56 = vld [vmem:[#allocation43_spill] sm:$0xff] }
 0x47e   :  { %v1510_v5 = vsel %vm1507_vm2, %v1509_v59, %v1505_v61  ;;  %v1524_v48 = vsel %vm1523_vm1, %v2166_v58, %v1520_v21  ;;  %v1538_v3 = vsub.f32 1.0, %v1537_v26  ;;  %v6695_v51 = vld [vmem:[#allocation47_spill] sm:$0xff]  ;;  %v6696_v59 = vld [vmem:[#allocation61_spill] sm:$0xff]  ;;  %v6698_v61 = vld [vmem:[#allocation50_spill] sm:$0xff] }
 0x47f   :  { %v1529_v53 = vsel %vm1526_vm3, %v1528_v46, %v1524_v48  ;;  %v1552_v45 = vmul.f32 %v2170_v54, %v1510_v5  ;;  %vm1546_vm7 = vcmp.eq.f32.partialorder %v1545_v60, 8.507059e+37  ;;  %v6649_v5 = vld [vmem:[#allocation4_spill] sm:$0xff]  ;;  %v6699_v54 = vld [vmem:[#allocation51_spill] sm:$0xff]  ;;  %v6700_v48 = vld [vmem:[#allocation65_spill] sm:$0xff] }
 0x480   :  { %v1551_v41 = vmul.f32 %v1529_v53, %v4634_v49  ;;  %v1539_v57 = vmul.f32 %v2168_v47, %v1538_v3  ;;  %v2067_v3 = vld [vmem:[%s5584_s0 + $0x30] sm:$0xff]  ;;  %v6650_v49 = vld [vmem:[#allocation5_spill] sm:$0xff]  ;;  %v6697_v46 = vld [vmem:[#allocation48_spill] sm:$0xff] }
 0x481   :  { %v6701_v53 = vld [vmem:[#allocation52_spill] sm:$0xff] }
 0x482   :  { %v5416_v63 = vadd.f32 %v1552_v45, %v1551_v41  ;;  %v1540_v42 = vadd.f32 %v2168_v47, %v1539_v57  ;;  %v6689_v41 = vld [vmem:[#allocation40_spill] sm:$0xff]  ;;  %v6690_v45 = vld [vmem:[#allocation42_spill] sm:$0xff] }
 0x483   :  { %v6702_v57 = vld [vmem:[#allocation54_spill] sm:$0xff]  ;;  %v6705_v60 = vld [vmem:[#allocation56_spill] sm:$0xff] }
 0x484   :  { %2171 = vtanh.f32 %v5416_v63  ;;  %v1544_v52 = vsel %vm1543_vm6, %v2168_v47, %v1540_v42  ;;  %v6694_v47 = vld [vmem:[#allocation46_spill] sm:$0xff]  ;;  %v6703_v42 = vld [vmem:[#allocation55_spill] sm:$0xff] }
 0x485   :  { %v1549_v26 = vsel %vm1546_vm7, %v1548_v62, %v1544_v52  ;;  %v6706_v52 = vld [vmem:[#allocation58_spill] sm:$0xff]  ;;  %v6707_v62 = vld [vmem:[#allocation59_spill] sm:$0xff] }
 0x48a   :  { %v2172_v21 = vpop.eup %2171 }
 0x48b   :  { %v1555_v58 = vmul.f32 %v2172_v21, %v1549_v26  ;;  %v6708_v21 = vld [vmem:[#allocation73_spill] sm:$0xff]  ;;  %v6709_v26 = vld [vmem:[#allocation60_spill] sm:$0xff] }
 0x48d   :  { %2066 = vst [vmem:[%s5587_s6 + $0x28] sm:$0xff] %v1555_v58  ;;  %1576 = vmatmul.f32.vlgmr.msra.gmra.mxu0 %v1555_v58  ;;  %1596 = vmatmul.f32.vlgmr.msra.gmra.mxu1 %v1555_v58 }
 0x48e   :  { %1616 = vmatmul.f32.vlgmr.msra.gmra.mxu2 %v1555_v58  ;;  %1636 = vmatmul.f32.vlgmr.msra.gmra.mxu3 %v1555_v58  ;;  %v6710_v58 = vld [vmem:[#allocation62_spill] sm:$0xff] }
 0x48f   :  { %1791 = vmatpush.msra.mxu0 %v4643_v8  ;;  %1811 = vmatpush.msra.mxu1 %v4649_v44  ;;  %v6651_v8 = vld [vmem:[#allocation6_spill] sm:$0xff] }
 0x490   :  { %1831 = vmatpush.msra.mxu2 %v4655_v38  ;;  %1851 = vmatpush.msra.mxu3 %v4661_v0  ;;  %v6652_v44 = vld [vmem:[#allocation14_spill] sm:$0xff]  ;;  %v6653_v38 = vld [vmem:[#allocation7_spill] sm:$0xff]  ;;  %v6654_v0 = vld [vmem:[#allocation8_spill] sm:$0xff] }
 0x491   :  { %1792 = vmatpush.msra.mxu0 %v4667_v1  ;;  %1812 = vmatpush.msra.mxu1 %v4673_v2  ;;  %v6655_v1 = vld [vmem:[#allocation9_spill] sm:$0xff]  ;;  %v6656_v2 = vld [vmem:[#allocation18_spill] sm:$0xff] }
 0x492   :  { %1832 = vmatpush.msra.mxu2 %v4682_v6  ;;  %1852 = vmatpush.msra.mxu3 %v4688_v35  ;;  %v6657_v6 = vld [vmem:[#allocation10_spill] sm:$0xff]  ;;  %v6658_v35 = vld [vmem:[#allocation11_spill] sm:$0xff] }
 0x493   :  { %1793 = vmatpush.msra.mxu0 %v4694_v19  ;;  %1813 = vmatpush.msra.mxu1 %v4700_v7  ;;  %v6659_v19 = vld [vmem:[#allocation12_spill] sm:$0xff]  ;;  %v6660_v7 = vld [vmem:[#allocation22_spill] sm:$0xff] }
 0x494   :  { %1833 = vmatpush.msra.mxu2 %v4706_v25  ;;  %1853 = vmatpush.msra.mxu3 %v4712_v22  ;;  %v6661_v25 = vld [vmem:[#allocation13_spill] sm:$0xff]  ;;  %v6662_v22 = vld [vmem:[#allocation15_spill] sm:$0xff] }
 0x495   :  { %1656 = vmatmul.f32.vlgmr.msrb.gmra.mxu0 %v2067_v3  ;;  %1676 = vmatmul.f32.vlgmr.msrb.gmra.mxu1 %v2067_v3 }
 0x496   :  { %1696 = vmatmul.f32.vlgmr.msrb.gmra.mxu2 %v2067_v3  ;;  %1716 = vmatmul.f32.vlgmr.msrb.gmra.mxu3 %v2067_v3  ;;  %v6711_v3 = vld [vmem:[#allocation63_spill] sm:$0xff] }
 0x497   :  { %1794 = vmatpush.msra.mxu0 %v4718_v11  ;;  %1814 = vmatpush.msra.mxu1 %v4724_v17  ;;  %v6663_v11 = vld [vmem:[#allocation16_spill] sm:$0xff]  ;;  %v6664_v17 = vld [vmem:[#allocation29_spill] sm:$0xff] }
 0x498   :  { %1834 = vmatpush.msra.mxu2 %v4730_v14  ;;  %1854 = vmatpush.msra.mxu3 %v4736_v23  ;;  %v6665_v14 = vld [vmem:[#allocation17_spill] sm:$0xff]  ;;  %v6666_v23 = vld [vmem:[#allocation19_spill] sm:$0xff] }
 0x499   :  { %1795 = vmatpush.msra.mxu0 %v4742_v10  ;;  %1815 = vmatpush.msra.mxu1 %v4748_v13  ;;  %v6667_v10 = vld [vmem:[#allocation20_spill] sm:$0xff]  ;;  %v6668_v13 = vld [vmem:[#allocation33_spill] sm:$0xff] }
 0x49a   :  { %1835 = vmatpush.msra.mxu2 %v4754_v20  ;;  %1855 = vmatpush.msra.mxu3 %v4760_v40  ;;  %v6669_v20 = vld [vmem:[#allocation21_spill] sm:$0xff]  ;;  %v6670_v40 = vld [vmem:[#allocation23_spill] sm:$0xff] }
 0x49b   :  { %1796 = vmatpush.msra.mxu0 %v4766_v43  ;;  %1816 = vmatpush.msra.mxu1 %v4772_v16  ;;  %v6671_v43 = vld [vmem:[#allocation24_spill] sm:$0xff]  ;;  %v6672_v16 = vld [vmem:[#allocation37_spill] sm:$0xff] }
 0x49c   :  { %1836 = vmatpush.msra.mxu2 %v4778_v12  ;;  %1856 = vmatpush.msra.mxu3 %v4784_v15  ;;  %v6673_v12 = vld [vmem:[#allocation25_spill] sm:$0xff]  ;;  %v6674_v15 = vld [vmem:[#allocation26_spill] sm:$0xff] }
 0x49d   :  { %1797 = vmatpush.msra.mxu0 %v4790_v27  ;;  %1817 = vmatpush.msra.mxu1 %v4796_v34  ;;  %v6675_v27 = vld [vmem:[#allocation27_spill] sm:$0xff]  ;;  %v6676_v34 = vld [vmem:[#allocation41_spill] sm:$0xff] }
 0x49e   :  { %1837 = vmatpush.msra.mxu2 %v4802_v24  ;;  %1857 = vmatpush.msra.mxu3 %v4808_v18  ;;  %v6677_v24 = vld [vmem:[#allocation28_spill] sm:$0xff]  ;;  %v6678_v18 = vld [vmem:[#allocation30_spill] sm:$0xff] }
 0x49f   :  { %1798 = vmatpush.msra.mxu0 %v4814_v33  ;;  %1818 = vmatpush.msra.mxu1 %v4820_v9  ;;  %v6679_v33 = vld [vmem:[#allocation31_spill] sm:$0xff]  ;;  %v6680_v9 = vld [vmem:[#allocation45_spill] sm:$0xff] }
 0x4a0   :  { %1838 = vmatpush.msra.mxu2 %v4826_v36  ;;  %1858 = vmatpush.msra.mxu3 %v4832_v28  ;;  %v6681_v36 = vld [vmem:[#allocation32_spill] sm:$0xff]  ;;  %v6682_v28 = vld [vmem:[#allocation34_spill] sm:$0xff] }
 0x4a1   :  { %1799 = vmatpush.msra.mxu0 %v4838_v29  ;;  %1819 = vmatpush.msra.mxu1 %v4844_v30  ;;  %v6683_v29 = vld [vmem:[#allocation35_spill] sm:$0xff]  ;;  %v6684_v30 = vld [vmem:[#allocation49_spill] sm:$0xff] }
 0x4a2   :  { %1839 = vmatpush.msra.mxu2 %v4850_v31  ;;  %1859 = vmatpush.msra.mxu3 %v4856_v32  ;;  %v6685_v31 = vld [vmem:[#allocation36_spill] sm:$0xff]  ;;  %v6686_v32 = vld [vmem:[#allocation38_spill] sm:$0xff] }
 0x4a3   :  { %1800 = vmatpush.msra.mxu0 %v4862_v37  ;;  %1820 = vmatpush.msra.mxu1 %v4868_v39  ;;  %v6687_v37 = vld [vmem:[#allocation39_spill] sm:$0xff]  ;;  %v6688_v39 = vld [vmem:[#allocation53_spill] sm:$0xff] }
 0x4a4   :  { %1840 = vmatpush.msra.mxu2 %v6649_v5  ;;  %1860 = vmatpush.msra.mxu3 %v6650_v49  ;;  %v6712_v5 = vld [vmem:[#allocation77_spill] sm:$0xff]  ;;  %v6713_v49 = vld [vmem:[#allocation64_spill] sm:$0xff] }
 0x4a5   :  { %1801 = vmatpush.msra.mxu0 %v6651_v8  ;;  %1821 = vmatpush.msra.mxu1 %v6652_v44  ;;  %v6714_v8 = vld [vmem:[#allocation66_spill] sm:$0xff]  ;;  %v6715_v44 = vld [vmem:[#allocation67_spill] sm:$0xff] }
 0x4a6   :  { %1841 = vmatpush.msra.mxu2 %v6653_v38  ;;  %1861 = vmatpush.msra.mxu3 %v6654_v0  ;;  %v6716_v38 = vld [vmem:[#allocation81_spill] sm:$0xff]  ;;  %v6717_v0 = vld [vmem:[#allocation68_spill] sm:$0xff] }
 0x4a7   :  { %1802 = vmatpush.msra.mxu0 %v6655_v1  ;;  %1822 = vmatpush.msra.mxu1 %v6656_v2  ;;  %v6718_v1 = vld [vmem:[#allocation70_spill] sm:$0xff]  ;;  %v6719_v2 = vld [vmem:[#allocation71_spill] sm:$0xff] }
 0x4a8   :  { %1842 = vmatpush.msra.mxu2 %v6657_v6  ;;  %1862 = vmatpush.msra.mxu3 %v6658_v35  ;;  %v6720_v6 = vld [vmem:[#allocation85_spill] sm:$0xff]  ;;  %v6721_v35 = vld [vmem:[#allocation72_spill] sm:$0xff] }
 0x4a9   :  { %1803 = vmatpush.msra.mxu0 %v6659_v19  ;;  %1823 = vmatpush.msra.mxu1 %v6660_v7  ;;  %v6722_v19 = vld [vmem:[#allocation74_spill] sm:$0xff]  ;;  %v6723_v7 = vld [vmem:[#allocation75_spill] sm:$0xff] }
 0x4aa   :  { %1843 = vmatpush.msra.mxu2 %v6661_v25  ;;  %1863 = vmatpush.msra.mxu3 %v6662_v22  ;;  %v6724_v25 = vld [vmem:[#allocation89_spill] sm:$0xff]  ;;  %v6725_v22 = vld [vmem:[#allocation76_spill] sm:$0xff] }
 0x4ab   :  { %1804 = vmatpush.msra.mxu0 %v6663_v11  ;;  %1824 = vmatpush.msra.mxu1 %v6664_v17  ;;  %v6726_v11 = vld [vmem:[#allocation78_spill] sm:$0xff]  ;;  %v6727_v17 = vld [vmem:[#allocation79_spill] sm:$0xff] }
 0x4ac   :  { %1844 = vmatpush.msra.mxu2 %v6665_v14  ;;  %1864 = vmatpush.msra.mxu3 %v6666_v23  ;;  %v6728_v14 = vld [vmem:[#allocation90_spill] sm:$0xff]  ;;  %v6729_v23 = vld [vmem:[#allocation80_spill] sm:$0xff] }
 0x4ad   :  { %1805 = vmatpush.msra.mxu0 %v6667_v10  ;;  %1825 = vmatpush.msra.mxu1 %v6668_v13  ;;  %v6730_v10 = vld [vmem:[#allocation82_spill] sm:$0xff]  ;;  %v6731_v13 = vld [vmem:[#allocation83_spill] sm:$0xff] }
 0x4ae   :  { %1845 = vmatpush.msra.mxu2 %v6669_v20  ;;  %1865 = vmatpush.msra.mxu3 %v6670_v40  ;;  %v6732_v20 = vld [vmem:[#allocation91_spill] sm:$0xff]  ;;  %v6733_v40 = vld [vmem:[#allocation84_spill] sm:$0xff] }
 0x4af   :  { %1806 = vmatpush.msra.mxu0 %v6671_v43  ;;  %1826 = vmatpush.msra.mxu1 %v6672_v16  ;;  %v6734_v43 = vld [vmem:[#allocation86_spill] sm:$0xff]  ;;  %v6735_v16 = vld [vmem:[#allocation87_spill] sm:$0xff] }
 0x4b0   :  { %1846 = vmatpush.msra.mxu2 %v6673_v12  ;;  %1866 = vmatpush.msra.mxu3 %v6674_v15  ;;  %v6736_v12 = vld [vmem:[#allocation92_spill] sm:$0xff] }
 0x4b1   :  { %1871 = vmatpush.msrb.mxu0 %v6675_v27  ;;  %1891 = vmatpush.msrb.mxu1 %v6676_v34  ;;  %v6737_v15 = vld [vmem:[#allocation88_spill] sm:$0xff]  ;;  %v6738_v27 = vld [vmem:[#allocation97_spill] sm:$0xff] }
 0x4b2   :  { %1911 = vmatpush.msrb.mxu2 %v6677_v24  ;;  %1931 = vmatpush.msrb.mxu3 %v6678_v18 }
 0x4b3   :  { %1872 = vmatpush.msrb.mxu0 %v6679_v33  ;;  %1892 = vmatpush.msrb.mxu1 %v6680_v9 }
 0x4b4   :  { %1912 = vmatpush.msrb.mxu2 %v6681_v36  ;;  %1932 = vmatpush.msrb.mxu3 %v6682_v28 }
 0x4b5   :  { %1873 = vmatpush.msrb.mxu0 %v6683_v29  ;;  %1893 = vmatpush.msrb.mxu1 %v6684_v30  ;;  %v6739_v29 = vld [vmem:[#allocation93_spill] sm:$0xff] }
 0x4b6   :  { %1913 = vmatpush.msrb.mxu2 %v6685_v31  ;;  %1933 = vmatpush.msrb.mxu3 %v6686_v32  ;;  %v6740_v31 = vld [vmem:[#allocation94_spill] sm:$0xff] }
 0x4b7   :  { %1874 = vmatpush.msrb.mxu0 %v6687_v37  ;;  %1894 = vmatpush.msrb.mxu1 %v6688_v39 }
 0x4b8   :  { %1914 = vmatpush.msrb.mxu2 %v6689_v41  ;;  %1934 = vmatpush.msrb.mxu3 %v6690_v45 }
 0x4b9   :  { %1875 = vmatpush.msrb.mxu0 %v6691_v56  ;;  %1895 = vmatpush.msrb.mxu1 %v6692_v4  ;;  %v6741_v4 = vld [vmem:[#allocation95_spill] sm:$0xff] }
 0x4ba   :  { %1915 = vmatpush.msrb.mxu2 %v6693_v50  ;;  %1935 = vmatpush.msrb.mxu3 %v6694_v47 }
 0x4bb   :  { %1876 = vmatpush.msrb.mxu0 %v6695_v51  ;;  %1896 = vmatpush.msrb.mxu1 %v6696_v59 }
 0x4bc   :  { %1916 = vmatpush.msrb.mxu2 %v6697_v46  ;;  %1936 = vmatpush.msrb.mxu3 %v6698_v61 }
 0x4bd   :  { %1877 = vmatpush.msrb.mxu0 %v6699_v54  ;;  %1897 = vmatpush.msrb.mxu1 %v6700_v48 }
 0x4be   :  { %1917 = vmatpush.msrb.mxu2 %v6701_v53  ;;  %1937 = vmatpush.msrb.mxu3 %v6702_v57 }
 0x4bf   :  { %1878 = vmatpush.msrb.mxu0 %v6703_v42  ;;  %1898 = vmatpush.msrb.mxu1 %v6704_v55  ;;  %v6742_v55 = vld [vmem:[#allocation96_spill] sm:$0xff] }
 0x4c0   :  { %1918 = vmatpush.msrb.mxu2 %v6705_v60  ;;  %1938 = vmatpush.msrb.mxu3 %v6706_v52 }
 0x4c1   :  { %1879 = vmatpush.msrb.mxu0 %v6707_v62  ;;  %1899 = vmatpush.msrb.mxu1 %v6708_v21 }
 0x4c2   :  { %1919 = vmatpush.msrb.mxu2 %v6709_v26  ;;  %1939 = vmatpush.msrb.mxu3 %v6710_v58 }
 0x4c3   :  { %1880 = vmatpush.msrb.mxu0 %v6711_v3  ;;  %1900 = vmatpush.msrb.mxu1 %v6712_v5 }
 0x4c4   :  { %1920 = vmatpush.msrb.mxu2 %v6713_v49  ;;  %1940 = vmatpush.msrb.mxu3 %v6714_v8 }
 0x4c5   :  { %1881 = vmatpush.msrb.mxu0 %v6715_v44  ;;  %1901 = vmatpush.msrb.mxu1 %v6716_v38 }
 0x4c6   :  { %1921 = vmatpush.msrb.mxu2 %v6717_v0  ;;  %1941 = vmatpush.msrb.mxu3 %v6718_v1 }
 0x4c7   :  { %1882 = vmatpush.msrb.mxu0 %v6719_v2  ;;  %1902 = vmatpush.msrb.mxu1 %v6720_v6 }
 0x4c8   :  { %1922 = vmatpush.msrb.mxu2 %v6721_v35  ;;  %1942 = vmatpush.msrb.mxu3 %v6722_v19 }
 0x4c9   :  { %1883 = vmatpush.msrb.mxu0 %v6723_v7  ;;  %1903 = vmatpush.msrb.mxu1 %v6724_v25 }
 0x4ca   :  { %1923 = vmatpush.msrb.mxu2 %v6725_v22  ;;  %1943 = vmatpush.msrb.mxu3 %v6726_v11 }
 0x4cb   :  { %1884 = vmatpush.msrb.mxu0 %v6727_v17  ;;  %1904 = vmatpush.msrb.mxu1 %v6728_v14 }
 0x4cc   :  { %1924 = vmatpush.msrb.mxu2 %v6729_v23  ;;  %1944 = vmatpush.msrb.mxu3 %v6730_v10 }
 0x4cd   :  { %1885 = vmatpush.msrb.mxu0 %v6731_v13  ;;  %1905 = vmatpush.msrb.mxu1 %v6732_v20 }
 0x4ce   :  { %1925 = vmatpush.msrb.mxu2 %v6733_v40  ;;  %1945 = vmatpush.msrb.mxu3 %v6734_v43 }
 0x4cf   :  { %1886 = vmatpush.msrb.mxu0 %v6735_v16  ;;  %1906 = vmatpush.msrb.mxu1 %v6736_v12 }
 0x4d0   :  { %1926 = vmatpush.msrb.mxu2 %v6737_v15  ;;  %1946 = vmatpush.msrb.mxu3 %v6738_v27 }
 0x50a   :  { %v1577_v34 = vpop.f32.mrf.mxu0  ;;  %v1597_v24 = vpop.f32.mrf.mxu1 }
 0x511   :  { %v1637_v18 = vpop.f32.mrf.mxu3  ;;  %v1617_v37 = vpop.f32.mrf.mxu2 }
 0x512   :  { %v1657_v33 = vpop.f32.mrf.mxu0  ;;  %v1677_v9 = vpop.f32.mrf.mxu1 }
 0x513   :  { %v1658_v36 = vadd.f32 %v1657_v33, %v1577_v34  ;;  %v1678_v28 = vadd.f32 %v1677_v9, %v1597_v24 }
 0x515   :  { %v1720_v30 = vadd.f32 %v1658_v36, %v6739_v29  ;;  %v1721_v32 = vadd.f32 %v1678_v28, %v6740_v31 }
 0x517   :  { %v2068_v39 = vmul.f32 -1.442695, %v1720_v30  ;;  %v2069_v41 = vmul.f32 -1.442695, %v1721_v32 }
 0x519   :  { %2173 = vpow2.f32 %v2068_v39  ;;  %v1717_v45 = vpop.f32.mrf.mxu3  ;;  %v1697_v54 = vpop.f32.mrf.mxu2 }
 0x51a   :  { %2175 = vpow2.f32 %v2069_v41  ;;  %v1718_v56 = vadd.f32 %v1717_v45, %v1637_v18  ;;  %v1698_v48 = vadd.f32 %v1697_v54, %v1617_v37 }
 0x51c   :  { %v1723_v50 = vadd.f32 %v1718_v56, %v6741_v4  ;;  %v1722_v60 = vadd.f32 %v1698_v48, %v6742_v55 }
 0x51e   :  { %v2070_v47 = vmul.f32 -1.442695, %v1723_v50 }
 0x51f   :  { %v2174_v51 = vpop.eup %2173 }
 0x520   :  { %v2176_v59 = vpop.eup %2175  ;;  %v1727_v46 = vadd.f32 1.0, %v2174_v51  ;;  %2177 = vpow2.f32 %v2070_v47 }
 0x521   :  { %v1746_v61 = vadd.f32 1.0, %v2176_v59 }
 0x522   :  { %2179 = vrcp.f32 %v1727_v46  ;;  %v1739_v3 = vand.u32 2147483648, %v1727_v46  ;;  %v1737_v8 = vand.u32 2147483647, %v1727_v46  ;;  %vm1733_vm10 = vweird.f32 %v1727_v46 }
 0x523   :  { %2181 = vrcp.f32 %v1746_v61  ;;  %v1758_v5 = vand.u32 2147483648, %v1746_v61  ;;  %v1756_v38 = vand.u32 2147483647, %v1746_v61  ;;  %vm1752_vm11 = vweird.f32 %v1746_v61 }
 0x524   :  { %v1740_v2 = vor.u32 1.1754944e-38, %v1739_v3  ;;  %vm1738_vm14 = vcmp.eq.f32.partialorder %v1737_v8, 8.507059e+37 }
 0x525   :  { %v1759_v19 = vor.u32 1.1754944e-38, %v1758_v5  ;;  %vm1757_vm15 = vcmp.eq.f32.partialorder %v1756_v38, 8.507059e+37 }
 0x526   :  { %v2178_v53 = vpop.eup %2177 }
 0x527   :  { %v1766_v57 = vadd.f32 1.0, %v2178_v53 }
 0x528   :  { %v2180_v42 = vpop.eup %2179 }
 0x529   :  { %v2182_v52 = vpop.eup %2181  ;;  %v1729_v62 = vmul.f32 %v2180_v42, %v1727_v46  ;;  %2183 = vrcp.f32 %v1766_v57  ;;  %vm1734_vm8 = vweird.f32 %v2180_v42  ;;  %v1778_v43 = vand.u32 2147483648, %v1766_v57 }
 0x52a   :  { %v1748_v21 = vmul.f32 %v2182_v52, %v1746_v61  ;;  %2185 = vtanh.f32 %v1722_v60  ;;  %vm1753_vm9 = vweird.f32 %v2182_v52  ;;  %vm1735_vm12 = vmor %vm1733_vm10, %vm1734_vm8  ;;  %vm1772_vm1 = vweird.f32 %v1766_v57 }
 0x52b   :  { %v1730_v26 = vsub.f32 1.0, %v1729_v62  ;;  %vm1754_vm13 = vmor %vm1752_vm11, %vm1753_vm9  ;;  %v1776_v16 = vand.u32 2147483647, %v1766_v57  ;;  %v1779_v15 = vor.u32 1.1754944e-38, %v1778_v43 }
 0x52c   :  { %v1749_v58 = vsub.f32 1.0, %v1748_v21 }
 0x52d   :  { %v1731_v49 = vmul.f32 %v2180_v42, %v1730_v26  ;;  %vm1777_vm3 = vcmp.eq.f32.partialorder %v1776_v16, 8.507059e+37 }
 0x52e   :  { %v1750_v44 = vmul.f32 %v2182_v52, %v1749_v58 }
 0x52f   :  { %v2184_v0 = vpop.eup %2183  ;;  %v1732_v1 = vadd.f32 %v2180_v42, %v1731_v49 }
 0x530   :  { %v1751_v6 = vadd.f32 %v2182_v52, %v1750_v44  ;;  %v1768_v35 = vmul.f32 %v2184_v0, %v1766_v57  ;;  %v2186_v25 = vpop.eup %2185  ;;  %vm1773_vm0 = vweird.f32 %v2184_v0 }
 0x531   :  { %v1736_v7 = vsel %vm1735_vm12, %v2180_v42, %v1732_v1  ;;  %vm1774_vm2 = vmor %vm1772_vm1, %vm1773_vm0 }
 0x532   :  { %v1741_v22 = vsel %vm1738_vm14, %v1740_v2, %v1736_v7  ;;  %v1755_v11 = vsel %vm1754_vm13, %v2182_v52, %v1751_v6  ;;  %v1769_v17 = vsub.f32 1.0, %v1768_v35 }
 0x533   :  { %v1760_v14 = vsel %vm1757_vm15, %v1759_v19, %v1755_v11  ;;  %v1783_v23 = vmul.f32 %v2186_v25, %v1741_v22 }
 0x534   :  { %v1782_v10 = vmul.f32 %v1760_v14, %v5416_v63  ;;  %v1770_v13 = vmul.f32 %v2184_v0, %v1769_v17  ;;  %v2072_v63 = vld [vmem:[%s5584_s0 + $0x38] sm:$0xff] }
 0x536   :  { %v5558_v20 = vadd.f32 %v1783_v23, %v1782_v10  ;;  %v1771_v40 = vadd.f32 %v2184_v0, %v1770_v13 }
 0x538   :  { %2187 = vtanh.f32 %v5558_v20  ;;  %v1775_v12 = vsel %vm1774_vm2, %v2184_v0, %v1771_v40 }
 0x539   :  { %v1780_v34 = vsel %vm1777_vm3, %v1779_v15, %v1775_v12 }
 0x53e   :  { %v2188_v27 = vpop.eup %2187 }
 0x53f   :  { %v1786_v24 = vmul.f32 %v2188_v27, %v1780_v34 }
 0x541   :  { %2071 = vst [vmem:[%s5587_s6 + $0x30] sm:$0xff] %v1786_v24  ;;  %1807 = vmatmul.f32.vlgmr.msra.gmra.mxu0 %v1786_v24  ;;  %1827 = vmatmul.f32.vlgmr.msra.gmra.mxu1 %v1786_v24 }
 0x542   :  { %1847 = vmatmul.f32.vlgmr.msra.gmra.mxu2 %v1786_v24  ;;  %1867 = vmatmul.f32.vlgmr.msra.gmra.mxu3 %v1786_v24 }
 0x549   :  { %1887 = vmatmul.f32.vlgmr.msrb.gmra.mxu0 %v2072_v63  ;;  %1907 = vmatmul.f32.vlgmr.msrb.gmra.mxu1 %v2072_v63 }
 0x54a   :  { %1927 = vmatmul.f32.vlgmr.msrb.gmra.mxu2 %v2072_v63  ;;  %1947 = vmatmul.f32.vlgmr.msrb.gmra.mxu3 %v2072_v63 }
 0x5be   :  { %v1808_v18 = vpop.f32.mrf.mxu0  ;;  %v1828_v33 = vpop.f32.mrf.mxu1 }
 0x5c5   :  { %v1868_v9 = vpop.f32.mrf.mxu3  ;;  %v1848_v41 = vpop.f32.mrf.mxu2 }
 0x5c6   :  { %v1888_v36 = vpop.f32.mrf.mxu0  ;;  %v1908_v28 = vpop.f32.mrf.mxu1 }
 0x5c7   :  { %v1889_v30 = vadd.f32 %v1888_v36, %v1808_v18  ;;  %v1909_v32 = vadd.f32 %v1908_v28, %v1828_v33 }
 0x5c9   :  { %v1951_v37 = vadd.f32 %v1889_v30, %v6739_v29  ;;  %v1952_v39 = vadd.f32 %v1909_v32, %v6740_v31 }
 0x5cb   :  { %v2073_v45 = vmul.f32 -1.442695, %v1951_v37  ;;  %v2074_v56 = vmul.f32 -1.442695, %v1952_v39 }
 0x5cd   :  { %2189 = vpow2.f32 %v2073_v45  ;;  %v1948_v50 = vpop.f32.mrf.mxu3  ;;  %v1928_v53 = vpop.f32.mrf.mxu2 }
 0x5ce   :  { %2191 = vpow2.f32 %v2074_v56  ;;  %v1949_v47 = vadd.f32 %v1948_v50, %v1868_v9  ;;  %v1929_v29 = vadd.f32 %v1928_v53, %v1848_v41 }
 0x5d0   :  { %v1954_v51 = vadd.f32 %v1949_v47, %v6741_v4  ;;  %v1953_v60 = vadd.f32 %v1929_v29, %v6742_v55 }
 0x5d2   :  { %v2075_v59 = vmul.f32 -1.442695, %v1954_v51 }
 0x5d3   :  { %v2190_v46 = vpop.eup %2189 }
 0x5d4   :  { %v2192_v61 = vpop.eup %2191  ;;  %v1958_v54 = vadd.f32 1.0, %v2190_v46  ;;  %2193 = vpow2.f32 %v2075_v59 }
 0x5d5   :  { %v1977_v48 = vadd.f32 1.0, %v2192_v61 }
 0x5d6   :  { %2195 = vrcp.f32 %v1958_v54  ;;  %v1970_v58 = vand.u32 2147483648, %v1958_v54  ;;  %v1968_v49 = vand.u32 2147483647, %v1958_v54  ;;  %vm1964_vm6 = vweird.f32 %v1958_v54 }
 0x5d7   :  { %2197 = vrcp.f32 %v1977_v48  ;;  %v1989_v3 = vand.u32 2147483648, %v1977_v48  ;;  %v1987_v44 = vand.u32 2147483647, %v1977_v48  ;;  %vm1983_vm7 = vweird.f32 %v1977_v48 }
 0x5d8   :  { %v1971_v55 = vor.u32 1.1754944e-38, %v1970_v58  ;;  %vm1969_vm10 = vcmp.eq.f32.partialorder %v1968_v49, 8.507059e+37 }
 0x5d9   :  { %v1990_v6 = vor.u32 1.1754944e-38, %v1989_v3  ;;  %vm1988_vm11 = vcmp.eq.f32.partialorder %v1987_v44, 8.507059e+37 }
 0x5da   :  { %v2194_v31 = vpop.eup %2193 }
 0x5db   :  { %v1997_v57 = vadd.f32 1.0, %v2194_v31 }
 0x5dc   :  { %v2196_v42 = vpop.eup %2195 }
 0x5dd   :  { %v2198_v52 = vpop.eup %2197  ;;  %v1960_v62 = vmul.f32 %v2196_v42, %v1958_v54  ;;  %2199 = vrcp.f32 %v1997_v57  ;;  %vm1965_vm4 = vweird.f32 %v2196_v42  ;;  %v2009_v40 = vand.u32 2147483648, %v1997_v57 }
 0x5de   :  { %v1979_v21 = vmul.f32 %v2198_v52, %v1977_v48  ;;  %2201 = vtanh.f32 %v1953_v60  ;;  %vm1984_vm5 = vweird.f32 %v2198_v52  ;;  %vm1966_vm8 = vmor %vm1964_vm6, %vm1965_vm4  ;;  %vm2003_vm13 = vweird.f32 %v1997_v57 }
 0x5df   :  { %v1961_v4 = vsub.f32 1.0, %v1960_v62  ;;  %vm1985_vm9 = vmor %vm1983_vm7, %vm1984_vm5  ;;  %v2007_v43 = vand.u32 2147483647, %v1997_v57  ;;  %v2010_v12 = vor.u32 1.1754944e-38, %v2009_v40 }
 0x5e0   :  { %v1980_v26 = vsub.f32 1.0, %v1979_v21 }
 0x5e1   :  { %v1962_v5 = vmul.f32 %v2196_v42, %v1961_v4  ;;  %vm2008_vm15 = vcmp.eq.f32.partialorder %v2007_v43, 8.507059e+37 }
 0x5e2   :  { %v1981_v8 = vmul.f32 %v2198_v52, %v1980_v26 }
 0x5e3   :  { %v2200_v38 = vpop.eup %2199  ;;  %v1963_v0 = vadd.f32 %v2196_v42, %v1962_v5 }
 0x5e4   :  { %v1982_v1 = vadd.f32 %v2198_v52, %v1981_v8  ;;  %v1999_v2 = vmul.f32 %v2200_v38, %v1997_v57  ;;  %v2202_v19 = vpop.eup %2201  ;;  %vm2004_vm12 = vweird.f32 %v2200_v38 }
 0x5e5   :  { %v1967_v35 = vsel %vm1966_vm8, %v2196_v42, %v1963_v0  ;;  %vm2005_vm14 = vmor %vm2003_vm13, %vm2004_vm12 }
 0x5e6   :  { %v1972_v7 = vsel %vm1969_vm10, %v1971_v55, %v1967_v35  ;;  %v1986_v25 = vsel %vm1985_vm9, %v2198_v52, %v1982_v1  ;;  %v2000_v22 = vsub.f32 1.0, %v1999_v2 }
 0x5e7   :  { %v1991_v11 = vsel %vm1988_vm11, %v1990_v6, %v1986_v25  ;;  %v2014_v17 = vmul.f32 %v2202_v19, %v1972_v7 }
 0x5e8   :  { %v2013_v14 = vmul.f32 %v1991_v11, %v5558_v20  ;;  %v2001_v23 = vmul.f32 %v2200_v38, %v2000_v22 }
 0x5ea   :  { %v2015_v10 = vadd.f32 %v2014_v17, %v2013_v14  ;;  %v2002_v13 = vadd.f32 %v2200_v38, %v2001_v23 }
 0x5ec   :  { %2203 = vtanh.f32 %v2015_v10  ;;  %2026 = vst [vmem:[%s5588_s8] sm:$0xff] %v2015_v10  ;;  %v2006_v16 = vsel %vm2005_vm14, %v2200_v38, %v2002_v13 }
 0x5ed   :  { %v2011_v27 = vsel %vm2008_vm15, %v2010_v12, %v2006_v16 }
 0x5f2   :  { %v2204_v15 = vpop.eup %2203 }
 0x5f3   :  { %v2017_v34 = vmul.f32 %v2204_v15, %v2011_v27 }
 0x5f5   :  { %2076 = vst [vmem:[%s5587_s6 + $0x38] sm:$0xff] %v2017_v34 }
 0x5f6   :  { %2025 = vst [vmem:[%s5589_s7] sm:$0xff] %v2017_v34 }

</bundles_post_ra>
